<compile_context>
chip_gen: v6e
topology: v6e:2x2x1
jax: 0.10.0
libtpu: 0.0.40
codegen_flags: <defaults>
</compile_context>

<pallas_src>
import functools

import jax
import jax.numpy as jnp
from jax.experimental import pallas as pl
from jax.experimental.pallas import tpu as pltpu


HP = 128  # padded hidden size == per-gate lane width (one full f32 vreg of lanes)


# ----------------------------------------------------------------------------
# Fused kernel: LSTM0 -> LSTM1 -> Linear -> Softmax, single invocation.
# ----------------------------------------------------------------------------
def fused_lstm_head_kernel(xf_ref, wih0_ref, whh0_ref, b0_ref,
                           wih1_ref, whh1_ref, b1_ref,
                           wlin_ref, blin_ref,
                           out_ref, h0_scr, *, seq, bp, hp):
    def run_lstm(gx, whh, out_scr):
        """gx: (seq*bp, 4*hp) precomputed x@W_ih + b.  Returns final h (bp, hp)."""
        h = jnp.zeros((bp, hp), jnp.float32)
        c = jnp.zeros((bp, hp), jnp.float32)
        # seq is tiny & static -> fully unrolled recurrence (only h@W_hh is serial).
        for t in range(seq):
            gates = gx[t * bp:(t + 1) * bp, :] + jnp.dot(
                h, whh, preferred_element_type=jnp.float32)
            i = jax.nn.sigmoid(gates[:, 0 * hp:1 * hp])   # lane-aligned gate slices
            f = jax.nn.sigmoid(gates[:, 1 * hp:2 * hp])
            g = jnp.tanh(gates[:, 2 * hp:3 * hp])
            o = jax.nn.sigmoid(gates[:, 3 * hp:4 * hp])
            c = f * c + i * g
            h = o * jnp.tanh(c)
            if out_scr is not None:
                out_scr[t * bp:(t + 1) * bp, :] = h       # stays in VMEM
        return h

    # ---- Layer 0: hoisted input projection (one matmul), then recurrence ----
    gx0 = jnp.dot(xf_ref[...], wih0_ref[...],
                  preferred_element_type=jnp.float32) + b0_ref[...]
    run_lstm(gx0, whh0_ref[...], h0_scr)

    # ---- Layer 1: hoisted input projection on the whole layer-0 slab --------
    gx1 = jnp.dot(h0_scr[...], wih1_ref[...],
                  preferred_element_type=jnp.float32) + b1_ref[...]
    h1_last = run_lstm(gx1, whh1_ref[...], None)          # ht[-1] of 2nd LSTM

    # ---- Head: Linear(64 -> 5) + Softmax(dim=1) ------------------------------
    logits = jnp.dot(h1_last, wlin_ref[...],
                     preferred_element_type=jnp.float32) + blin_ref[...]
    m = jnp.max(logits, axis=1, keepdims=True)
    e = jnp.exp(logits - m)
    s = jnp.sum(e, axis=1, keepdims=True)
    out_ref[...] = e * pl.reciprocal(s, approx=True)


# ----------------------------------------------------------------------------
# Wrapper: embedding gather (plain-JAX glue) + padding + one pallas_call.
# ----------------------------------------------------------------------------
def lstm_model_forward(tokens, embedding, kp):
    batch, seq = tokens.shape
    nc = kp["b_lin"].shape[1]
    bp = ((batch + 7) // 8) * 8  # pad batch to the f32 sublane tile

    emb = jnp.take(embedding, tokens, axis=0)            # (batch, seq, E) gather glue
    x = jnp.transpose(emb, (1, 0, 2))                    # time-major (seq, batch, E)
    x = jnp.pad(x, ((0, 0), (0, bp - batch), (0, 0)))
    x_flat = x.reshape(seq * bp, -1)                     # rows [t*bp:(t+1)*bp] = step t

    kernel = functools.partial(fused_lstm_head_kernel, seq=seq, bp=bp, hp=HP)
    out_p = pl.pallas_call(
        kernel,
        out_shape=jax.ShapeDtypeStruct((bp, nc), jnp.float32),
        in_specs=[pl.BlockSpec(memory_space=pltpu.MemorySpace.VMEM)] * 9,
        out_specs=pl.BlockSpec(memory_space=pltpu.MemorySpace.VMEM),
        scratch_shapes=[pltpu.VMEM((seq * bp, HP), jnp.float32)],  # layer-0 out slab
    )(x_flat,
      kp["w_ih0"], kp["w_hh0"], kp["b0"],
      kp["w_ih1"], kp["w_hh1"], kp["b1"],
      kp["w_lin"], kp["b_lin"])
    return out_p[:batch]


# ----------------------------------------------------------------------------
# Parameter packing: PyTorch layout -> lane-padded, pre-transposed kernel layout.
# ----------------------------------------------------------------------------
def pack_lstm_params(w_ih, w_hh, b_ih, b_hh, in_dim_padded):
    four_h, in_dim = w_ih.shape
    h = four_h // 4
    w_ih_p = jnp.zeros((in_dim_padded, 4 * HP), jnp.float32)
    w_hh_p = jnp.zeros((HP, 4 * HP), jnp.float32)
    b_p = jnp.zeros((1, 4 * HP), jnp.float32)
    b = b_ih + b_hh
    for k in range(4):  # PyTorch gate order: i, f, g, o
        w_ih_p = w_ih_p.at[:in_dim, k * HP:k * HP + h].set(w_ih[k * h:(k + 1) * h, :].T)
        w_hh_p = w_hh_p.at[:h, k * HP:k * HP + h].set(w_hh[k * h:(k + 1) * h, :].T)
        b_p = b_p.at[0, k * HP:k * HP + h].set(b[k * h:(k + 1) * h])
    return w_ih_p, w_hh_p, b_p


def pack_params(p):
    e_dim = p["w_ih0"].shape[1]
    h1 = p["w_hh1"].shape[1]
    nc = p["w_lin"].shape[0]
    kp = {}
    kp["w_ih0"], kp["w_hh0"], kp["b0"] = pack_lstm_params(
        p["w_ih0"], p["w_hh0"], p["b_ih0"], p["b_hh0"], e_dim)
    kp["w_ih1"], kp["w_hh1"], kp["b1"] = pack_lstm_params(
        p["w_ih1"], p["w_hh1"], p["b_ih1"], p["b_hh1"], HP)
    kp["w_lin"] = jnp.zeros((HP, nc), jnp.float32).at[:h1, :].set(p["w_lin"].T)
    kp["b_lin"] = p["b_lin"].reshape(1, nc)
    return kp


def init_torch_like_params(key, vocab_size, embedding_dim, hidden0, hidden1, num_classes):
    ks = jax.random.split(key, 11)

    def uni(k, shape, bound):
        return jax.random.uniform(k, shape, jnp.float32, -bound, bound)

    emb = jax.random.normal(ks[0], (vocab_size, embedding_dim), jnp.float32)
    emb = emb.at[0].set(0.0)  # padding_idx=0

    k0 = hidden0 ** -0.5
    k1 = hidden1 ** -0.5
    return {
        "embedding": emb,
        "w_ih0": uni(ks[1], (4 * hidden0, embedding_dim), k0),
        "w_hh0": uni(ks[2], (4 * hidden0, hidden0), k0),
        "b_ih0": uni(ks[3], (4 * hidden0,), k0),
        "b_hh0": uni(ks[4], (4 * hidden0,), k0),
        "w_ih1": uni(ks[5], (4 * hidden1, hidden0), k1),
        "w_hh1": uni(ks[6], (4 * hidden1, hidden1), k1),
        "b_ih1": uni(ks[7], (4 * hidden1,), k1),
        "b_hh1": uni(ks[8], (4 * hidden1,), k1),
        "w_lin": uni(ks[9], (num_classes, hidden1), k1),
        "b_lin": uni(ks[10], (num_classes,), k1),
    }


# ----------------------------------------------------------------------------
# Pure-JAX reference (matches the PyTorch module semantics).
# ----------------------------------------------------------------------------
def reference_forward(tokens, p):
    emb = jnp.take(p["embedding"], tokens, axis=0)   # (B, S, E)

    def lstm(x_btf, w_ih, w_hh, b_ih, b_hh):
        h_dim = w_hh.shape[1]
        bsz = x_btf.shape[0]

        def cell(carry, x_t):
            h, c = carry
            gates = x_t @ w_ih.T + h @ w_hh.T + b_ih + b_hh
            i, f, g, o = jnp.split(gates, 4, axis=1)
            c = jax.nn.sigmoid(f) * c + jax.nn.sigmoid(i) * jnp.tanh(g)
            h = jax.nn.sigmoid(o) * jnp.tanh(c)
            return (h, c), h

        init = (jnp.zeros((bsz, h_dim), jnp.float32),
                jnp.zeros((bsz, h_dim), jnp.float32))
        (h_last, _), ys = jax.lax.scan(cell, init, jnp.transpose(x_btf, (1, 0, 2)))
        return jnp.transpose(ys, (1, 0, 2)), h_last

    o0, _ = lstm(emb, p["w_ih0"], p["w_hh0"], p["b_ih0"], p["b_hh0"])
    _, h1 = lstm(o0, p["w_ih1"], p["w_hh1"], p["b_ih1"], p["b_hh1"])
    logits = h1 @ p["w_lin"].T + p["b_lin"]
    return jax.nn.softmax(logits, axis=1)


if __name__ == "__main__":
    vocab_size = 50
    embedding_dim = 16
    hidden_dim = 32     # first LSTM hidden size (module arg)
    hidden1 = 64        # second LSTM hidden size (fixed in module)
    num_classes = 5     # Linear(64, 5)
    batch, seq = 2, 8
    # Note: nn.Dropout(p=0.2) in the module is never applied in forward().

    key = jax.random.PRNGKey(0)
    k_tok, k_par = jax.random.split(key)
    tokens = jax.random.randint(k_tok, (batch, seq), 0, vocab_size, dtype=jnp.int32)

    torch_params = init_torch_like_params(
        k_par, vocab_size, embedding_dim, hidden_dim, hidden1, num_classes)
    kernel_params = pack_params(torch_params)

    out = jax.jit(lstm_model_forward)(tokens, torch_params["embedding"], kernel_params)
    out = jax.block_until_ready(out)

    ref = jax.block_until_ready(reference_forward(tokens, torch_params))

    assert out.shape == (batch, num_classes)
    assert bool(jnp.all(jnp.isfinite(out)))
    # Softmax rows ~sum to 1 (approx EUP reciprocal -> loose tolerance).
    assert bool(jnp.allclose(jnp.sum(out, axis=1), 1.0, atol=5e-3))
    # Matches the pure-JAX (PyTorch-semantics) reference.
    assert bool(jnp.allclose(out, ref, atol=5e-3))

    print("KERNEL_OK")
</pallas_src>

<mosaic_0001>
module attributes {stable_mosaic.version = 11 : i64} {
  func.func @fused_lstm_head_kernel(%arg0: memref<64x16xf32, #tpu.memory_space<vmem>>, %arg1: memref<16x512xf32, #tpu.memory_space<vmem>>, %arg2: memref<128x512xf32, #tpu.memory_space<vmem>>, %arg3: memref<1x512xf32, #tpu.memory_space<vmem>>, %arg4: memref<128x512xf32, #tpu.memory_space<vmem>>, %arg5: memref<128x512xf32, #tpu.memory_space<vmem>>, %arg6: memref<1x512xf32, #tpu.memory_space<vmem>>, %arg7: memref<128x5xf32, #tpu.memory_space<vmem>>, %arg8: memref<1x5xf32, #tpu.memory_space<vmem>>, %arg9: memref<8x5xf32, #tpu.memory_space<vmem>>, %arg10: memref<64x128xf32, #tpu.memory_space<vmem>>) attributes {dimension_semantics = [], scalar_prefetch = 0 : i64, scratch_operands = 1 : i64, tpu.core_type = #tpu.core_type<tc>} {
    %c0 = arith.constant 0 : index
    %c0_0 = arith.constant 0 : index
    %0 = vector.load %arg0[%c0, %c0_0] : memref<64x16xf32, #tpu.memory_space<vmem>>, vector<64x16xf32>
    %c0_1 = arith.constant 0 : index
    %c0_2 = arith.constant 0 : index
    %1 = vector.load %arg1[%c0_1, %c0_2] : memref<16x512xf32, #tpu.memory_space<vmem>>, vector<16x512xf32>
    %cst = arith.constant dense<0.000000e+00> : vector<64x512xf32>
    %2 = tpu.matmul %0, %1, %cst {dimension_numbers = #tpu.dot_dimension_numbers<[1], [0], [0], [1], [0, 0, 1, 1], [], []>} : vector<64x16xf32>, vector<16x512xf32>, vector<64x512xf32> -> vector<64x512xf32>
    %c0_3 = arith.constant 0 : index
    %c0_4 = arith.constant 0 : index
    %3 = vector.load %arg3[%c0_3, %c0_4] : memref<1x512xf32, #tpu.memory_space<vmem>>, vector<1x512xf32>
    %4 = vector.broadcast %3 : vector<1x512xf32> to vector<64x512xf32>
    %5 = arith.addf %2, %4 : vector<64x512xf32>
    %c0_5 = arith.constant 0 : index
    %c0_6 = arith.constant 0 : index
    %6 = vector.load %arg2[%c0_5, %c0_6] : memref<128x512xf32, #tpu.memory_space<vmem>>, vector<128x512xf32>
    %cst_7 = arith.constant 0.000000e+00 : f32
    %7 = vector.broadcast %cst_7 : f32 to vector<8x128xf32>
    %cst_8 = arith.constant 0.000000e+00 : f32
    %8 = vector.broadcast %cst_8 : f32 to vector<8x128xf32>
    %9 = vector.extract_strided_slice %5 {offsets = [0, 0], sizes = [8, 512], strides = [1, 1]} : vector<64x512xf32> to vector<8x512xf32>
    %cst_9 = arith.constant dense<0.000000e+00> : vector<8x512xf32>
    %10 = tpu.matmul %7, %6, %cst_9 {dimension_numbers = #tpu.dot_dimension_numbers<[1], [0], [0], [1], [0, 0, 1, 1], [], []>} : vector<8x128xf32>, vector<128x512xf32>, vector<8x512xf32> -> vector<8x512xf32>
    %11 = arith.addf %9, %10 : vector<8x512xf32>
    %12 = vector.extract_strided_slice %11 {offsets = [0, 0], sizes = [8, 128], strides = [1, 1]} : vector<8x512xf32> to vector<8x128xf32>
    %13 = arith.negf %12 : vector<8x128xf32>
    %14 = math.exp %13 : vector<8x128xf32>
    %cst_10 = arith.constant 1.000000e+00 : f32
    %15 = vector.broadcast %cst_10 : f32 to vector<8x128xf32>
    %16 = arith.addf %15, %14 : vector<8x128xf32>
    %17 = arith.divf %15, %16 : vector<8x128xf32>
    %18 = vector.extract_strided_slice %11 {offsets = [0, 128], sizes = [8, 128], strides = [1, 1]} : vector<8x512xf32> to vector<8x128xf32>
    %19 = arith.negf %18 : vector<8x128xf32>
    %20 = math.exp %19 : vector<8x128xf32>
    %cst_11 = arith.constant 1.000000e+00 : f32
    %21 = vector.broadcast %cst_11 : f32 to vector<8x128xf32>
    %22 = arith.addf %21, %20 : vector<8x128xf32>
    %23 = arith.divf %21, %22 : vector<8x128xf32>
    %24 = vector.extract_strided_slice %11 {offsets = [0, 256], sizes = [8, 128], strides = [1, 1]} : vector<8x512xf32> to vector<8x128xf32>
    %25 = math.tanh %24 : vector<8x128xf32>
    %26 = vector.extract_strided_slice %11 {offsets = [0, 384], sizes = [8, 128], strides = [1, 1]} : vector<8x512xf32> to vector<8x128xf32>
    %27 = arith.negf %26 : vector<8x128xf32>
    %28 = math.exp %27 : vector<8x128xf32>
    %cst_12 = arith.constant 1.000000e+00 : f32
    %29 = vector.broadcast %cst_12 : f32 to vector<8x128xf32>
    %30 = arith.addf %29, %28 : vector<8x128xf32>
    %31 = arith.divf %29, %30 : vector<8x128xf32>
    %32 = arith.mulf %23, %8 : vector<8x128xf32>
    %33 = arith.mulf %17, %25 : vector<8x128xf32>
    %34 = arith.addf %32, %33 : vector<8x128xf32>
    %35 = math.tanh %34 : vector<8x128xf32>
    %36 = arith.mulf %31, %35 : vector<8x128xf32>
    %c0_13 = arith.constant 0 : index
    %c0_14 = arith.constant 0 : index
    %37 = vector.load %arg10[%c0_13, %c0_14] : memref<64x128xf32, #tpu.memory_space<vmem>>, vector<8x128xf32>
    tpu.vector_store %arg10[%c0_13, %c0_14], %36 {strides = array<i32>} : memref<64x128xf32, #tpu.memory_space<vmem>>, vector<8x128xf32>,
    %38 = vector.extract_strided_slice %5 {offsets = [8, 0], sizes = [8, 512], strides = [1, 1]} : vector<64x512xf32> to vector<8x512xf32>
    %cst_15 = arith.constant dense<0.000000e+00> : vector<8x512xf32>
    %39 = tpu.matmul %36, %6, %cst_15 {dimension_numbers = #tpu.dot_dimension_numbers<[1], [0], [0], [1], [0, 0, 1, 1], [], []>} : vector<8x128xf32>, vector<128x512xf32>, vector<8x512xf32> -> vector<8x512xf32>
    %40 = arith.addf %38, %39 : vector<8x512xf32>
    %41 = vector.extract_strided_slice %40 {offsets = [0, 0], sizes = [8, 128], strides = [1, 1]} : vector<8x512xf32> to vector<8x128xf32>
    %42 = arith.negf %41 : vector<8x128xf32>
    %43 = math.exp %42 : vector<8x128xf32>
    %cst_16 = arith.constant 1.000000e+00 : f32
    %44 = vector.broadcast %cst_16 : f32 to vector<8x128xf32>
    %45 = arith.addf %44, %43 : vector<8x128xf32>
    %46 = arith.divf %44, %45 : vector<8x128xf32>
    %47 = vector.extract_strided_slice %40 {offsets = [0, 128], sizes = [8, 128], strides = [1, 1]} : vector<8x512xf32> to vector<8x128xf32>
    %48 = arith.negf %47 : vector<8x128xf32>
    %49 = math.exp %48 : vector<8x128xf32>
    %cst_17 = arith.constant 1.000000e+00 : f32
    %50 = vector.broadcast %cst_17 : f32 to vector<8x128xf32>
    %51 = arith.addf %50, %49 : vector<8x128xf32>
    %52 = arith.divf %50, %51 : vector<8x128xf32>
    %53 = vector.extract_strided_slice %40 {offsets = [0, 256], sizes = [8, 128], strides = [1, 1]} : vector<8x512xf32> to vector<8x128xf32>
    %54 = math.tanh %53 : vector<8x128xf32>
    %55 = vector.extract_strided_slice %40 {offsets = [0, 384], sizes = [8, 128], strides = [1, 1]} : vector<8x512xf32> to vector<8x128xf32>
    %56 = arith.negf %55 : vector<8x128xf32>
    %57 = math.exp %56 : vector<8x128xf32>
    %cst_18 = arith.constant 1.000000e+00 : f32
    %58 = vector.broadcast %cst_18 : f32 to vector<8x128xf32>
    %59 = arith.addf %58, %57 : vector<8x128xf32>
    %60 = arith.divf %58, %59 : vector<8x128xf32>
    %61 = arith.mulf %52, %34 : vector<8x128xf32>
    %62 = arith.mulf %46, %54 : vector<8x128xf32>
    %63 = arith.addf %61, %62 : vector<8x128xf32>
    %64 = math.tanh %63 : vector<8x128xf32>
    %65 = arith.mulf %60, %64 : vector<8x128xf32>
    %c8 = arith.constant 8 : index
    %c0_19 = arith.constant 0 : index
    %66 = vector.load %arg10[%c8, %c0_19] : memref<64x128xf32, #tpu.memory_space<vmem>>, vector<8x128xf32>
    tpu.vector_store %arg10[%c8, %c0_19], %65 {strides = array<i32>} : memref<64x128xf32, #tpu.memory_space<vmem>>, vector<8x128xf32>,
    %67 = vector.extract_strided_slice %5 {offsets = [16, 0], sizes = [8, 512], strides = [1, 1]} : vector<64x512xf32> to vector<8x512xf32>
    %cst_20 = arith.constant dense<0.000000e+00> : vector<8x512xf32>
    %68 = tpu.matmul %65, %6, %cst_20 {dimension_numbers = #tpu.dot_dimension_numbers<[1], [0], [0], [1], [0, 0, 1, 1], [], []>} : vector<8x128xf32>, vector<128x512xf32>, vector<8x512xf32> -> vector<8x512xf32>
    %69 = arith.addf %67, %68 : vector<8x512xf32>
    %70 = vector.extract_strided_slice %69 {offsets = [0, 0], sizes = [8, 128], strides = [1, 1]} : vector<8x512xf32> to vector<8x128xf32>
    %71 = arith.negf %70 : vector<8x128xf32>
    %72 = math.exp %71 : vector<8x128xf32>
    %cst_21 = arith.constant 1.000000e+00 : f32
    %73 = vector.broadcast %cst_21 : f32 to vector<8x128xf32>
    %74 = arith.addf %73, %72 : vector<8x128xf32>
    %75 = arith.divf %73, %74 : vector<8x128xf32>
    %76 = vector.extract_strided_slice %69 {offsets = [0, 128], sizes = [8, 128], strides = [1, 1]} : vector<8x512xf32> to vector<8x128xf32>
    %77 = arith.negf %76 : vector<8x128xf32>
    %78 = math.exp %77 : vector<8x128xf32>
    %cst_22 = arith.constant 1.000000e+00 : f32
    %79 = vector.broadcast %cst_22 : f32 to vector<8x128xf32>
    %80 = arith.addf %79, %78 : vector<8x128xf32>
    %81 = arith.divf %79, %80 : vector<8x128xf32>
    %82 = vector.extract_strided_slice %69 {offsets = [0, 256], sizes = [8, 128], strides = [1, 1]} : vector<8x512xf32> to vector<8x128xf32>
    %83 = math.tanh %82 : vector<8x128xf32>
    %84 = vector.extract_strided_slice %69 {offsets = [0, 384], sizes = [8, 128], strides = [1, 1]} : vector<8x512xf32> to vector<8x128xf32>
    %85 = arith.negf %84 : vector<8x128xf32>
    %86 = math.exp %85 : vector<8x128xf32>
    %cst_23 = arith.constant 1.000000e+00 : f32
    %87 = vector.broadcast %cst_23 : f32 to vector<8x128xf32>
    %88 = arith.addf %87, %86 : vector<8x128xf32>
    %89 = arith.divf %87, %88 : vector<8x128xf32>
    %90 = arith.mulf %81, %63 : vector<8x128xf32>
    %91 = arith.mulf %75, %83 : vector<8x128xf32>
    %92 = arith.addf %90, %91 : vector<8x128xf32>
    %93 = math.tanh %92 : vector<8x128xf32>
    %94 = arith.mulf %89, %93 : vector<8x128xf32>
    %c16 = arith.constant 16 : index
    %c0_24 = arith.constant 0 : index
    %95 = vector.load %arg10[%c16, %c0_24] : memref<64x128xf32, #tpu.memory_space<vmem>>, vector<8x128xf32>
    tpu.vector_store %arg10[%c16, %c0_24], %94 {strides = array<i32>} : memref<64x128xf32, #tpu.memory_space<vmem>>, vector<8x128xf32>,
    %96 = vector.extract_strided_slice %5 {offsets = [24, 0], sizes = [8, 512], strides = [1, 1]} : vector<64x512xf32> to vector<8x512xf32>
    %cst_25 = arith.constant dense<0.000000e+00> : vector<8x512xf32>
    %97 = tpu.matmul %94, %6, %cst_25 {dimension_numbers = #tpu.dot_dimension_numbers<[1], [0], [0], [1], [0, 0, 1, 1], [], []>} : vector<8x128xf32>, vector<128x512xf32>, vector<8x512xf32> -> vector<8x512xf32>
    %98 = arith.addf %96, %97 : vector<8x512xf32>
    %99 = vector.extract_strided_slice %98 {offsets = [0, 0], sizes = [8, 128], strides = [1, 1]} : vector<8x512xf32> to vector<8x128xf32>
    %100 = arith.negf %99 : vector<8x128xf32>
    %101 = math.exp %100 : vector<8x128xf32>
    %cst_26 = arith.constant 1.000000e+00 : f32
    %102 = vector.broadcast %cst_26 : f32 to vector<8x128xf32>
    %103 = arith.addf %102, %101 : vector<8x128xf32>
    %104 = arith.divf %102, %103 : vector<8x128xf32>
    %105 = vector.extract_strided_slice %98 {offsets = [0, 128], sizes = [8, 128], strides = [1, 1]} : vector<8x512xf32> to vector<8x128xf32>
    %106 = arith.negf %105 : vector<8x128xf32>
    %107 = math.exp %106 : vector<8x128xf32>
    %cst_27 = arith.constant 1.000000e+00 : f32
    %108 = vector.broadcast %cst_27 : f32 to vector<8x128xf32>
    %109 = arith.addf %108, %107 : vector<8x128xf32>
    %110 = arith.divf %108, %109 : vector<8x128xf32>
    %111 = vector.extract_strided_slice %98 {offsets = [0, 256], sizes = [8, 128], strides = [1, 1]} : vector<8x512xf32> to vector<8x128xf32>
    %112 = math.tanh %111 : vector<8x128xf32>
    %113 = vector.extract_strided_slice %98 {offsets = [0, 384], sizes = [8, 128], strides = [1, 1]} : vector<8x512xf32> to vector<8x128xf32>
    %114 = arith.negf %113 : vector<8x128xf32>
    %115 = math.exp %114 : vector<8x128xf32>
    %cst_28 = arith.constant 1.000000e+00 : f32
    %116 = vector.broadcast %cst_28 : f32 to vector<8x128xf32>
    %117 = arith.addf %116, %115 : vector<8x128xf32>
    %118 = arith.divf %116, %117 : vector<8x128xf32>
    %119 = arith.mulf %110, %92 : vector<8x128xf32>
    %120 = arith.mulf %104, %112 : vector<8x128xf32>
    %121 = arith.addf %119, %120 : vector<8x128xf32>
    %122 = math.tanh %121 : vector<8x128xf32>
    %123 = arith.mulf %118, %122 : vector<8x128xf32>
    %c24 = arith.constant 24 : index
    %c0_29 = arith.constant 0 : index
    %124 = vector.load %arg10[%c24, %c0_29] : memref<64x128xf32, #tpu.memory_space<vmem>>, vector<8x128xf32>
    tpu.vector_store %arg10[%c24, %c0_29], %123 {strides = array<i32>} : memref<64x128xf32, #tpu.memory_space<vmem>>, vector<8x128xf32>,
    %125 = vector.extract_strided_slice %5 {offsets = [32, 0], sizes = [8, 512], strides = [1, 1]} : vector<64x512xf32> to vector<8x512xf32>
    %cst_30 = arith.constant dense<0.000000e+00> : vector<8x512xf32>
    %126 = tpu.matmul %123, %6, %cst_30 {dimension_numbers = #tpu.dot_dimension_numbers<[1], [0], [0], [1], [0, 0, 1, 1], [], []>} : vector<8x128xf32>, vector<128x512xf32>, vector<8x512xf32> -> vector<8x512xf32>
    %127 = arith.addf %125, %126 : vector<8x512xf32>
    %128 = vector.extract_strided_slice %127 {offsets = [0, 0], sizes = [8, 128], strides = [1, 1]} : vector<8x512xf32> to vector<8x128xf32>
    %129 = arith.negf %128 : vector<8x128xf32>
    %130 = math.exp %129 : vector<8x128xf32>
    %cst_31 = arith.constant 1.000000e+00 : f32
    %131 = vector.broadcast %cst_31 : f32 to vector<8x128xf32>
    %132 = arith.addf %131, %130 : vector<8x128xf32>
    %133 = arith.divf %131, %132 : vector<8x128xf32>
    %134 = vector.extract_strided_slice %127 {offsets = [0, 128], sizes = [8, 128], strides = [1, 1]} : vector<8x512xf32> to vector<8x128xf32>
    %135 = arith.negf %134 : vector<8x128xf32>
    %136 = math.exp %135 : vector<8x128xf32>
    %cst_32 = arith.constant 1.000000e+00 : f32
    %137 = vector.broadcast %cst_32 : f32 to vector<8x128xf32>
    %138 = arith.addf %137, %136 : vector<8x128xf32>
    %139 = arith.divf %137, %138 : vector<8x128xf32>
    %140 = vector.extract_strided_slice %127 {offsets = [0, 256], sizes = [8, 128], strides = [1, 1]} : vector<8x512xf32> to vector<8x128xf32>
    %141 = math.tanh %140 : vector<8x128xf32>
    %142 = vector.extract_strided_slice %127 {offsets = [0, 384], sizes = [8, 128], strides = [1, 1]} : vector<8x512xf32> to vector<8x128xf32>
    %143 = arith.negf %142 : vector<8x128xf32>
    %144 = math.exp %143 : vector<8x128xf32>
    %cst_33 = arith.constant 1.000000e+00 : f32
    %145 = vector.broadcast %cst_33 : f32 to vector<8x128xf32>
    %146 = arith.addf %145, %144 : vector<8x128xf32>
    %147 = arith.divf %145, %146 : vector<8x128xf32>
    %148 = arith.mulf %139, %121 : vector<8x128xf32>
    %149 = arith.mulf %133, %141 : vector<8x128xf32>
    %150 = arith.addf %148, %149 : vector<8x128xf32>
    %151 = math.tanh %150 : vector<8x128xf32>
    %152 = arith.mulf %147, %151 : vector<8x128xf32>
    %c32 = arith.constant 32 : index
    %c0_34 = arith.constant 0 : index
    %153 = vector.load %arg10[%c32, %c0_34] : memref<64x128xf32, #tpu.memory_space<vmem>>, vector<8x128xf32>
    tpu.vector_store %arg10[%c32, %c0_34], %152 {strides = array<i32>} : memref<64x128xf32, #tpu.memory_space<vmem>>, vector<8x128xf32>,
    %154 = vector.extract_strided_slice %5 {offsets = [40, 0], sizes = [8, 512], strides = [1, 1]} : vector<64x512xf32> to vector<8x512xf32>
    %cst_35 = arith.constant dense<0.000000e+00> : vector<8x512xf32>
    %155 = tpu.matmul %152, %6, %cst_35 {dimension_numbers = #tpu.dot_dimension_numbers<[1], [0], [0], [1], [0, 0, 1, 1], [], []>} : vector<8x128xf32>, vector<128x512xf32>, vector<8x512xf32> -> vector<8x512xf32>
    %156 = arith.addf %154, %155 : vector<8x512xf32>
    %157 = vector.extract_strided_slice %156 {offsets = [0, 0], sizes = [8, 128], strides = [1, 1]} : vector<8x512xf32> to vector<8x128xf32>
    %158 = arith.negf %157 : vector<8x128xf32>
    %159 = math.exp %158 : vector<8x128xf32>
    %cst_36 = arith.constant 1.000000e+00 : f32
    %160 = vector.broadcast %cst_36 : f32 to vector<8x128xf32>
    %161 = arith.addf %160, %159 : vector<8x128xf32>
    %162 = arith.divf %160, %161 : vector<8x128xf32>
    %163 = vector.extract_strided_slice %156 {offsets = [0, 128], sizes = [8, 128], strides = [1, 1]} : vector<8x512xf32> to vector<8x128xf32>
    %164 = arith.negf %163 : vector<8x128xf32>
    %165 = math.exp %164 : vector<8x128xf32>
    %cst_37 = arith.constant 1.000000e+00 : f32
    %166 = vector.broadcast %cst_37 : f32 to vector<8x128xf32>
    %167 = arith.addf %166, %165 : vector<8x128xf32>
    %168 = arith.divf %166, %167 : vector<8x128xf32>
    %169 = vector.extract_strided_slice %156 {offsets = [0, 256], sizes = [8, 128], strides = [1, 1]} : vector<8x512xf32> to vector<8x128xf32>
    %170 = math.tanh %169 : vector<8x128xf32>
    %171 = vector.extract_strided_slice %156 {offsets = [0, 384], sizes = [8, 128], strides = [1, 1]} : vector<8x512xf32> to vector<8x128xf32>
    %172 = arith.negf %171 : vector<8x128xf32>
    %173 = math.exp %172 : vector<8x128xf32>
    %cst_38 = arith.constant 1.000000e+00 : f32
    %174 = vector.broadcast %cst_38 : f32 to vector<8x128xf32>
    %175 = arith.addf %174, %173 : vector<8x128xf32>
    %176 = arith.divf %174, %175 : vector<8x128xf32>
    %177 = arith.mulf %168, %150 : vector<8x128xf32>
    %178 = arith.mulf %162, %170 : vector<8x128xf32>
    %179 = arith.addf %177, %178 : vector<8x128xf32>
    %180 = math.tanh %179 : vector<8x128xf32>
    %181 = arith.mulf %176, %180 : vector<8x128xf32>
    %c40 = arith.constant 40 : index
    %c0_39 = arith.constant 0 : index
    %182 = vector.load %arg10[%c40, %c0_39] : memref<64x128xf32, #tpu.memory_space<vmem>>, vector<8x128xf32>
    tpu.vector_store %arg10[%c40, %c0_39], %181 {strides = array<i32>} : memref<64x128xf32, #tpu.memory_space<vmem>>, vector<8x128xf32>,
    %183 = vector.extract_strided_slice %5 {offsets = [48, 0], sizes = [8, 512], strides = [1, 1]} : vector<64x512xf32> to vector<8x512xf32>
    %cst_40 = arith.constant dense<0.000000e+00> : vector<8x512xf32>
    %184 = tpu.matmul %181, %6, %cst_40 {dimension_numbers = #tpu.dot_dimension_numbers<[1], [0], [0], [1], [0, 0, 1, 1], [], []>} : vector<8x128xf32>, vector<128x512xf32>, vector<8x512xf32> -> vector<8x512xf32>
    %185 = arith.addf %183, %184 : vector<8x512xf32>
    %186 = vector.extract_strided_slice %185 {offsets = [0, 0], sizes = [8, 128], strides = [1, 1]} : vector<8x512xf32> to vector<8x128xf32>
    %187 = arith.negf %186 : vector<8x128xf32>
    %188 = math.exp %187 : vector<8x128xf32>
    %cst_41 = arith.constant 1.000000e+00 : f32
    %189 = vector.broadcast %cst_41 : f32 to vector<8x128xf32>
    %190 = arith.addf %189, %188 : vector<8x128xf32>
    %191 = arith.divf %189, %190 : vector<8x128xf32>
    %192 = vector.extract_strided_slice %185 {offsets = [0, 128], sizes = [8, 128], strides = [1, 1]} : vector<8x512xf32> to vector<8x128xf32>
    %193 = arith.negf %192 : vector<8x128xf32>
    %194 = math.exp %193 : vector<8x128xf32>
    %cst_42 = arith.constant 1.000000e+00 : f32
    %195 = vector.broadcast %cst_42 : f32 to vector<8x128xf32>
    %196 = arith.addf %195, %194 : vector<8x128xf32>
    %197 = arith.divf %195, %196 : vector<8x128xf32>
    %198 = vector.extract_strided_slice %185 {offsets = [0, 256], sizes = [8, 128], strides = [1, 1]} : vector<8x512xf32> to vector<8x128xf32>
    %199 = math.tanh %198 : vector<8x128xf32>
    %200 = vector.extract_strided_slice %185 {offsets = [0, 384], sizes = [8, 128], strides = [1, 1]} : vector<8x512xf32> to vector<8x128xf32>
    %201 = arith.negf %200 : vector<8x128xf32>
    %202 = math.exp %201 : vector<8x128xf32>
    %cst_43 = arith.constant 1.000000e+00 : f32
    %203 = vector.broadcast %cst_43 : f32 to vector<8x128xf32>
    %204 = arith.addf %203, %202 : vector<8x128xf32>
    %205 = arith.divf %203, %204 : vector<8x128xf32>
    %206 = arith.mulf %197, %179 : vector<8x128xf32>
    %207 = arith.mulf %191, %199 : vector<8x128xf32>
    %208 = arith.addf %206, %207 : vector<8x128xf32>
    %209 = math.tanh %208 : vector<8x128xf32>
    %210 = arith.mulf %205, %209 : vector<8x128xf32>
    %c48 = arith.constant 48 : index
    %c0_44 = arith.constant 0 : index
    %211 = vector.load %arg10[%c48, %c0_44] : memref<64x128xf32, #tpu.memory_space<vmem>>, vector<8x128xf32>
    tpu.vector_store %arg10[%c48, %c0_44], %210 {strides = array<i32>} : memref<64x128xf32, #tpu.memory_space<vmem>>, vector<8x128xf32>,
    %212 = vector.extract_strided_slice %5 {offsets = [56, 0], sizes = [8, 512], strides = [1, 1]} : vector<64x512xf32> to vector<8x512xf32>
    %cst_45 = arith.constant dense<0.000000e+00> : vector<8x512xf32>
    %213 = tpu.matmul %210, %6, %cst_45 {dimension_numbers = #tpu.dot_dimension_numbers<[1], [0], [0], [1], [0, 0, 1, 1], [], []>} : vector<8x128xf32>, vector<128x512xf32>, vector<8x512xf32> -> vector<8x512xf32>
    %214 = arith.addf %212, %213 : vector<8x512xf32>
    %215 = vector.extract_strided_slice %214 {offsets = [0, 0], sizes = [8, 128], strides = [1, 1]} : vector<8x512xf32> to vector<8x128xf32>
    %216 = arith.negf %215 : vector<8x128xf32>
    %217 = math.exp %216 : vector<8x128xf32>
    %cst_46 = arith.constant 1.000000e+00 : f32
    %218 = vector.broadcast %cst_46 : f32 to vector<8x128xf32>
    %219 = arith.addf %218, %217 : vector<8x128xf32>
    %220 = arith.divf %218, %219 : vector<8x128xf32>
    %221 = vector.extract_strided_slice %214 {offsets = [0, 128], sizes = [8, 128], strides = [1, 1]} : vector<8x512xf32> to vector<8x128xf32>
    %222 = arith.negf %221 : vector<8x128xf32>
    %223 = math.exp %222 : vector<8x128xf32>
    %cst_47 = arith.constant 1.000000e+00 : f32
    %224 = vector.broadcast %cst_47 : f32 to vector<8x128xf32>
    %225 = arith.addf %224, %223 : vector<8x128xf32>
    %226 = arith.divf %224, %225 : vector<8x128xf32>
    %227 = vector.extract_strided_slice %214 {offsets = [0, 256], sizes = [8, 128], strides = [1, 1]} : vector<8x512xf32> to vector<8x128xf32>
    %228 = math.tanh %227 : vector<8x128xf32>
    %229 = vector.extract_strided_slice %214 {offsets = [0, 384], sizes = [8, 128], strides = [1, 1]} : vector<8x512xf32> to vector<8x128xf32>
    %230 = arith.negf %229 : vector<8x128xf32>
    %231 = math.exp %230 : vector<8x128xf32>
    %cst_48 = arith.constant 1.000000e+00 : f32
    %232 = vector.broadcast %cst_48 : f32 to vector<8x128xf32>
    %233 = arith.addf %232, %231 : vector<8x128xf32>
    %234 = arith.divf %232, %233 : vector<8x128xf32>
    %235 = arith.mulf %226, %208 : vector<8x128xf32>
    %236 = arith.mulf %220, %228 : vector<8x128xf32>
    %237 = arith.addf %235, %236 : vector<8x128xf32>
    %238 = math.tanh %237 : vector<8x128xf32>
    %239 = arith.mulf %234, %238 : vector<8x128xf32>
    %c56 = arith.constant 56 : index
    %c0_49 = arith.constant 0 : index
    %240 = vector.load %arg10[%c56, %c0_49] : memref<64x128xf32, #tpu.memory_space<vmem>>, vector<8x128xf32>
    tpu.vector_store %arg10[%c56, %c0_49], %239 {strides = array<i32>} : memref<64x128xf32, #tpu.memory_space<vmem>>, vector<8x128xf32>,
    %c0_50 = arith.constant 0 : index
    %c0_51 = arith.constant 0 : index
    %241 = vector.load %arg10[%c0_50, %c0_51] : memref<64x128xf32, #tpu.memory_space<vmem>>, vector<64x128xf32>
    %c0_52 = arith.constant 0 : index
    %c0_53 = arith.constant 0 : index
    %242 = vector.load %arg4[%c0_52, %c0_53] : memref<128x512xf32, #tpu.memory_space<vmem>>, vector<128x512xf32>
    %cst_54 = arith.constant dense<0.000000e+00> : vector<64x512xf32>
    %243 = tpu.matmul %241, %242, %cst_54 {dimension_numbers = #tpu.dot_dimension_numbers<[1], [0], [0], [1], [0, 0, 1, 1], [], []>} : vector<64x128xf32>, vector<128x512xf32>, vector<64x512xf32> -> vector<64x512xf32>
    %c0_55 = arith.constant 0 : index
    %c0_56 = arith.constant 0 : index
    %244 = vector.load %arg6[%c0_55, %c0_56] : memref<1x512xf32, #tpu.memory_space<vmem>>, vector<1x512xf32>
    %245 = vector.broadcast %244 : vector<1x512xf32> to vector<64x512xf32>
    %246 = arith.addf %243, %245 : vector<64x512xf32>
    %c0_57 = arith.constant 0 : index
    %c0_58 = arith.constant 0 : index
    %247 = vector.load %arg5[%c0_57, %c0_58] : memref<128x512xf32, #tpu.memory_space<vmem>>, vector<128x512xf32>
    %cst_59 = arith.constant 0.000000e+00 : f32
    %248 = vector.broadcast %cst_59 : f32 to vector<8x128xf32>
    %cst_60 = arith.constant 0.000000e+00 : f32
    %249 = vector.broadcast %cst_60 : f32 to vector<8x128xf32>
    %250 = vector.extract_strided_slice %246 {offsets = [0, 0], sizes = [8, 512], strides = [1, 1]} : vector<64x512xf32> to vector<8x512xf32>
    %cst_61 = arith.constant dense<0.000000e+00> : vector<8x512xf32>
    %251 = tpu.matmul %248, %247, %cst_61 {dimension_numbers = #tpu.dot_dimension_numbers<[1], [0], [0], [1], [0, 0, 1, 1], [], []>} : vector<8x128xf32>, vector<128x512xf32>, vector<8x512xf32> -> vector<8x512xf32>
    %252 = arith.addf %250, %251 : vector<8x512xf32>
    %253 = vector.extract_strided_slice %252 {offsets = [0, 0], sizes = [8, 128], strides = [1, 1]} : vector<8x512xf32> to vector<8x128xf32>
    %254 = arith.negf %253 : vector<8x128xf32>
    %255 = math.exp %254 : vector<8x128xf32>
    %cst_62 = arith.constant 1.000000e+00 : f32
    %256 = vector.broadcast %cst_62 : f32 to vector<8x128xf32>
    %257 = arith.addf %256, %255 : vector<8x128xf32>
    %258 = arith.divf %256, %257 : vector<8x128xf32>
    %259 = vector.extract_strided_slice %252 {offsets = [0, 128], sizes = [8, 128], strides = [1, 1]} : vector<8x512xf32> to vector<8x128xf32>
    %260 = arith.negf %259 : vector<8x128xf32>
    %261 = math.exp %260 : vector<8x128xf32>
    %cst_63 = arith.constant 1.000000e+00 : f32
    %262 = vector.broadcast %cst_63 : f32 to vector<8x128xf32>
    %263 = arith.addf %262, %261 : vector<8x128xf32>
    %264 = arith.divf %262, %263 : vector<8x128xf32>
    %265 = vector.extract_strided_slice %252 {offsets = [0, 256], sizes = [8, 128], strides = [1, 1]} : vector<8x512xf32> to vector<8x128xf32>
    %266 = math.tanh %265 : vector<8x128xf32>
    %267 = vector.extract_strided_slice %252 {offsets = [0, 384], sizes = [8, 128], strides = [1, 1]} : vector<8x512xf32> to vector<8x128xf32>
    %268 = arith.negf %267 : vector<8x128xf32>
    %269 = math.exp %268 : vector<8x128xf32>
    %cst_64 = arith.constant 1.000000e+00 : f32
    %270 = vector.broadcast %cst_64 : f32 to vector<8x128xf32>
    %271 = arith.addf %270, %269 : vector<8x128xf32>
    %272 = arith.divf %270, %271 : vector<8x128xf32>
    %273 = arith.mulf %264, %249 : vector<8x128xf32>
    %274 = arith.mulf %258, %266 : vector<8x128xf32>
    %275 = arith.addf %273, %274 : vector<8x128xf32>
    %276 = math.tanh %275 : vector<8x128xf32>
    %277 = arith.mulf %272, %276 : vector<8x128xf32>
    %278 = vector.extract_strided_slice %246 {offsets = [8, 0], sizes = [8, 512], strides = [1, 1]} : vector<64x512xf32> to vector<8x512xf32>
    %cst_65 = arith.constant dense<0.000000e+00> : vector<8x512xf32>
    %279 = tpu.matmul %277, %247, %cst_65 {dimension_numbers = #tpu.dot_dimension_numbers<[1], [0], [0], [1], [0, 0, 1, 1], [], []>} : vector<8x128xf32>, vector<128x512xf32>, vector<8x512xf32> -> vector<8x512xf32>
    %280 = arith.addf %278, %279 : vector<8x512xf32>
    %281 = vector.extract_strided_slice %280 {offsets = [0, 0], sizes = [8, 128], strides = [1, 1]} : vector<8x512xf32> to vector<8x128xf32>
    %282 = arith.negf %281 : vector<8x128xf32>
    %283 = math.exp %282 : vector<8x128xf32>
    %cst_66 = arith.constant 1.000000e+00 : f32
    %284 = vector.broadcast %cst_66 : f32 to vector<8x128xf32>
    %285 = arith.addf %284, %283 : vector<8x128xf32>
    %286 = arith.divf %284, %285 : vector<8x128xf32>
    %287 = vector.extract_strided_slice %280 {offsets = [0, 128], sizes = [8, 128], strides = [1, 1]} : vector<8x512xf32> to vector<8x128xf32>
    %288 = arith.negf %287 : vector<8x128xf32>
    %289 = math.exp %288 : vector<8x128xf32>
    %cst_67 = arith.constant 1.000000e+00 : f32
    %290 = vector.broadcast %cst_67 : f32 to vector<8x128xf32>
    %291 = arith.addf %290, %289 : vector<8x128xf32>
    %292 = arith.divf %290, %291 : vector<8x128xf32>
    %293 = vector.extract_strided_slice %280 {offsets = [0, 256], sizes = [8, 128], strides = [1, 1]} : vector<8x512xf32> to vector<8x128xf32>
    %294 = math.tanh %293 : vector<8x128xf32>
    %295 = vector.extract_strided_slice %280 {offsets = [0, 384], sizes = [8, 128], strides = [1, 1]} : vector<8x512xf32> to vector<8x128xf32>
    %296 = arith.negf %295 : vector<8x128xf32>
    %297 = math.exp %296 : vector<8x128xf32>
    %cst_68 = arith.constant 1.000000e+00 : f32
    %298 = vector.broadcast %cst_68 : f32 to vector<8x128xf32>
    %299 = arith.addf %298, %297 : vector<8x128xf32>
    %300 = arith.divf %298, %299 : vector<8x128xf32>
    %301 = arith.mulf %292, %275 : vector<8x128xf32>
    %302 = arith.mulf %286, %294 : vector<8x128xf32>
    %303 = arith.addf %301, %302 : vector<8x128xf32>
    %304 = math.tanh %303 : vector<8x128xf32>
    %305 = arith.mulf %300, %304 : vector<8x128xf32>
    %306 = vector.extract_strided_slice %246 {offsets = [16, 0], sizes = [8, 512], strides = [1, 1]} : vector<64x512xf32> to vector<8x512xf32>
    %cst_69 = arith.constant dense<0.000000e+00> : vector<8x512xf32>
    %307 = tpu.matmul %305, %247, %cst_69 {dimension_numbers = #tpu.dot_dimension_numbers<[1], [0], [0], [1], [0, 0, 1, 1], [], []>} : vector<8x128xf32>, vector<128x512xf32>, vector<8x512xf32> -> vector<8x512xf32>
    %308 = arith.addf %306, %307 : vector<8x512xf32>
    %309 = vector.extract_strided_slice %308 {offsets = [0, 0], sizes = [8, 128], strides = [1, 1]} : vector<8x512xf32> to vector<8x128xf32>
    %310 = arith.negf %309 : vector<8x128xf32>
    %311 = math.exp %310 : vector<8x128xf32>
    %cst_70 = arith.constant 1.000000e+00 : f32
    %312 = vector.broadcast %cst_70 : f32 to vector<8x128xf32>
    %313 = arith.addf %312, %311 : vector<8x128xf32>
    %314 = arith.divf %312, %313 : vector<8x128xf32>
    %315 = vector.extract_strided_slice %308 {offsets = [0, 128], sizes = [8, 128], strides = [1, 1]} : vector<8x512xf32> to vector<8x128xf32>
    %316 = arith.negf %315 : vector<8x128xf32>
    %317 = math.exp %316 : vector<8x128xf32>
    %cst_71 = arith.constant 1.000000e+00 : f32
    %318 = vector.broadcast %cst_71 : f32 to vector<8x128xf32>
    %319 = arith.addf %318, %317 : vector<8x128xf32>
    %320 = arith.divf %318, %319 : vector<8x128xf32>
    %321 = vector.extract_strided_slice %308 {offsets = [0, 256], sizes = [8, 128], strides = [1, 1]} : vector<8x512xf32> to vector<8x128xf32>
    %322 = math.tanh %321 : vector<8x128xf32>
    %323 = vector.extract_strided_slice %308 {offsets = [0, 384], sizes = [8, 128], strides = [1, 1]} : vector<8x512xf32> to vector<8x128xf32>
    %324 = arith.negf %323 : vector<8x128xf32>
    %325 = math.exp %324 : vector<8x128xf32>
    %cst_72 = arith.constant 1.000000e+00 : f32
    %326 = vector.broadcast %cst_72 : f32 to vector<8x128xf32>
    %327 = arith.addf %326, %325 : vector<8x128xf32>
    %328 = arith.divf %326, %327 : vector<8x128xf32>
    %329 = arith.mulf %320, %303 : vector<8x128xf32>
    %330 = arith.mulf %314, %322 : vector<8x128xf32>
    %331 = arith.addf %329, %330 : vector<8x128xf32>
    %332 = math.tanh %331 : vector<8x128xf32>
    %333 = arith.mulf %328, %332 : vector<8x128xf32>
    %334 = vector.extract_strided_slice %246 {offsets = [24, 0], sizes = [8, 512], strides = [1, 1]} : vector<64x512xf32> to vector<8x512xf32>
    %cst_73 = arith.constant dense<0.000000e+00> : vector<8x512xf32>
    %335 = tpu.matmul %333, %247, %cst_73 {dimension_numbers = #tpu.dot_dimension_numbers<[1], [0], [0], [1], [0, 0, 1, 1], [], []>} : vector<8x128xf32>, vector<128x512xf32>, vector<8x512xf32> -> vector<8x512xf32>
    %336 = arith.addf %334, %335 : vector<8x512xf32>
    %337 = vector.extract_strided_slice %336 {offsets = [0, 0], sizes = [8, 128], strides = [1, 1]} : vector<8x512xf32> to vector<8x128xf32>
    %338 = arith.negf %337 : vector<8x128xf32>
    %339 = math.exp %338 : vector<8x128xf32>
    %cst_74 = arith.constant 1.000000e+00 : f32
    %340 = vector.broadcast %cst_74 : f32 to vector<8x128xf32>
    %341 = arith.addf %340, %339 : vector<8x128xf32>
    %342 = arith.divf %340, %341 : vector<8x128xf32>
    %343 = vector.extract_strided_slice %336 {offsets = [0, 128], sizes = [8, 128], strides = [1, 1]} : vector<8x512xf32> to vector<8x128xf32>
    %344 = arith.negf %343 : vector<8x128xf32>
    %345 = math.exp %344 : vector<8x128xf32>
    %cst_75 = arith.constant 1.000000e+00 : f32
    %346 = vector.broadcast %cst_75 : f32 to vector<8x128xf32>
    %347 = arith.addf %346, %345 : vector<8x128xf32>
    %348 = arith.divf %346, %347 : vector<8x128xf32>
    %349 = vector.extract_strided_slice %336 {offsets = [0, 256], sizes = [8, 128], strides = [1, 1]} : vector<8x512xf32> to vector<8x128xf32>
    %350 = math.tanh %349 : vector<8x128xf32>
    %351 = vector.extract_strided_slice %336 {offsets = [0, 384], sizes = [8, 128], strides = [1, 1]} : vector<8x512xf32> to vector<8x128xf32>
    %352 = arith.negf %351 : vector<8x128xf32>
    %353 = math.exp %352 : vector<8x128xf32>
    %cst_76 = arith.constant 1.000000e+00 : f32
    %354 = vector.broadcast %cst_76 : f32 to vector<8x128xf32>
    %355 = arith.addf %354, %353 : vector<8x128xf32>
    %356 = arith.divf %354, %355 : vector<8x128xf32>
    %357 = arith.mulf %348, %331 : vector<8x128xf32>
    %358 = arith.mulf %342, %350 : vector<8x128xf32>
    %359 = arith.addf %357, %358 : vector<8x128xf32>
    %360 = math.tanh %359 : vector<8x128xf32>
    %361 = arith.mulf %356, %360 : vector<8x128xf32>
    %362 = vector.extract_strided_slice %246 {offsets = [32, 0], sizes = [8, 512], strides = [1, 1]} : vector<64x512xf32> to vector<8x512xf32>
    %cst_77 = arith.constant dense<0.000000e+00> : vector<8x512xf32>
    %363 = tpu.matmul %361, %247, %cst_77 {dimension_numbers = #tpu.dot_dimension_numbers<[1], [0], [0], [1], [0, 0, 1, 1], [], []>} : vector<8x128xf32>, vector<128x512xf32>, vector<8x512xf32> -> vector<8x512xf32>
    %364 = arith.addf %362, %363 : vector<8x512xf32>
    %365 = vector.extract_strided_slice %364 {offsets = [0, 0], sizes = [8, 128], strides = [1, 1]} : vector<8x512xf32> to vector<8x128xf32>
    %366 = arith.negf %365 : vector<8x128xf32>
    %367 = math.exp %366 : vector<8x128xf32>
    %cst_78 = arith.constant 1.000000e+00 : f32
    %368 = vector.broadcast %cst_78 : f32 to vector<8x128xf32>
    %369 = arith.addf %368, %367 : vector<8x128xf32>
    %370 = arith.divf %368, %369 : vector<8x128xf32>
    %371 = vector.extract_strided_slice %364 {offsets = [0, 128], sizes = [8, 128], strides = [1, 1]} : vector<8x512xf32> to vector<8x128xf32>
    %372 = arith.negf %371 : vector<8x128xf32>
    %373 = math.exp %372 : vector<8x128xf32>
    %cst_79 = arith.constant 1.000000e+00 : f32
    %374 = vector.broadcast %cst_79 : f32 to vector<8x128xf32>
    %375 = arith.addf %374, %373 : vector<8x128xf32>
    %376 = arith.divf %374, %375 : vector<8x128xf32>
    %377 = vector.extract_strided_slice %364 {offsets = [0, 256], sizes = [8, 128], strides = [1, 1]} : vector<8x512xf32> to vector<8x128xf32>
    %378 = math.tanh %377 : vector<8x128xf32>
    %379 = vector.extract_strided_slice %364 {offsets = [0, 384], sizes = [8, 128], strides = [1, 1]} : vector<8x512xf32> to vector<8x128xf32>
    %380 = arith.negf %379 : vector<8x128xf32>
    %381 = math.exp %380 : vector<8x128xf32>
    %cst_80 = arith.constant 1.000000e+00 : f32
    %382 = vector.broadcast %cst_80 : f32 to vector<8x128xf32>
    %383 = arith.addf %382, %381 : vector<8x128xf32>
    %384 = arith.divf %382, %383 : vector<8x128xf32>
    %385 = arith.mulf %376, %359 : vector<8x128xf32>
    %386 = arith.mulf %370, %378 : vector<8x128xf32>
    %387 = arith.addf %385, %386 : vector<8x128xf32>
    %388 = math.tanh %387 : vector<8x128xf32>
    %389 = arith.mulf %384, %388 : vector<8x128xf32>
    %390 = vector.extract_strided_slice %246 {offsets = [40, 0], sizes = [8, 512], strides = [1, 1]} : vector<64x512xf32> to vector<8x512xf32>
    %cst_81 = arith.constant dense<0.000000e+00> : vector<8x512xf32>
    %391 = tpu.matmul %389, %247, %cst_81 {dimension_numbers = #tpu.dot_dimension_numbers<[1], [0], [0], [1], [0, 0, 1, 1], [], []>} : vector<8x128xf32>, vector<128x512xf32>, vector<8x512xf32> -> vector<8x512xf32>
    %392 = arith.addf %390, %391 : vector<8x512xf32>
    %393 = vector.extract_strided_slice %392 {offsets = [0, 0], sizes = [8, 128], strides = [1, 1]} : vector<8x512xf32> to vector<8x128xf32>
    %394 = arith.negf %393 : vector<8x128xf32>
    %395 = math.exp %394 : vector<8x128xf32>
    %cst_82 = arith.constant 1.000000e+00 : f32
    %396 = vector.broadcast %cst_82 : f32 to vector<8x128xf32>
    %397 = arith.addf %396, %395 : vector<8x128xf32>
    %398 = arith.divf %396, %397 : vector<8x128xf32>
    %399 = vector.extract_strided_slice %392 {offsets = [0, 128], sizes = [8, 128], strides = [1, 1]} : vector<8x512xf32> to vector<8x128xf32>
    %400 = arith.negf %399 : vector<8x128xf32>
    %401 = math.exp %400 : vector<8x128xf32>
    %cst_83 = arith.constant 1.000000e+00 : f32
    %402 = vector.broadcast %cst_83 : f32 to vector<8x128xf32>
    %403 = arith.addf %402, %401 : vector<8x128xf32>
    %404 = arith.divf %402, %403 : vector<8x128xf32>
    %405 = vector.extract_strided_slice %392 {offsets = [0, 256], sizes = [8, 128], strides = [1, 1]} : vector<8x512xf32> to vector<8x128xf32>
    %406 = math.tanh %405 : vector<8x128xf32>
    %407 = vector.extract_strided_slice %392 {offsets = [0, 384], sizes = [8, 128], strides = [1, 1]} : vector<8x512xf32> to vector<8x128xf32>
    %408 = arith.negf %407 : vector<8x128xf32>
    %409 = math.exp %408 : vector<8x128xf32>
    %cst_84 = arith.constant 1.000000e+00 : f32
    %410 = vector.broadcast %cst_84 : f32 to vector<8x128xf32>
    %411 = arith.addf %410, %409 : vector<8x128xf32>
    %412 = arith.divf %410, %411 : vector<8x128xf32>
    %413 = arith.mulf %404, %387 : vector<8x128xf32>
    %414 = arith.mulf %398, %406 : vector<8x128xf32>
    %415 = arith.addf %413, %414 : vector<8x128xf32>
    %416 = math.tanh %415 : vector<8x128xf32>
    %417 = arith.mulf %412, %416 : vector<8x128xf32>
    %418 = vector.extract_strided_slice %246 {offsets = [48, 0], sizes = [8, 512], strides = [1, 1]} : vector<64x512xf32> to vector<8x512xf32>
    %cst_85 = arith.constant dense<0.000000e+00> : vector<8x512xf32>
    %419 = tpu.matmul %417, %247, %cst_85 {dimension_numbers = #tpu.dot_dimension_numbers<[1], [0], [0], [1], [0, 0, 1, 1], [], []>} : vector<8x128xf32>, vector<128x512xf32>, vector<8x512xf32> -> vector<8x512xf32>
    %420 = arith.addf %418, %419 : vector<8x512xf32>
    %421 = vector.extract_strided_slice %420 {offsets = [0, 0], sizes = [8, 128], strides = [1, 1]} : vector<8x512xf32> to vector<8x128xf32>
    %422 = arith.negf %421 : vector<8x128xf32>
    %423 = math.exp %422 : vector<8x128xf32>
    %cst_86 = arith.constant 1.000000e+00 : f32
    %424 = vector.broadcast %cst_86 : f32 to vector<8x128xf32>
    %425 = arith.addf %424, %423 : vector<8x128xf32>
    %426 = arith.divf %424, %425 : vector<8x128xf32>
    %427 = vector.extract_strided_slice %420 {offsets = [0, 128], sizes = [8, 128], strides = [1, 1]} : vector<8x512xf32> to vector<8x128xf32>
    %428 = arith.negf %427 : vector<8x128xf32>
    %429 = math.exp %428 : vector<8x128xf32>
    %cst_87 = arith.constant 1.000000e+00 : f32
    %430 = vector.broadcast %cst_87 : f32 to vector<8x128xf32>
    %431 = arith.addf %430, %429 : vector<8x128xf32>
    %432 = arith.divf %430, %431 : vector<8x128xf32>
    %433 = vector.extract_strided_slice %420 {offsets = [0, 256], sizes = [8, 128], strides = [1, 1]} : vector<8x512xf32> to vector<8x128xf32>
    %434 = math.tanh %433 : vector<8x128xf32>
    %435 = vector.extract_strided_slice %420 {offsets = [0, 384], sizes = [8, 128], strides = [1, 1]} : vector<8x512xf32> to vector<8x128xf32>
    %436 = arith.negf %435 : vector<8x128xf32>
    %437 = math.exp %436 : vector<8x128xf32>
    %cst_88 = arith.constant 1.000000e+00 : f32
    %438 = vector.broadcast %cst_88 : f32 to vector<8x128xf32>
    %439 = arith.addf %438, %437 : vector<8x128xf32>
    %440 = arith.divf %438, %439 : vector<8x128xf32>
    %441 = arith.mulf %432, %415 : vector<8x128xf32>
    %442 = arith.mulf %426, %434 : vector<8x128xf32>
    %443 = arith.addf %441, %442 : vector<8x128xf32>
    %444 = math.tanh %443 : vector<8x128xf32>
    %445 = arith.mulf %440, %444 : vector<8x128xf32>
    %446 = vector.extract_strided_slice %246 {offsets = [56, 0], sizes = [8, 512], strides = [1, 1]} : vector<64x512xf32> to vector<8x512xf32>
    %cst_89 = arith.constant dense<0.000000e+00> : vector<8x512xf32>
    %447 = tpu.matmul %445, %247, %cst_89 {dimension_numbers = #tpu.dot_dimension_numbers<[1], [0], [0], [1], [0, 0, 1, 1], [], []>} : vector<8x128xf32>, vector<128x512xf32>, vector<8x512xf32> -> vector<8x512xf32>
    %448 = arith.addf %446, %447 : vector<8x512xf32>
    %449 = vector.extract_strided_slice %448 {offsets = [0, 0], sizes = [8, 128], strides = [1, 1]} : vector<8x512xf32> to vector<8x128xf32>
    %450 = arith.negf %449 : vector<8x128xf32>
    %451 = math.exp %450 : vector<8x128xf32>
    %cst_90 = arith.constant 1.000000e+00 : f32
    %452 = vector.broadcast %cst_90 : f32 to vector<8x128xf32>
    %453 = arith.addf %452, %451 : vector<8x128xf32>
    %454 = arith.divf %452, %453 : vector<8x128xf32>
    %455 = vector.extract_strided_slice %448 {offsets = [0, 128], sizes = [8, 128], strides = [1, 1]} : vector<8x512xf32> to vector<8x128xf32>
    %456 = arith.negf %455 : vector<8x128xf32>
    %457 = math.exp %456 : vector<8x128xf32>
    %cst_91 = arith.constant 1.000000e+00 : f32
    %458 = vector.broadcast %cst_91 : f32 to vector<8x128xf32>
    %459 = arith.addf %458, %457 : vector<8x128xf32>
    %460 = arith.divf %458, %459 : vector<8x128xf32>
    %461 = vector.extract_strided_slice %448 {offsets = [0, 256], sizes = [8, 128], strides = [1, 1]} : vector<8x512xf32> to vector<8x128xf32>
    %462 = math.tanh %461 : vector<8x128xf32>
    %463 = vector.extract_strided_slice %448 {offsets = [0, 384], sizes = [8, 128], strides = [1, 1]} : vector<8x512xf32> to vector<8x128xf32>
    %464 = arith.negf %463 : vector<8x128xf32>
    %465 = math.exp %464 : vector<8x128xf32>
    %cst_92 = arith.constant 1.000000e+00 : f32
    %466 = vector.broadcast %cst_92 : f32 to vector<8x128xf32>
    %467 = arith.addf %466, %465 : vector<8x128xf32>
    %468 = arith.divf %466, %467 : vector<8x128xf32>
    %469 = arith.mulf %460, %443 : vector<8x128xf32>
    %470 = arith.mulf %454, %462 : vector<8x128xf32>
    %471 = arith.addf %469, %470 : vector<8x128xf32>
    %472 = math.tanh %471 : vector<8x128xf32>
    %473 = arith.mulf %468, %472 : vector<8x128xf32>
    %c0_93 = arith.constant 0 : index
    %c0_94 = arith.constant 0 : index
    %474 = vector.load %arg7[%c0_93, %c0_94] : memref<128x5xf32, #tpu.memory_space<vmem>>, vector<128x5xf32>
    %cst_95 = arith.constant dense<0.000000e+00> : vector<8x5xf32>
    %475 = tpu.matmul %473, %474, %cst_95 {dimension_numbers = #tpu.dot_dimension_numbers<[1], [0], [0], [1], [0, 0, 1, 1], [], []>} : vector<8x128xf32>, vector<128x5xf32>, vector<8x5xf32> -> vector<8x5xf32>
    %c0_96 = arith.constant 0 : index
    %c0_97 = arith.constant 0 : index
    %476 = vector.load %arg8[%c0_96, %c0_97] : memref<1x5xf32, #tpu.memory_space<vmem>>, vector<1x5xf32>
    %477 = vector.broadcast %476 : vector<1x5xf32> to vector<8x5xf32>
    %478 = arith.addf %475, %477 : vector<8x5xf32>
    %cst_98 = arith.constant dense<0xFF800000> : vector<8xf32>
    %479 = vector.multi_reduction <maximumf>, %478, %cst_98 [1] : vector<8x5xf32> to vector<8xf32>
    %480 = vector.shape_cast %479 : vector<8xf32> to vector<8x1xf32>
    %481 = vector.broadcast %480 : vector<8x1xf32> to vector<8x5xf32>
    %482 = arith.subf %478, %481 : vector<8x5xf32>
    %483 = math.exp %482 : vector<8x5xf32>
    %cst_99 = arith.constant dense<0.000000e+00> : vector<8xf32>
    %484 = vector.multi_reduction <add>, %483, %cst_99 [1] : vector<8x5xf32> to vector<8xf32>
    %485 = vector.shape_cast %484 : vector<8xf32> to vector<8x1xf32>
    %486 = tpu.reciprocal %485 {approx = true} : vector<8x1xf32> -> vector<8x1xf32>
    %487 = vector.broadcast %486 : vector<8x1xf32> to vector<8x5xf32>
    %488 = arith.mulf %483, %487 : vector<8x5xf32>
    %c0_100 = arith.constant 0 : index
    %c0_101 = arith.constant 0 : index
    %489 = vector.load %arg9[%c0_100, %c0_101] : memref<8x5xf32, #tpu.memory_space<vmem>>, vector<8x5xf32>
    tpu.vector_store %arg9[%c0_100, %c0_101], %488 {strides = array<i32>} : memref<8x5xf32, #tpu.memory_space<vmem>>, vector<8x5xf32>,
    return
  }
}

</mosaic_0001>

<bundles_post_ra>
// kernel: lstm_model_forward.1
= control target key start
LH: loop header
LB: loop body
LE: loop exit
PB: predicated region body
PF: predicated region fallthrough
CT: control target
= control target key end

     0   :  { %14 = vsyncpa [#allocation4], 0  ;;  %s6400_s0 = inlined_call_operand.vmem [shape: f32[64,16], index: 0, kind: input, shape index: {}]   ;;  %s6401_s1 = inlined_call_operand.vmem [shape: f32[16,512], index: 1, kind: input, shape index: {}]   ;;  %s6402_s2 = inlined_call_operand.hbm [shape: f32[128,512], index: 2, kind: input, shape index: {}]   ;;  %s6403_s3 = inlined_call_operand.vmem [shape: f32[1,512], index: 3, kind: input, shape index: {}]   ;;  %s6404_s4 = inlined_call_operand.hbm [shape: f32[128,512], index: 4, kind: input, shape index: {}]   ;;  %s6405_s5 = inlined_call_operand.hbm [shape: f32[128,512], index: 5, kind: input, shape index: {}]   ;;  %s6406_s6 = inlined_call_operand.vmem [shape: f32[1,512], index: 6, kind: input, shape index: {}]   ;;  %s6407_s7 = inlined_call_operand.vmem [shape: f32[128,5], index: 7, kind: input, shape index: {}]   ;;  %s6408_s8 = inlined_call_operand.vmem [shape: f32[1,5], index: 8, kind: input, shape index: {}]   ;;  %s6409_s9 = inlined_call_operand.vmem [shape: f32[8,5], index: 9, kind: output, shape index: {}]  }
   0x1   :  { %15 = vsyncpa [#allocation6], 0  ;;  %s4226_s30 = smov [#allocation5]   ;;  %s4227_s11 = smov [#allocation3]  }
   0x2   :  { %s39_s10 = sshll.u32 %s4226_s30, 4  ;;  %s25_s12 = sshll.u32 %s4227_s11, 4  ;;  %s40_s10 = int_to_ptr.vmem [resolvable:$true] %s39_s10  ;;  %s26_s12 = int_to_ptr.vmem [resolvable:$true] %s25_s12 }
   0x3   :  { %s4170_s13 = scalar_lea.vmem %s40_s10, 8192  ;;  %p4175_p1 = scmp.lt.s32.totalorder %s40_s10, %s40_s10 }
   0x4   :  { %p4171_p0 = scmp.ne.s32.totalorder %s40_s10, %s4170_s13  ;;  %p4176_p2 = scmp.lt.s32.totalorder %s4170_s13, %s4170_s13 }
   0x6   :  { %p4177_p3 = por %p4176_p2, %p4175_p1 }
   0x8   :  { %p4178_p4 = pnand %p4177_p3, %p4171_p0 }
   0xa   :  { %4181 = shalt.err (!%p4178_p4)
}
   0xb   :  { %s4228_s14 = smov 512   ;;  %s4229_s15 = smov 32  }
   0xc   :  { %45 = dma.hbm_to_vmem [thread:$0]  %s6404_s4, 8192, %s40_s10, [#allocation6], %s4228_s14, %s4228_s14, %s4229_s15  }
   0xd   :  { %s4190_s18 = scalar_lea.vmem %s26_s12, 8192  ;;  %p4195_p6 = scmp.lt.s32.totalorder %s26_s12, %s26_s12 }
   0xe   :  { %p4191_p5 = scmp.ne.s32.totalorder %s26_s12, %s4190_s18  ;;  %p4196_p7 = scmp.lt.s32.totalorder %s4190_s18, %s4190_s18 }
  0x10   :  { %p4197_p8 = por %p4196_p7, %p4195_p6 }
  0x12   :  { %p4198_p9 = pnand %p4197_p8, %p4191_p5 }
  0x14   :  { %4201 = shalt.err (!%p4198_p9)
}
  0x15   :  { %31 = dma.hbm_to_vmem [thread:$0]  %s6402_s2, 8192, %s26_s12, [#allocation4], %s4228_s14, %s4228_s14, %s4229_s15  }
  0x16   :  { %s4230_s21 = smov [#allocation7]  }
  0x17   :  { %s51_s22 = sshll.u32 %s4230_s21, 4  ;;  %s52_s22 = int_to_ptr.vmem [resolvable:$true] %s51_s22 }
  0x18   :  { %s4210_s23 = scalar_lea.vmem %s52_s22, 8192  ;;  %p4215_p11 = scmp.lt.s32.totalorder %s52_s22, %s52_s22 }
  0x19   :  { %p4211_p10 = scmp.ne.s32.totalorder %s52_s22, %s4210_s23  ;;  %p4216_p12 = scmp.lt.s32.totalorder %s4210_s23, %s4210_s23 }
  0x1b   :  { %p4217_p13 = por %p4216_p12, %p4215_p11 }
  0x1d   :  { %p4218_p0 = pnand %p4217_p13, %p4211_p10 }
  0x1f   :  { %4221 = shalt.err (!%p4218_p0)
}
  0x20   :  { %57 = dma.hbm_to_vmem [thread:$0]  %s6405_s5, 8192, %s52_s22, [#allocation6], %s4228_s14, %s4228_s14, %s4229_s15  }
  0x21   :  { %4222 = dma.done.wait [#allocation4], 8192  }
  0x22   :  { %4223 = vsyncadd [#allocation4], 4294959104 }
  0x23   :  { %4224 = dma.done.wait [#allocation6], 16384  }
  0x24   :  { %4225 = vsyncadd [#allocation6], 4294950912  ;;  %v6410_v0 = vmov 0.0   ;;  %v86_v1 = vld [vmem:[%s6401_s1 + $0x28] sm:$0xff]  ;;  %v88_v2 = vld [vmem:[%s6401_s1 + $0x38] sm:$0xff]  ;;  %vm111_vm0 = vcmask 130048  }
  0x25   :  { %200 = vmatprep.mubr.f32.mxu0 %v6410_v0  ;;  %313 = vmatprep.mubr.f32.mxu1 %v6410_v0  ;;  %v85_v3 = vld [vmem:[%s6401_s1 + $0x20] sm:$0xff]  ;;  %v87_v4 = vld [vmem:[%s6401_s1 + $0x30] sm:$0xff]  ;;  %v82_v5 = vld [vmem:[%s6401_s1 + $0x8] sm:$0xff]  ;;  %vm4232_vm1 = vmmov 0   ;;  %vm3631_vm2 = vcmask 39936  }
  0x26   :  { %164 = vmatprep.subr.mxu0 %v86_v1  ;;  %277 = vmatprep.subr.mxu1 %v88_v2  ;;  %v84_v6 = vld [vmem:[%s6401_s1 + $0x18] sm:$0xff]  ;;  %v81_v7 = vld [vmem:[%s6401_s1] sm:$0xff]  ;;  %v83_v8 = vld [vmem:[%s6401_s1 + $0x10] sm:$0xff] }
  0x27   :  { %165 = vmatpush1.msra.mxu0 %v85_v3  ;;  %278 = vmatpush1.msra.mxu1 %v87_v4  ;;  %v73_v9 = vld [vmem:[%s6400_s0] sm:$0xff]  ;;  %v4321_v10 = vld [vmem:[#allocation3 + $0x1e8] sm:$0xff]  ;;  %v4323_v11 = vld [vmem:[#allocation3 + $0x1f8] sm:$0xff] }
  0x28   :  { %166 = vmatprep.subr.mxu0 %v82_v5  ;;  %279 = vmatprep.subr.mxu1 %v84_v6  ;;  %6616 = vst [vmem:[#allocation10_spill] sm:$0xff] %v4321_v10  ;;  %6617 = vst [vmem:[#allocation11_spill] sm:$0xff] %v4323_v11  ;;  %v4325_v12 = vld [vmem:[#allocation3 + $0x1e0] sm:$0xff]  ;;  %v4327_v13 = vld [vmem:[#allocation3 + $0x1f0] sm:$0xff] }
  0x29   :  { %167 = vmatpush1.msra.mxu0 %v81_v7  ;;  %280 = vmatpush1.msra.mxu1 %v83_v8  ;;  %v4331_v14 = vld [vmem:[#allocation3 + $0x1c8] sm:$0xff]  ;;  %v4333_v15 = vld [vmem:[#allocation3 + $0x1d8] sm:$0xff]  ;;  %v4339_v16 = vld [vmem:[#allocation3 + $0x1c0] sm:$0xff] }
  0x2a   :  { %3650 = vmatmul.mubr.msk.f32.vlgmr.msra.gmra.mxu0 %vm111_vm0, %v73_v9  ;;  %3658 = vmatmul.mubr.msk.f32.vlgmr.msra.gmra.mxu1 %vm111_vm0, %v73_v9  ;;  %v4341_v17 = vld [vmem:[#allocation3 + $0x1d0] sm:$0xff]  ;;  %v74_v18 = vld [vmem:[%s6400_s0 + $0x8] sm:$0xff]  ;;  %v4352_v20 = vld [vmem:[#allocation3 + $0x1b8] sm:$0xff] }
  0x2b   :  { %426 = vmatprep.subr.mxu0 %v4321_v10  ;;  %497 = vmatprep.subr.mxu1 %v4323_v11  ;;  %v4350_v19 = vld [vmem:[#allocation3 + $0x1a8] sm:$0xff]  ;;  %v4356_v21 = vld [vmem:[#allocation3 + $0x1a0] sm:$0xff]  ;;  %v4358_v22 = vld [vmem:[#allocation3 + $0x1b0] sm:$0xff] }
  0x2c   :  { %427 = vmatpush1.msra.mxu0 %v4325_v12  ;;  %498 = vmatpush1.msra.mxu1 %v4327_v13  ;;  %v4362_v23 = vld [vmem:[#allocation3 + $0x188] sm:$0xff]  ;;  %v4364_v24 = vld [vmem:[#allocation3 + $0x198] sm:$0xff]  ;;  %v4370_v25 = vld [vmem:[#allocation3 + $0x180] sm:$0xff] }
  0x2d   :  { %428 = vmatprep.subr.mxu0 %v4331_v14  ;;  %499 = vmatprep.subr.mxu1 %v4333_v15  ;;  %v4372_v26 = vld [vmem:[#allocation3 + $0x190] sm:$0xff]  ;;  %v4381_v28 = vld [vmem:[#allocation3 + $0x168] sm:$0xff]  ;;  %v4383_v29 = vld [vmem:[#allocation3 + $0x178] sm:$0xff] }
  0x2e   :  { %206 = vmatprep.mubr.f32.mxu0 %v6410_v0  ;;  %319 = vmatprep.mubr.f32.mxu1 %v6410_v0  ;;  %v75_v27 = vld [vmem:[%s6400_s0 + $0x10] sm:$0xff]  ;;  %v4387_v30 = vld [vmem:[#allocation3 + $0x160] sm:$0xff]  ;;  %v4393_v32 = vld [vmem:[#allocation3 + $0x148] sm:$0xff] }
  0x2f   :  { %429 = vmatpush1.msra.mxu0 %v4339_v16  ;;  %500 = vmatpush1.msra.mxu1 %v4341_v17  ;;  %v4389_v31 = vld [vmem:[#allocation3 + $0x170] sm:$0xff]  ;;  %v4395_v33 = vld [vmem:[#allocation3 + $0x158] sm:$0xff]  ;;  %v4401_v34 = vld [vmem:[#allocation3 + $0x140] sm:$0xff] }
  0x30   :  { %3651 = vmatmul.mubr.msk.f32.gmra.mxu0 %vm111_vm0, %v74_v18  ;;  %3659 = vmatmul.mubr.msk.f32.gmra.mxu1 %vm111_vm0, %v74_v18  ;;  %v4403_v35 = vld [vmem:[#allocation3 + $0x150] sm:$0xff]  ;;  %v76_v36 = vld [vmem:[%s6400_s0 + $0x18] sm:$0xff]  ;;  %v4412_v37 = vld [vmem:[#allocation3 + $0x128] sm:$0xff] }
  0x31   :  { %430 = vmatprep.subr.mxu0 %v4350_v19  ;;  %501 = vmatprep.subr.mxu1 %v4352_v20  ;;  %v4414_v38 = vld [vmem:[#allocation3 + $0x138] sm:$0xff]  ;;  %v4418_v39 = vld [vmem:[#allocation3 + $0x120] sm:$0xff]  ;;  %v4420_v40 = vld [vmem:[#allocation3 + $0x130] sm:$0xff] }
  0x32   :  { %431 = vmatpush1.msra.mxu0 %v4356_v21  ;;  %502 = vmatpush1.msra.mxu1 %v4358_v22  ;;  %v4424_v41 = vld [vmem:[#allocation3 + $0x108] sm:$0xff]  ;;  %v4426_v42 = vld [vmem:[#allocation3 + $0x118] sm:$0xff]  ;;  %v4432_v43 = vld [vmem:[#allocation3 + $0x100] sm:$0xff] }
  0x33   :  { %432 = vmatprep.subr.mxu0 %v4362_v23  ;;  %503 = vmatprep.subr.mxu1 %v4364_v24  ;;  %v4434_v44 = vld [vmem:[#allocation3 + $0x110] sm:$0xff]  ;;  %v77_v45 = vld [vmem:[%s6400_s0 + $0x20] sm:$0xff]  ;;  %v4443_v46 = vld [vmem:[#allocation3 + $0xe8] sm:$0xff] }
  0x34   :  { %212 = vmatprep.mubr.f32.mxu0 %v6410_v0  ;;  %325 = vmatprep.mubr.f32.mxu1 %v6410_v0  ;;  %v4445_v47 = vld [vmem:[#allocation3 + $0xf8] sm:$0xff]  ;;  %v4449_v48 = vld [vmem:[#allocation3 + $0xe0] sm:$0xff]  ;;  %v4451_v49 = vld [vmem:[#allocation3 + $0xf0] sm:$0xff] }
  0x35   :  { %433 = vmatpush1.msra.mxu0 %v4370_v25  ;;  %504 = vmatpush1.msra.mxu1 %v4372_v26  ;;  %v4455_v50 = vld [vmem:[#allocation3 + $0xc8] sm:$0xff]  ;;  %v4457_v51 = vld [vmem:[#allocation3 + $0xd8] sm:$0xff]  ;;  %v4463_v52 = vld [vmem:[#allocation3 + $0xc0] sm:$0xff] }
  0x36   :  { %3652 = vmatmul.mubr.msk.f32.gmra.mxu0 %vm111_vm0, %v75_v27  ;;  %3660 = vmatmul.mubr.msk.f32.gmra.mxu1 %vm111_vm0, %v75_v27  ;;  %v4465_v53 = vld [vmem:[#allocation3 + $0xd0] sm:$0xff]  ;;  %v78_v54 = vld [vmem:[%s6400_s0 + $0x28] sm:$0xff]  ;;  %v4476_v56 = vld [vmem:[#allocation3 + $0xb8] sm:$0xff] }
  0x37   :  { %434 = vmatprep.subr.mxu0 %v4381_v28  ;;  %505 = vmatprep.subr.mxu1 %v4383_v29  ;;  %v4474_v55 = vld [vmem:[#allocation3 + $0xa8] sm:$0xff]  ;;  %v4480_v57 = vld [vmem:[#allocation3 + $0xa0] sm:$0xff]  ;;  %v4482_v58 = vld [vmem:[#allocation3 + $0xb0] sm:$0xff] }
  0x38   :  { %435 = vmatpush1.msra.mxu0 %v4387_v30  ;;  %506 = vmatpush1.msra.mxu1 %v4389_v31  ;;  %6618 = vst [vmem:[#allocation12_spill] sm:$0xff] %v4482_v58  ;;  %v4486_v59 = vld [vmem:[#allocation3 + $0x88] sm:$0xff]  ;;  %v4488_v60 = vld [vmem:[#allocation3 + $0x98] sm:$0xff]  ;;  %v4494_v61 = vld [vmem:[#allocation3 + $0x80] sm:$0xff] }
  0x39   :  { %436 = vmatprep.subr.mxu0 %v4393_v32  ;;  %507 = vmatprep.subr.mxu1 %v4395_v33  ;;  %6619 = vst [vmem:[#allocation13_spill] sm:$0xff] %v4486_v59  ;;  %6620 = vst [vmem:[#allocation14_spill] sm:$0xff] %v4488_v60  ;;  %v4496_v62 = vld [vmem:[#allocation3 + $0x90] sm:$0xff]  ;;  %v4505_v1 = vld [vmem:[#allocation3 + $0x68] sm:$0xff] }
  0x3a   :  { %218 = vmatprep.mubr.f32.mxu0 %v6410_v0  ;;  %331 = vmatprep.mubr.f32.mxu1 %v6410_v0  ;;  %6621 = vst [vmem:[#allocation15_spill] sm:$0xff] %v4494_v61  ;;  %6622 = vst [vmem:[#allocation16_spill] sm:$0xff] %v4496_v62  ;;  %v79_v63 = vld [vmem:[%s6400_s0 + $0x30] sm:$0xff]  ;;  %v4507_v2 = vld [vmem:[#allocation3 + $0x78] sm:$0xff] }
  0x3b   :  { %437 = vmatpush1.msra.mxu0 %v4401_v34  ;;  %508 = vmatpush1.msra.mxu1 %v4403_v35  ;;  %6623 = vst [vmem:[#allocation17_spill] sm:$0xff] %v4505_v1  ;;  %6624 = vst [vmem:[#allocation18_spill] sm:$0xff] %v4507_v2  ;;  %v4511_v3 = vld [vmem:[#allocation3 + $0x60] sm:$0xff]  ;;  %v4513_v4 = vld [vmem:[#allocation3 + $0x70] sm:$0xff] }
  0x3c   :  { %3653 = vmatmul.mubr.msk.f32.gmra.mxu0 %vm111_vm0, %v76_v36  ;;  %3661 = vmatmul.mubr.msk.f32.gmra.mxu1 %vm111_vm0, %v76_v36  ;;  %6625 = vst [vmem:[#allocation19_spill] sm:$0xff] %v4511_v3  ;;  %6626 = vst [vmem:[#allocation20_spill] sm:$0xff] %v4513_v4  ;;  %v4517_v5 = vld [vmem:[#allocation3 + $0x48] sm:$0xff]  ;;  %v4519_v6 = vld [vmem:[#allocation3 + $0x58] sm:$0xff] }
  0x3d   :  { %438 = vmatprep.subr.mxu0 %v4412_v37  ;;  %509 = vmatprep.subr.mxu1 %v4414_v38  ;;  %6627 = vst [vmem:[#allocation21_spill] sm:$0xff] %v4517_v5  ;;  %6628 = vst [vmem:[#allocation22_spill] sm:$0xff] %v4519_v6  ;;  %v4525_v7 = vld [vmem:[#allocation3 + $0x40] sm:$0xff]  ;;  %v4527_v8 = vld [vmem:[#allocation3 + $0x50] sm:$0xff] }
  0x3e   :  { %439 = vmatpush1.msra.mxu0 %v4418_v39  ;;  %510 = vmatpush1.msra.mxu1 %v4420_v40  ;;  %6629 = vst [vmem:[#allocation23_spill] sm:$0xff] %v4525_v7  ;;  %6630 = vst [vmem:[#allocation24_spill] sm:$0xff] %v4527_v8  ;;  %v80_v9 = vld [vmem:[%s6400_s0 + $0x38] sm:$0xff]  ;;  %v4536_v18 = vld [vmem:[#allocation3 + $0x28] sm:$0xff] }
  0x3f   :  { %440 = vmatprep.subr.mxu0 %v4424_v41  ;;  %511 = vmatprep.subr.mxu1 %v4426_v42  ;;  %6631 = vst [vmem:[#allocation25_spill] sm:$0xff] %v4536_v18  ;;  %v4538_v27 = vld [vmem:[#allocation3 + $0x38] sm:$0xff]  ;;  %v4542_v36 = vld [vmem:[#allocation3 + $0x20] sm:$0xff] }
  0x40   :  { %224 = vmatprep.mubr.f32.mxu0 %v6410_v0  ;;  %337 = vmatprep.mubr.f32.mxu1 %v6410_v0  ;;  %6632 = vst [vmem:[#allocation26_spill] sm:$0xff] %v4538_v27  ;;  %6633 = vst [vmem:[#allocation27_spill] sm:$0xff] %v4542_v36 }
  0x41   :  { %441 = vmatpush1.msra.mxu0 %v4432_v43  ;;  %512 = vmatpush1.msra.mxu1 %v4434_v44 }
  0x42   :  { %3654 = vmatmul.mubr.msk.f32.gmra.mxu0 %vm111_vm0, %v77_v45  ;;  %3662 = vmatmul.mubr.msk.f32.gmra.mxu1 %vm111_vm0, %v77_v45  ;;  %v4544_v45 = vld [vmem:[#allocation3 + $0x30] sm:$0xff] }
  0x43   :  { %442 = vmatprep.subr.mxu0 %v4443_v46  ;;  %513 = vmatprep.subr.mxu1 %v4445_v47  ;;  %6634 = vst [vmem:[#allocation28_spill] sm:$0xff] %v4544_v45 }
  0x44   :  { %443 = vmatpush1.msra.mxu0 %v4449_v48  ;;  %514 = vmatpush1.msra.mxu1 %v4451_v49 }
  0x45   :  { %444 = vmatprep.subr.mxu0 %v4455_v50  ;;  %515 = vmatprep.subr.mxu1 %v4457_v51 }
  0x46   :  { %230 = vmatprep.mubr.f32.mxu0 %v6410_v0  ;;  %343 = vmatprep.mubr.f32.mxu1 %v6410_v0 }
  0x47   :  { %445 = vmatpush1.msra.mxu0 %v4463_v52  ;;  %516 = vmatpush1.msra.mxu1 %v4465_v53 }
  0x48   :  { %3655 = vmatmul.mubr.msk.f32.gmra.mxu0 %vm111_vm0, %v78_v54  ;;  %3663 = vmatmul.mubr.msk.f32.gmra.mxu1 %vm111_vm0, %v78_v54  ;;  %v4548_v54 = vld [vmem:[#allocation3 + $0x8] sm:$0xff] }
  0x49   :  { %446 = vmatprep.subr.mxu0 %v4474_v55  ;;  %517 = vmatprep.subr.mxu1 %v4476_v56  ;;  %6635 = vst [vmem:[#allocation29_spill] sm:$0xff] %v4548_v54 }
  0x4a   :  { %447 = vmatpush1.msra.mxu0 %v4480_v57  ;;  %518 = vmatpush1.msra.mxu1 %v4482_v58 }
  0x4b   :  { %448 = vmatprep.subr.mxu0 %v4486_v59  ;;  %519 = vmatprep.subr.mxu1 %v4488_v60 }
  0x4c   :  { %236 = vmatprep.mubr.f32.mxu0 %v6410_v0  ;;  %349 = vmatprep.mubr.f32.mxu1 %v6410_v0 }
  0x4d   :  { %449 = vmatpush1.msra.mxu0 %v4494_v61  ;;  %520 = vmatpush1.msra.mxu1 %v4496_v62 }
  0x4e   :  { %3656 = vmatmul.mubr.msk.f32.gmra.mxu0 %vm111_vm0, %v79_v63  ;;  %3664 = vmatmul.mubr.msk.f32.gmra.mxu1 %vm111_vm0, %v79_v63  ;;  %v4550_v63 = vld [vmem:[#allocation3 + $0x18] sm:$0xff] }
  0x4f   :  { %450 = vmatprep.subr.mxu0 %v4505_v1  ;;  %521 = vmatprep.subr.mxu1 %v4507_v2  ;;  %6636 = vst [vmem:[#allocation30_spill] sm:$0xff] %v4550_v63 }
  0x50   :  { %451 = vmatpush1.msra.mxu0 %v4511_v3  ;;  %522 = vmatpush1.msra.mxu1 %v4513_v4 }
  0x51   :  { %452 = vmatprep.subr.mxu0 %v4517_v5  ;;  %523 = vmatprep.subr.mxu1 %v4519_v6 }
  0x52   :  { %242 = vmatprep.mubr.f32.mxu0 %v6410_v0  ;;  %355 = vmatprep.mubr.f32.mxu1 %v6410_v0  ;;  %v4554_v0 = vld [vmem:[#allocation3] sm:$0xff] }
  0x53   :  { %453 = vmatpush1.msra.mxu0 %v4525_v7  ;;  %524 = vmatpush1.msra.mxu1 %v4527_v8  ;;  %6637 = vst [vmem:[#allocation31_spill] sm:$0xff] %v4554_v0  ;;  %v4558_v8 = vld [vmem:[#allocation3 + $0x10] sm:$0xff] }
  0x54   :  { %3657 = vmatmul.mubr.msk.f32.gmra.mxu0 %vm111_vm0, %v80_v9  ;;  %3665 = vmatmul.mubr.msk.f32.gmra.mxu1 %vm111_vm0, %v80_v9  ;;  %6638 = vst [vmem:[#allocation32_spill] sm:$0xff] %v4558_v8  ;;  %v6639_v9 = vmov 0.0  }
  0x55   :  { %454 = vmatprep.subr.mxu0 %v4536_v18  ;;  %525 = vmatprep.subr.mxu1 %v4538_v27 }
  0x56   :  { %455 = vmatpush1.msra.mxu0 %v4542_v36  ;;  %526 = vmatpush1.msra.mxu1 %v4544_v45 }
  0x57   :  { %456 = vmatprep.subr.mxu0 %v4548_v54  ;;  %527 = vmatprep.subr.mxu1 %v4550_v63 }
  0x58   :  { %457 = vmatpush1.msra.mxu0 %v4554_v0  ;;  %490 = vmatprep.mubr.f32.mxu0 %v6639_v9 }
  0x59   :  { %528 = vmatpush1.msra.mxu1 %v4558_v8  ;;  %561 = vmatprep.mubr.f32.mxu1 %v6639_v9 }
  0x5a   :  { %491 = vmatmul.mubr.f32.vlgmr.msra.gmra.mxu0 %v6639_v9  ;;  %562 = vmatmul.mubr.f32.vlgmr.msra.gmra.mxu1 %v6639_v9 }
  0x5b   :  { %597 = vmatprep.subr.mxu0 %v4321_v10  ;;  %668 = vmatprep.subr.mxu1 %v4323_v11 }
  0x5c   :  { %598 = vmatpush1.msra.mxu0 %v4325_v12  ;;  %669 = vmatpush1.msra.mxu1 %v4327_v13 }
  0x5d   :  { %599 = vmatprep.subr.mxu0 %v4331_v14  ;;  %670 = vmatprep.subr.mxu1 %v4333_v15 }
  0x5e   :  { %600 = vmatpush1.msra.mxu0 %v4339_v16  ;;  %671 = vmatpush1.msra.mxu1 %v4341_v17 }
  0x5f   :  { %601 = vmatprep.subr.mxu0 %v4350_v19  ;;  %672 = vmatprep.subr.mxu1 %v4352_v20 }
  0x60   :  { %602 = vmatpush1.msra.mxu0 %v4356_v21  ;;  %673 = vmatpush1.msra.mxu1 %v4358_v22 }
  0x61   :  { %603 = vmatprep.subr.mxu0 %v4362_v23  ;;  %674 = vmatprep.subr.mxu1 %v4364_v24 }
  0x62   :  { %604 = vmatpush1.msra.mxu0 %v4370_v25  ;;  %675 = vmatpush1.msra.mxu1 %v4372_v26 }
  0x63   :  { %605 = vmatprep.subr.mxu0 %v4381_v28  ;;  %676 = vmatprep.subr.mxu1 %v4383_v29 }
  0x64   :  { %606 = vmatpush1.msra.mxu0 %v4387_v30  ;;  %677 = vmatpush1.msra.mxu1 %v4389_v31 }
  0x65   :  { %607 = vmatprep.subr.mxu0 %v4393_v32  ;;  %678 = vmatprep.subr.mxu1 %v4395_v33 }
  0x66   :  { %608 = vmatpush1.msra.mxu0 %v4401_v34  ;;  %679 = vmatpush1.msra.mxu1 %v4403_v35 }
  0x67   :  { %609 = vmatprep.subr.mxu0 %v4412_v37  ;;  %680 = vmatprep.subr.mxu1 %v4414_v38 }
  0x68   :  { %610 = vmatpush1.msra.mxu0 %v4418_v39  ;;  %681 = vmatpush1.msra.mxu1 %v4420_v40 }
  0x69   :  { %611 = vmatprep.subr.mxu0 %v4424_v41  ;;  %682 = vmatprep.subr.mxu1 %v4426_v42 }
  0x6a   :  { %612 = vmatpush1.msra.mxu0 %v4432_v43  ;;  %683 = vmatpush1.msra.mxu1 %v4434_v44 }
  0x6b   :  { %613 = vmatprep.subr.mxu0 %v4443_v46  ;;  %684 = vmatprep.subr.mxu1 %v4445_v47 }
  0x6c   :  { %614 = vmatpush1.msra.mxu0 %v4449_v48  ;;  %685 = vmatpush1.msra.mxu1 %v4451_v49 }
  0x6d   :  { %615 = vmatprep.subr.mxu0 %v4455_v50  ;;  %686 = vmatprep.subr.mxu1 %v4457_v51 }
  0x6e   :  { %616 = vmatpush1.msra.mxu0 %v4463_v52  ;;  %687 = vmatpush1.msra.mxu1 %v4465_v53 }
  0x6f   :  { %617 = vmatprep.subr.mxu0 %v4474_v55  ;;  %688 = vmatprep.subr.mxu1 %v4476_v56 }
  0x70   :  { %618 = vmatpush1.msra.mxu0 %v4480_v57  ;;  %689 = vmatpush1.msra.mxu1 %v4482_v58 }
  0x71   :  { %619 = vmatprep.subr.mxu0 %v4486_v59  ;;  %690 = vmatprep.subr.mxu1 %v4488_v60  ;;  %v6640_v59 = vld [vmem:[#allocation24_spill] sm:$0xff] }
  0x72   :  { %620 = vmatpush1.msra.mxu0 %v4494_v61  ;;  %691 = vmatpush1.msra.mxu1 %v4496_v62 }
  0x73   :  { %621 = vmatprep.subr.mxu0 %v4505_v1  ;;  %692 = vmatprep.subr.mxu1 %v4507_v2 }
  0x74   :  { %622 = vmatpush1.msra.mxu0 %v4511_v3  ;;  %693 = vmatpush1.msra.mxu1 %v4513_v4 }
  0x75   :  { %623 = vmatprep.subr.mxu0 %v4517_v5  ;;  %694 = vmatprep.subr.mxu1 %v4519_v6 }
  0x76   :  { %624 = vmatpush1.msra.mxu0 %v4525_v7  ;;  %695 = vmatpush1.msra.mxu1 %v6640_v59 }
  0x77   :  { %625 = vmatprep.subr.mxu0 %v4536_v18  ;;  %696 = vmatprep.subr.mxu1 %v4538_v27  ;;  %v91_v27 = vlaneseq }
  0x78   :  { %626 = vmatpush1.msra.mxu0 %v4542_v36  ;;  %697 = vmatpush1.msra.mxu1 %v4544_v45 }
  0x79   :  { %627 = vmatprep.subr.mxu0 %v4548_v54  ;;  %698 = vmatprep.subr.mxu1 %v4550_v63  ;;  %v4636_v36 = vshrl.u32 %v91_v27, 7 }
  0x7a   :  { %628 = vmatpush1.msra.mxu0 %v4554_v0  ;;  %661 = vmatprep.mubr.f32.mxu0 %v6639_v9 }
  0x7b   :  { %699 = vmatpush1.msra.mxu1 %v4558_v8  ;;  %732 = vmatprep.mubr.f32.mxu1 %v6639_v9  ;;  %6641 = vst [vmem:[#allocation33_spill] sm:$0xff] %v4636_v36  ;;  %v6449_v63 = vsub.s32 0, %v4636_v36  ;;  %v6452_v0 = vsub.s32 2, %v4636_v36  ;;  %v89_v8 = vld [vmem:[%s6403_s3] sm:$0xf]  ;;  %v6460_v27 = vsub.s32 3, %v4636_v36 }
  0x7c   :  { %768 = vmatprep.subr.mxu0 %v4321_v10  ;;  %839 = vmatprep.subr.mxu1 %v4323_v11  ;;  %v6459_v11 = vsub.s32 1, %v4636_v36 }
  0x7d   :  { %v94_v18 = vrot.slane %v89_v8, %v6449_v63  ;;  %v4657_v59 = vrot.slane %v89_v8, %v6452_v0  ;;  %v4663_v4 = vrot.slane %v89_v8, %v6460_v27 }
  0x7e   :  { %v98_v5 = vrot.slane %v89_v8, %v6459_v11 }
  0xea   :  { %v4638_v45 = vpop.f32.mrf.mxu0  ;;  %v4640_v54 = vpop.f32.mrf.mxu1 }
  0xec   :  { %v4647_v9 = vpop.f32.mrf.mxu0  ;;  %v4649_v10 = vpop.f32.mrf.mxu1 }
  0xf0   :  { %v208_v7 = vpop.f32.mrf.mxu0  ;;  %v321_v6 = vpop.f32.mrf.mxu1 }
  0xf1   :  { %v4665_v3 = vadd.f32 %v208_v7, %v94_v18  ;;  %v4668_v2 = vadd.f32 %v321_v6, %v4657_v59 }
  0xf2   :  { %v210_v1 = vpop.f32.mrf.mxu0  ;;  %v323_v63 = vpop.f32.mrf.mxu1 }
  0xf3   :  { %6642 = vst [vmem:[#allocation34_spill] sm:$0xff] %v4668_v2  ;;  %v4670_v62 = vadd.f32 %v210_v1, %v98_v5  ;;  %v4673_v0 = vadd.f32 %v323_v63, %v4663_v4 }
  0xf5   :  { %6643 = vst [vmem:[#allocation35_spill] sm:$0xff] %v4670_v62  ;;  %6644 = vst [vmem:[#allocation36_spill] sm:$0xff] %v4673_v0 }
  0xf6   :  { %v214_v61 = vpop.f32.mrf.mxu0  ;;  %v327_v60 = vpop.f32.mrf.mxu1 }
  0xf7   :  { %v4675_v58 = vadd.f32 %v214_v61, %v94_v18  ;;  %v4678_v11 = vadd.f32 %v327_v60, %v4657_v59 }
  0xf8   :  { %v216_v8 = vpop.f32.mrf.mxu0  ;;  %v329_v7 = vpop.f32.mrf.mxu1 }
  0xf9   :  { %6645 = vst [vmem:[#allocation37_spill] sm:$0xff] %v4675_v58  ;;  %6646 = vst [vmem:[#allocation38_spill] sm:$0xff] %v4678_v11  ;;  %v4680_v27 = vadd.f32 %v216_v8, %v98_v5  ;;  %v4683_v6 = vadd.f32 %v329_v7, %v4663_v4 }
  0xfb   :  { %6647 = vst [vmem:[#allocation39_spill] sm:$0xff] %v4680_v27  ;;  %6648 = vst [vmem:[#allocation40_spill] sm:$0xff] %v4683_v6 }
  0xfc   :  { %v220_v36 = vpop.f32.mrf.mxu0  ;;  %v333_v1 = vpop.f32.mrf.mxu1 }
  0xfd   :  { %v4685_v2 = vadd.f32 %v220_v36, %v94_v18  ;;  %v4688_v63 = vadd.f32 %v333_v1, %v4657_v59 }
  0xfe   :  { %v222_v0 = vpop.f32.mrf.mxu0  ;;  %v335_v61 = vpop.f32.mrf.mxu1 }
  0xff   :  { %6649 = vst [vmem:[#allocation41_spill] sm:$0xff] %v4685_v2  ;;  %6650 = vst [vmem:[#allocation42_spill] sm:$0xff] %v4688_v63  ;;  %v4690_v58 = vadd.f32 %v222_v0, %v98_v5  ;;  %v4693_v60 = vadd.f32 %v335_v61, %v4663_v4 }
 0x101   :  { %6651 = vst [vmem:[#allocation43_spill] sm:$0xff] %v4690_v58  ;;  %6652 = vst [vmem:[#allocation44_spill] sm:$0xff] %v4693_v60 }
 0x102   :  { %v226_v11 = vpop.f32.mrf.mxu0  ;;  %v339_v8 = vpop.f32.mrf.mxu1 }
 0x103   :  { %v4695_v27 = vadd.f32 %v226_v11, %v94_v18  ;;  %v4698_v7 = vadd.f32 %v339_v8, %v4657_v59 }
 0x104   :  { %v228_v6 = vpop.f32.mrf.mxu0  ;;  %v341_v36 = vpop.f32.mrf.mxu1 }
 0x105   :  { %6653 = vst [vmem:[#allocation45_spill] sm:$0xff] %v4695_v27  ;;  %6654 = vst [vmem:[#allocation46_spill] sm:$0xff] %v4698_v7  ;;  %v4700_v2 = vadd.f32 %v228_v6, %v98_v5  ;;  %v4703_v1 = vadd.f32 %v341_v36, %v4663_v4 }
 0x107   :  { %6655 = vst [vmem:[#allocation47_spill] sm:$0xff] %v4700_v2  ;;  %6656 = vst [vmem:[#allocation48_spill] sm:$0xff] %v4703_v1 }
 0x108   :  { %v232_v63 = vpop.f32.mrf.mxu0  ;;  %v345_v0 = vpop.f32.mrf.mxu1 }
 0x109   :  { %v4705_v58 = vadd.f32 %v232_v63, %v94_v18  ;;  %v4708_v61 = vadd.f32 %v345_v0, %v4657_v59 }
 0x10a   :  { %v234_v60 = vpop.f32.mrf.mxu0  ;;  %v347_v11 = vpop.f32.mrf.mxu1 }
 0x10b   :  { %6657 = vst [vmem:[#allocation49_spill] sm:$0xff] %v4705_v58  ;;  %6658 = vst [vmem:[#allocation50_spill] sm:$0xff] %v4708_v61  ;;  %v4710_v27 = vadd.f32 %v234_v60, %v98_v5  ;;  %v4713_v8 = vadd.f32 %v347_v11, %v4663_v4 }
 0x10d   :  { %6659 = vst [vmem:[#allocation51_spill] sm:$0xff] %v4710_v27  ;;  %6660 = vst [vmem:[#allocation52_spill] sm:$0xff] %v4713_v8 }
 0x10e   :  { %v238_v7 = vpop.f32.mrf.mxu0  ;;  %v351_v6 = vpop.f32.mrf.mxu1 }
 0x10f   :  { %v4715_v2 = vadd.f32 %v238_v7, %v94_v18  ;;  %v4718_v36 = vadd.f32 %v351_v6, %v4657_v59 }
 0x110   :  { %v240_v1 = vpop.f32.mrf.mxu0  ;;  %v353_v63 = vpop.f32.mrf.mxu1 }
 0x111   :  { %6661 = vst [vmem:[#allocation53_spill] sm:$0xff] %v4715_v2  ;;  %6662 = vst [vmem:[#allocation54_spill] sm:$0xff] %v4718_v36  ;;  %v4720_v58 = vadd.f32 %v240_v1, %v98_v5  ;;  %v4723_v0 = vadd.f32 %v353_v63, %v4663_v4  ;;  %v203_v1 = vadd.f32 %v4638_v45, %v94_v18 }
 0x112   :  { %v205_v63 = vadd.f32 %v4647_v9, %v98_v5 }
 0x113   :  { %6663 = vst [vmem:[#allocation55_spill] sm:$0xff] %v4720_v58  ;;  %6664 = vst [vmem:[#allocation56_spill] sm:$0xff] %v4723_v0 }
 0x114   :  { %v244_v61 = vpop.f32.mrf.mxu0  ;;  %v357_v60 = vpop.f32.mrf.mxu1 }
 0x115   :  { %v4725_v27 = vadd.f32 %v244_v61, %v94_v18  ;;  %v4728_v11 = vadd.f32 %v357_v60, %v4657_v59 }
 0x116   :  { %v246_v8 = vpop.f32.mrf.mxu0  ;;  %v359_v7 = vpop.f32.mrf.mxu1 }
 0x117   :  { %6665 = vst [vmem:[#allocation57_spill] sm:$0xff] %v4725_v27  ;;  %6666 = vst [vmem:[#allocation58_spill] sm:$0xff] %v4728_v11  ;;  %v4730_v2 = vadd.f32 %v246_v8, %v98_v5  ;;  %v4733_v6 = vadd.f32 %v359_v7, %v4663_v4  ;;  %v318_v8 = vadd.f32 %v4649_v10, %v4663_v4 }
 0x118   :  { %v316_v7 = vadd.f32 %v4640_v54, %v4657_v59 }
 0x119   :  { %6667 = vst [vmem:[#allocation59_spill] sm:$0xff] %v4730_v2  ;;  %6668 = vst [vmem:[#allocation60_spill] sm:$0xff] %v4733_v6 }
 0x11a   :  { %v492_v36 = vpop.f32.mrf.mxu0  ;;  %v563_v27 = vpop.f32.mrf.mxu1 }
 0x11b   :  { %v568_v0 = vadd.f32 %v492_v36, %v203_v1  ;;  %v570_v6 = vadd.f32 %v563_v27, %v316_v7  ;;  %v6670_v27 = vld [vmem:[#allocation12_spill] sm:$0xff]  ;;  %v6675_v7 = vld [vmem:[#allocation17_spill] sm:$0xff] }
 0x11c   :  { %v494_v58 = vpop.f32.mrf.mxu0  ;;  %v565_v11 = vpop.f32.mrf.mxu1 }
 0x11d   :  { %v3666_v62 = vmul.f32 -1.442695, %v568_v0  ;;  %v569_v61 = vadd.f32 %v494_v58, %v205_v63  ;;  %v571_v2 = vadd.f32 %v565_v11, %v318_v8  ;;  %v6674_v8 = vld [vmem:[#allocation16_spill] sm:$0xff] }
 0x11f   :  { %3774 = vpow2.f32 %v3666_v62  ;;  %v3667_v60 = vmul.f32 -1.442695, %v569_v61  ;;  %v3668_v18 = vmul.f32 -1.442695, %v571_v2  ;;  %v6672_v61 = vld [vmem:[#allocation14_spill] sm:$0xff] }
 0x121   :  { %3776 = vpow2.f32 %v3667_v60  ;;  %v6673_v60 = vld [vmem:[#allocation15_spill] sm:$0xff] }
 0x122   :  { %3778 = vpow2.f32 %v3668_v18  ;;  %v6676_v18 = vld [vmem:[#allocation18_spill] sm:$0xff] }
 0x12c   :  { %v3775_v45 = vpop.eup %3774 }
 0x12d   :  { %v575_v5 = vadd.f32 1.0, %v3775_v45  ;;  %v6677_v45 = vld [vmem:[#allocation19_spill] sm:$0xff] }
 0x12e   :  { %v3777_v9 = vpop.eup %3776 }
 0x12f   :  { %3780 = vrcp.f32 %v575_v5  ;;  %v581_v58 = vadd.f32 1.0, %v3777_v9  ;;  %v3779_v62 = vpop.eup %3778  ;;  %v6678_v5 = vld [vmem:[#allocation20_spill] sm:$0xff]  ;;  %v6679_v9 = vld [vmem:[#allocation21_spill] sm:$0xff] }
 0x130   :  { %3782 = vtanh.f32 %v570_v6  ;;  %v588_v63 = vadd.f32 1.0, %v3779_v62  ;;  %v6671_v6 = vld [vmem:[#allocation13_spill] sm:$0xff]  ;;  %v6681_v62 = vld [vmem:[#allocation23_spill] sm:$0xff] }
 0x131   :  { %3784 = vrcp.f32 %v581_v58  ;;  %v6680_v58 = vld [vmem:[#allocation22_spill] sm:$0xff] }
 0x132   :  { %3786 = vrcp.f32 %v588_v63  ;;  %v6685_v63 = vld [vmem:[#allocation27_spill] sm:$0xff] }
 0x13c   :  { %v3781_v36 = vpop.eup %3780 }
 0x13d   :  { %v3783_v0 = vpop.eup %3782 }
 0x13e   :  { %v3785_v1 = vpop.eup %3784  ;;  %v592_v4 = vmul.f32 %v3783_v0, %v3781_v36  ;;  %v6682_v36 = vld [vmem:[#allocation24_spill] sm:$0xff]  ;;  %v6683_v0 = vld [vmem:[#allocation25_spill] sm:$0xff] }
 0x13f   :  { %v591_v10 = vmul.f32 0.0, %v3785_v1  ;;  %v3787_v59 = vpop.eup %3786  ;;  %v6684_v1 = vld [vmem:[#allocation26_spill] sm:$0xff] }
 0x141   :  { %v4741_v11 = vadd.f32 %v592_v4, %v591_v10  ;;  %v6686_v10 = vld [vmem:[#allocation28_spill] sm:$0xff]  ;;  %v6687_v4 = vld [vmem:[#allocation29_spill] sm:$0xff] }
 0x143   :  { %3788 = vtanh.f32 %v4741_v11 }
 0x150   :  { %v3789_v2 = vpop.eup %3788 }
 0x151   :  { %v4744_v54 = vmul.f32 %v3789_v2, %v3787_v59  ;;  %v6688_v59 = vld [vmem:[#allocation30_spill] sm:$0xff]  ;;  %v6689_v2 = vld [vmem:[#allocation31_spill] sm:$0xff] }
 0x153   :  { %6669 = vst [vmem:[#allocation61_spill] sm:$0xff] %v4744_v54  ;;  %662 = vmatmul.mubr.f32.vlgmr.msra.gmra.mxu0 %v4744_v54  ;;  %733 = vmatmul.mubr.f32.vlgmr.msra.gmra.mxu1 %v4744_v54  ;;  %v6690_v54 = vmov 0.0  }
 0x154   :  { %769 = vmatpush1.msra.mxu0 %v4325_v12  ;;  %840 = vmatpush1.msra.mxu1 %v4327_v13 }
 0x155   :  { %770 = vmatprep.subr.mxu0 %v4331_v14  ;;  %841 = vmatprep.subr.mxu1 %v4333_v15 }
 0x156   :  { %771 = vmatpush1.msra.mxu0 %v4339_v16  ;;  %842 = vmatpush1.msra.mxu1 %v4341_v17 }
 0x157   :  { %772 = vmatprep.subr.mxu0 %v4350_v19  ;;  %843 = vmatprep.subr.mxu1 %v4352_v20 }
 0x158   :  { %773 = vmatpush1.msra.mxu0 %v4356_v21  ;;  %844 = vmatpush1.msra.mxu1 %v4358_v22 }
 0x159   :  { %774 = vmatprep.subr.mxu0 %v4362_v23  ;;  %845 = vmatprep.subr.mxu1 %v4364_v24 }
 0x15a   :  { %775 = vmatpush1.msra.mxu0 %v4370_v25  ;;  %846 = vmatpush1.msra.mxu1 %v4372_v26 }
 0x15b   :  { %776 = vmatprep.subr.mxu0 %v4381_v28  ;;  %847 = vmatprep.subr.mxu1 %v4383_v29 }
 0x15c   :  { %777 = vmatpush1.msra.mxu0 %v4387_v30  ;;  %848 = vmatpush1.msra.mxu1 %v4389_v31 }
 0x15d   :  { %778 = vmatprep.subr.mxu0 %v4393_v32  ;;  %849 = vmatprep.subr.mxu1 %v4395_v33 }
 0x15e   :  { %779 = vmatpush1.msra.mxu0 %v4401_v34  ;;  %850 = vmatpush1.msra.mxu1 %v4403_v35 }
 0x15f   :  { %780 = vmatprep.subr.mxu0 %v4412_v37  ;;  %851 = vmatprep.subr.mxu1 %v4414_v38 }
 0x160   :  { %781 = vmatpush1.msra.mxu0 %v4418_v39  ;;  %852 = vmatpush1.msra.mxu1 %v4420_v40 }
 0x161   :  { %782 = vmatprep.subr.mxu0 %v4424_v41  ;;  %853 = vmatprep.subr.mxu1 %v4426_v42 }
 0x162   :  { %783 = vmatpush1.msra.mxu0 %v4432_v43  ;;  %854 = vmatpush1.msra.mxu1 %v4434_v44 }
 0x163   :  { %784 = vmatprep.subr.mxu0 %v4443_v46  ;;  %855 = vmatprep.subr.mxu1 %v4445_v47 }
 0x164   :  { %785 = vmatpush1.msra.mxu0 %v4449_v48  ;;  %856 = vmatpush1.msra.mxu1 %v4451_v49 }
 0x165   :  { %786 = vmatprep.subr.mxu0 %v4455_v50  ;;  %857 = vmatprep.subr.mxu1 %v4457_v51 }
 0x166   :  { %787 = vmatpush1.msra.mxu0 %v4463_v52  ;;  %858 = vmatpush1.msra.mxu1 %v4465_v53 }
 0x167   :  { %788 = vmatprep.subr.mxu0 %v4474_v55  ;;  %859 = vmatprep.subr.mxu1 %v4476_v56 }
 0x168   :  { %789 = vmatpush1.msra.mxu0 %v4480_v57  ;;  %860 = vmatpush1.msra.mxu1 %v6670_v27 }
 0x169   :  { %790 = vmatprep.subr.mxu0 %v6671_v6  ;;  %861 = vmatprep.subr.mxu1 %v6672_v61 }
 0x16a   :  { %791 = vmatpush1.msra.mxu0 %v6673_v60  ;;  %862 = vmatpush1.msra.mxu1 %v6674_v8 }
 0x16b   :  { %792 = vmatprep.subr.mxu0 %v6675_v7  ;;  %863 = vmatprep.subr.mxu1 %v6676_v18  ;;  %v6696_v18 = vld [vmem:[#allocation34_spill] sm:$0xff] }
 0x16c   :  { %793 = vmatpush1.msra.mxu0 %v6677_v45  ;;  %864 = vmatpush1.msra.mxu1 %v6678_v5  ;;  %v6695_v45 = vld [vmem:[#allocation36_spill] sm:$0xff] }
 0x16d   :  { %794 = vmatprep.subr.mxu0 %v6679_v9  ;;  %865 = vmatprep.subr.mxu1 %v6680_v58  ;;  %v6691_v58 = vld [vmem:[#allocation32_spill] sm:$0xff] }
 0x16e   :  { %795 = vmatpush1.msra.mxu0 %v6681_v62  ;;  %866 = vmatpush1.msra.mxu1 %v6682_v36  ;;  %v6692_v36 = vld [vmem:[#allocation10_spill] sm:$0xff] }
 0x16f   :  { %796 = vmatprep.subr.mxu0 %v6683_v0  ;;  %867 = vmatprep.subr.mxu1 %v6684_v1  ;;  %v6693_v0 = vld [vmem:[#allocation11_spill] sm:$0xff] }
 0x170   :  { %797 = vmatpush1.msra.mxu0 %v6685_v63  ;;  %868 = vmatpush1.msra.mxu1 %v6686_v10 }
 0x171   :  { %798 = vmatprep.subr.mxu0 %v6687_v4  ;;  %869 = vmatprep.subr.mxu1 %v6688_v59  ;;  %v6694_v4 = vld [vmem:[#allocation35_spill] sm:$0xff] }
 0x172   :  { %799 = vmatpush1.msra.mxu0 %v6689_v2  ;;  %832 = vmatprep.mubr.f32.mxu0 %v6690_v54 }
 0x173   :  { %870 = vmatpush1.msra.mxu1 %v6691_v58  ;;  %903 = vmatprep.mubr.f32.mxu1 %v6690_v54 }
 0x174   :  { %939 = vmatprep.subr.mxu0 %v6692_v36  ;;  %1010 = vmatprep.subr.mxu1 %v6693_v0 }
 0x213   :  { %v663_v1 = vpop.f32.mrf.mxu0  ;;  %v734_v59 = vpop.f32.mrf.mxu1 }
 0x214   :  { %v739_v63 = vadd.f32 %v663_v1, %v4665_v3  ;;  %v741_v54 = vadd.f32 %v734_v59, %v6696_v18 }
 0x215   :  { %v665_v10 = vpop.f32.mrf.mxu0  ;;  %v736_v5 = vpop.f32.mrf.mxu1 }
 0x216   :  { %v3669_v62 = vmul.f32 -1.442695, %v739_v63  ;;  %v740_v9 = vadd.f32 %v665_v10, %v6694_v4  ;;  %v742_v58 = vadd.f32 %v736_v5, %v6695_v45 }
 0x218   :  { %3790 = vpow2.f32 %v3669_v62  ;;  %v3670_v2 = vmul.f32 -1.442695, %v740_v9  ;;  %v3671_v7 = vmul.f32 -1.442695, %v742_v58 }
 0x21a   :  { %3792 = vpow2.f32 %v3670_v2 }
 0x21b   :  { %3794 = vtanh.f32 %v741_v54 }
 0x21c   :  { %3796 = vpow2.f32 %v3671_v7 }
 0x225   :  { %v3791_v36 = vpop.eup %3790 }
 0x226   :  { %v746_v8 = vadd.f32 1.0, %v3791_v36 }
 0x227   :  { %v3793_v0 = vpop.eup %3792 }
 0x228   :  { %3798 = vrcp.f32 %v746_v8  ;;  %v752_v3 = vadd.f32 1.0, %v3793_v0  ;;  %v3795_v1 = vpop.eup %3794  ;;  %v6719_v8 = vld [vmem:[#allocation39_spill] sm:$0xff]  ;;  %v6720_v0 = vld [vmem:[#allocation40_spill] sm:$0xff] }
 0x229   :  { %v3797_v63 = vpop.eup %3796 }
 0x22a   :  { %3800 = vrcp.f32 %v752_v3  ;;  %v759_v4 = vadd.f32 1.0, %v3797_v63 }
 0x22c   :  { %3802 = vrcp.f32 %v759_v4 }
 0x235   :  { %v3799_v62 = vpop.eup %3798 }
 0x236   :  { %v763_v10 = vmul.f32 %v3799_v62, %v3795_v1  ;;  %v6721_v1 = vld [vmem:[#allocation38_spill] sm:$0xff] }
 0x237   :  { %v3801_v9 = vpop.eup %3800 }
 0x238   :  { %v762_v2 = vmul.f32 %v3801_v9, %v4741_v11 }
 0x239   :  { %v3803_v18 = vpop.eup %3802 }
 0x23a   :  { %v4819_v45 = vadd.f32 %v763_v10, %v762_v2 }
 0x23c   :  { %3804 = vtanh.f32 %v4819_v45 }
 0x249   :  { %v3805_v54 = vpop.eup %3804 }
 0x24a   :  { %v4822_v5 = vmul.f32 %v3805_v54, %v3803_v18 }
 0x24c   :  { %6697 = vst [vmem:[#allocation12_spill] sm:$0xff] %v4822_v5  ;;  %833 = vmatmul.mubr.f32.vlgmr.msra.gmra.mxu0 %v4822_v5  ;;  %904 = vmatmul.mubr.f32.vlgmr.msra.gmra.mxu1 %v4822_v5  ;;  %v4971_v5 = vld [vmem:[#allocation3 + $0x150] sm:$0xff] }
 0x24d   :  { %940 = vmatpush1.msra.mxu0 %v4325_v12  ;;  %1011 = vmatpush1.msra.mxu1 %v4327_v13  ;;  %v6698_v12 = vld [vmem:[#allocation16_spill] sm:$0xff]  ;;  %v6699_v13 = vld [vmem:[#allocation17_spill] sm:$0xff] }
 0x24e   :  { %941 = vmatprep.subr.mxu0 %v4331_v14  ;;  %1012 = vmatprep.subr.mxu1 %v4333_v15  ;;  %v6700_v14 = vld [vmem:[#allocation18_spill] sm:$0xff]  ;;  %v6701_v15 = vld [vmem:[#allocation19_spill] sm:$0xff] }
 0x24f   :  { %942 = vmatpush1.msra.mxu0 %v4339_v16  ;;  %1013 = vmatpush1.msra.mxu1 %v4341_v17  ;;  %v6702_v16 = vld [vmem:[#allocation20_spill] sm:$0xff]  ;;  %v6703_v17 = vld [vmem:[#allocation21_spill] sm:$0xff] }
 0x250   :  { %943 = vmatprep.subr.mxu0 %v4350_v19  ;;  %1014 = vmatprep.subr.mxu1 %v4352_v20  ;;  %v6704_v19 = vld [vmem:[#allocation22_spill] sm:$0xff]  ;;  %v6705_v20 = vld [vmem:[#allocation23_spill] sm:$0xff] }
 0x251   :  { %944 = vmatpush1.msra.mxu0 %v4356_v21  ;;  %1015 = vmatpush1.msra.mxu1 %v4358_v22  ;;  %v6706_v21 = vld [vmem:[#allocation24_spill] sm:$0xff]  ;;  %v6707_v22 = vld [vmem:[#allocation25_spill] sm:$0xff] }
 0x252   :  { %945 = vmatprep.subr.mxu0 %v4362_v23  ;;  %1016 = vmatprep.subr.mxu1 %v4364_v24  ;;  %v6708_v23 = vld [vmem:[#allocation26_spill] sm:$0xff]  ;;  %v6709_v24 = vld [vmem:[#allocation27_spill] sm:$0xff] }
 0x253   :  { %946 = vmatpush1.msra.mxu0 %v4370_v25  ;;  %1017 = vmatpush1.msra.mxu1 %v4372_v26  ;;  %v6710_v25 = vld [vmem:[#allocation28_spill] sm:$0xff]  ;;  %v6711_v26 = vld [vmem:[#allocation29_spill] sm:$0xff] }
 0x254   :  { %947 = vmatprep.subr.mxu0 %v4381_v28  ;;  %1018 = vmatprep.subr.mxu1 %v4383_v29  ;;  %v6712_v28 = vld [vmem:[#allocation30_spill] sm:$0xff]  ;;  %v6713_v29 = vld [vmem:[#allocation31_spill] sm:$0xff] }
 0x255   :  { %948 = vmatpush1.msra.mxu0 %v4387_v30  ;;  %1019 = vmatpush1.msra.mxu1 %v4389_v31  ;;  %v6714_v30 = vmov 0.0   ;;  %v6715_v31 = vld [vmem:[#allocation32_spill] sm:$0xff] }
 0x256   :  { %949 = vmatprep.subr.mxu0 %v4393_v32  ;;  %1020 = vmatprep.subr.mxu1 %v4395_v33  ;;  %v4890_v32 = vld [vmem:[#allocation3 + $0x1e8] sm:$0xff]  ;;  %v4893_v33 = vld [vmem:[#allocation3 + $0x1f8] sm:$0xff] }
 0x257   :  { %950 = vmatpush1.msra.mxu0 %v4401_v34  ;;  %1021 = vmatpush1.msra.mxu1 %v4403_v35  ;;  %6716 = vst [vmem:[#allocation13_spill] sm:$0xff] %v4890_v32  ;;  %6717 = vst [vmem:[#allocation14_spill] sm:$0xff] %v4893_v33  ;;  %v6718_v35 = vld [vmem:[#allocation37_spill] sm:$0xff] }
 0x258   :  { %951 = vmatprep.subr.mxu0 %v4412_v37  ;;  %1022 = vmatprep.subr.mxu1 %v4414_v38 }
 0x259   :  { %952 = vmatpush1.msra.mxu0 %v4418_v39  ;;  %1023 = vmatpush1.msra.mxu1 %v4420_v40 }
 0x25a   :  { %953 = vmatprep.subr.mxu0 %v4424_v41  ;;  %1024 = vmatprep.subr.mxu1 %v4426_v42 }
 0x25b   :  { %954 = vmatpush1.msra.mxu0 %v4432_v43  ;;  %1025 = vmatpush1.msra.mxu1 %v4434_v44 }
 0x25c   :  { %955 = vmatprep.subr.mxu0 %v4443_v46  ;;  %1026 = vmatprep.subr.mxu1 %v4445_v47 }
 0x25d   :  { %956 = vmatpush1.msra.mxu0 %v4449_v48  ;;  %1027 = vmatpush1.msra.mxu1 %v4451_v49 }
 0x25e   :  { %957 = vmatprep.subr.mxu0 %v4455_v50  ;;  %1028 = vmatprep.subr.mxu1 %v4457_v51 }
 0x25f   :  { %958 = vmatpush1.msra.mxu0 %v4463_v52  ;;  %1029 = vmatpush1.msra.mxu1 %v4465_v53 }
 0x260   :  { %959 = vmatprep.subr.mxu0 %v4474_v55  ;;  %1030 = vmatprep.subr.mxu1 %v4476_v56 }
 0x261   :  { %960 = vmatpush1.msra.mxu0 %v4480_v57  ;;  %1031 = vmatpush1.msra.mxu1 %v6670_v27 }
 0x262   :  { %961 = vmatprep.subr.mxu0 %v6671_v6  ;;  %1032 = vmatprep.subr.mxu1 %v6672_v61 }
 0x263   :  { %962 = vmatpush1.msra.mxu0 %v6673_v60  ;;  %1033 = vmatpush1.msra.mxu1 %v6698_v12 }
 0x264   :  { %963 = vmatprep.subr.mxu0 %v6699_v13  ;;  %1034 = vmatprep.subr.mxu1 %v6700_v14 }
 0x265   :  { %964 = vmatpush1.msra.mxu0 %v6701_v15  ;;  %1035 = vmatpush1.msra.mxu1 %v6702_v16 }
 0x266   :  { %965 = vmatprep.subr.mxu0 %v6703_v17  ;;  %1036 = vmatprep.subr.mxu1 %v6704_v19 }
 0x267   :  { %966 = vmatpush1.msra.mxu0 %v6705_v20  ;;  %1037 = vmatpush1.msra.mxu1 %v6706_v21 }
 0x268   :  { %967 = vmatprep.subr.mxu0 %v6707_v22  ;;  %1038 = vmatprep.subr.mxu1 %v6708_v23 }
 0x269   :  { %968 = vmatpush1.msra.mxu0 %v6709_v24  ;;  %1039 = vmatpush1.msra.mxu1 %v6710_v25 }
 0x26a   :  { %969 = vmatprep.subr.mxu0 %v6711_v26  ;;  %1040 = vmatprep.subr.mxu1 %v6712_v28 }
 0x26b   :  { %970 = vmatpush1.msra.mxu0 %v6713_v29  ;;  %1003 = vmatprep.mubr.f32.mxu0 %v6714_v30 }
 0x26c   :  { %1041 = vmatpush1.msra.mxu1 %v6715_v31  ;;  %1074 = vmatprep.mubr.f32.mxu1 %v6714_v30 }
 0x26d   :  { %1110 = vmatprep.subr.mxu0 %v4890_v32  ;;  %1181 = vmatprep.subr.mxu1 %v4893_v33 }
 0x30c   :  { %v834_v34 = vpop.f32.mrf.mxu0  ;;  %v905_v58 = vpop.f32.mrf.mxu1 }
 0x30d   :  { %v910_v37 = vadd.f32 %v834_v34, %v6718_v35  ;;  %v912_v63 = vadd.f32 %v905_v58, %v6721_v1  ;;  %v4920_v1 = vld [vmem:[#allocation3 + $0x1c0] sm:$0xff] }
 0x30e   :  { %v836_v38 = vpop.f32.mrf.mxu0  ;;  %v907_v36 = vpop.f32.mrf.mxu1 }
 0x30f   :  { %v3672_v11 = vmul.f32 -1.442695, %v910_v37  ;;  %v911_v7 = vadd.f32 %v836_v38, %v6719_v8  ;;  %v913_v3 = vadd.f32 %v907_v36, %v6720_v0  ;;  %v4908_v36 = vld [vmem:[#allocation3 + $0x1e0] sm:$0xff]  ;;  %v4911_v0 = vld [vmem:[#allocation3 + $0x1f0] sm:$0xff] }
 0x311   :  { %3806 = vpow2.f32 %v3672_v11  ;;  %v3673_v59 = vmul.f32 -1.442695, %v911_v7  ;;  %v3674_v62 = vmul.f32 -1.442695, %v913_v3  ;;  %v4917_v3 = vld [vmem:[#allocation3 + $0x1d8] sm:$0xff] }
 0x313   :  { %3808 = vpow2.f32 %v3673_v59 }
 0x314   :  { %3810 = vtanh.f32 %v912_v63  ;;  %v4923_v63 = vld [vmem:[#allocation3 + $0x1d0] sm:$0xff] }
 0x315   :  { %3812 = vpow2.f32 %v3674_v62  ;;  %v4926_v62 = vld [vmem:[#allocation3 + $0x1a8] sm:$0xff] }
 0x31e   :  { %v3807_v10 = vpop.eup %3806 }
 0x31f   :  { %v917_v9 = vadd.f32 1.0, %v3807_v10  ;;  %v4929_v10 = vld [vmem:[#allocation3 + $0x1b8] sm:$0xff] }
 0x320   :  { %v3809_v4 = vpop.eup %3808 }
 0x321   :  { %3814 = vrcp.f32 %v917_v9  ;;  %v923_v2 = vadd.f32 1.0, %v3809_v4  ;;  %v3811_v18 = vpop.eup %3810  ;;  %v4932_v9 = vld [vmem:[#allocation3 + $0x1a0] sm:$0xff]  ;;  %v4935_v4 = vld [vmem:[#allocation3 + $0x1b0] sm:$0xff] }
 0x322   :  { %v3813_v54 = vpop.eup %3812 }
 0x323   :  { %3816 = vrcp.f32 %v923_v2  ;;  %v930_v38 = vadd.f32 1.0, %v3813_v54  ;;  %v4938_v2 = vld [vmem:[#allocation3 + $0x188] sm:$0xff]  ;;  %v4944_v54 = vld [vmem:[#allocation3 + $0x180] sm:$0xff] }
 0x325   :  { %3818 = vrcp.f32 %v930_v38  ;;  %v4956_v38 = vld [vmem:[#allocation3 + $0x160] sm:$0xff] }
 0x326   :  { %6723 = vst [vmem:[#allocation10_spill] sm:$0xff] %v4956_v38 }
 0x32e   :  { %v3815_v34 = vpop.eup %3814 }
 0x32f   :  { %v934_v35 = vmul.f32 %v3815_v34, %v3811_v18  ;;  %v4941_v18 = vld [vmem:[#allocation3 + $0x198] sm:$0xff]  ;;  %v4947_v34 = vld [vmem:[#allocation3 + $0x190] sm:$0xff] }
 0x330   :  { %v3817_v37 = vpop.eup %3816 }
 0x331   :  { %v933_v11 = vmul.f32 %v3817_v37, %v4819_v45  ;;  %v4914_v45 = vld [vmem:[#allocation3 + $0x1c8] sm:$0xff]  ;;  %v4953_v37 = vld [vmem:[#allocation3 + $0x178] sm:$0xff] }
 0x332   :  { %v3819_v7 = vpop.eup %3818 }
 0x333   :  { %v4901_v8 = vadd.f32 %v934_v35, %v933_v11  ;;  %v4950_v35 = vld [vmem:[#allocation3 + $0x168] sm:$0xff]  ;;  %v4959_v11 = vld [vmem:[#allocation3 + $0x170] sm:$0xff] }
 0x334   :  { %6724 = vst [vmem:[#allocation11_spill] sm:$0xff] %v4959_v11 }
 0x335   :  { %3820 = vtanh.f32 %v4901_v8 }
 0x342   :  { %v3821_v58 = vpop.eup %3820 }
 0x343   :  { %v4904_v59 = vmul.f32 %v3821_v58, %v3819_v7  ;;  %v4962_v7 = vld [vmem:[#allocation3 + $0x148] sm:$0xff]  ;;  %v4965_v58 = vld [vmem:[#allocation3 + $0x158] sm:$0xff] }
 0x345   :  { %6722 = vst [vmem:[#allocation15_spill] sm:$0xff] %v4904_v59  ;;  %1004 = vmatmul.mubr.f32.vlgmr.msra.gmra.mxu0 %v4904_v59  ;;  %1075 = vmatmul.mubr.f32.vlgmr.msra.gmra.mxu1 %v4904_v59  ;;  %v4968_v59 = vld [vmem:[#allocation3 + $0x140] sm:$0xff] }
 0x346   :  { %1111 = vmatpush1.msra.mxu0 %v4908_v36  ;;  %1182 = vmatpush1.msra.mxu1 %v4911_v0 }
 0x347   :  { %1112 = vmatprep.subr.mxu0 %v4914_v45  ;;  %1183 = vmatprep.subr.mxu1 %v4917_v3 }
 0x348   :  { %1113 = vmatpush1.msra.mxu0 %v4920_v1  ;;  %1184 = vmatpush1.msra.mxu1 %v4923_v63 }
 0x349   :  { %1114 = vmatprep.subr.mxu0 %v4926_v62  ;;  %1185 = vmatprep.subr.mxu1 %v4929_v10 }
 0x34a   :  { %1115 = vmatpush1.msra.mxu0 %v4932_v9  ;;  %1186 = vmatpush1.msra.mxu1 %v4935_v4 }
 0x34b   :  { %1116 = vmatprep.subr.mxu0 %v4938_v2  ;;  %1187 = vmatprep.subr.mxu1 %v4941_v18 }
 0x34c   :  { %1117 = vmatpush1.msra.mxu0 %v4944_v54  ;;  %1188 = vmatpush1.msra.mxu1 %v4947_v34 }
 0x34d   :  { %1118 = vmatprep.subr.mxu0 %v4950_v35  ;;  %1189 = vmatprep.subr.mxu1 %v4953_v37 }
 0x34e   :  { %1119 = vmatpush1.msra.mxu0 %v4956_v38  ;;  %1190 = vmatpush1.msra.mxu1 %v4959_v11  ;;  %v4974_v38 = vld [vmem:[#allocation3 + $0x128] sm:$0xff]  ;;  %v4977_v11 = vld [vmem:[#allocation3 + $0x138] sm:$0xff] }
 0x34f   :  { %1120 = vmatprep.subr.mxu0 %v4962_v7  ;;  %1191 = vmatprep.subr.mxu1 %v4965_v58 }
 0x350   :  { %1121 = vmatpush1.msra.mxu0 %v4968_v59  ;;  %1192 = vmatpush1.msra.mxu1 %v4971_v5 }
 0x351   :  { %1122 = vmatprep.subr.mxu0 %v4974_v38  ;;  %1193 = vmatprep.subr.mxu1 %v4977_v11 }
 0x352   :  { %1123 = vmatpush1.msra.mxu0 %v4418_v39  ;;  %1194 = vmatpush1.msra.mxu1 %v4420_v40  ;;  %v6725_v40 = vld [vmem:[#allocation41_spill] sm:$0xff] }
 0x353   :  { %1124 = vmatprep.subr.mxu0 %v4424_v41  ;;  %1195 = vmatprep.subr.mxu1 %v4426_v42 }
 0x354   :  { %1125 = vmatpush1.msra.mxu0 %v4432_v43  ;;  %1196 = vmatpush1.msra.mxu1 %v4434_v44  ;;  %v6726_v44 = vld [vmem:[#allocation43_spill] sm:$0xff] }
 0x355   :  { %1126 = vmatprep.subr.mxu0 %v4443_v46  ;;  %1197 = vmatprep.subr.mxu1 %v4445_v47 }
 0x356   :  { %1127 = vmatpush1.msra.mxu0 %v4449_v48  ;;  %1198 = vmatpush1.msra.mxu1 %v4451_v49 }
 0x357   :  { %1128 = vmatprep.subr.mxu0 %v4455_v50  ;;  %1199 = vmatprep.subr.mxu1 %v4457_v51  ;;  %v6727_v50 = vld [vmem:[#allocation44_spill] sm:$0xff] }
 0x358   :  { %1129 = vmatpush1.msra.mxu0 %v4463_v52  ;;  %1200 = vmatpush1.msra.mxu1 %v4465_v53  ;;  %v6728_v52 = vld [vmem:[#allocation42_spill] sm:$0xff] }
 0x359   :  { %1130 = vmatprep.subr.mxu0 %v4474_v55  ;;  %1201 = vmatprep.subr.mxu1 %v4476_v56 }
 0x35a   :  { %1131 = vmatpush1.msra.mxu0 %v4480_v57  ;;  %1202 = vmatpush1.msra.mxu1 %v6670_v27 }
 0x35b   :  { %1132 = vmatprep.subr.mxu0 %v6671_v6  ;;  %1203 = vmatprep.subr.mxu1 %v6672_v61 }
 0x35c   :  { %1133 = vmatpush1.msra.mxu0 %v6673_v60  ;;  %1204 = vmatpush1.msra.mxu1 %v6698_v12 }
 0x35d   :  { %1134 = vmatprep.subr.mxu0 %v6699_v13  ;;  %1205 = vmatprep.subr.mxu1 %v6700_v14 }
 0x35e   :  { %1135 = vmatpush1.msra.mxu0 %v6701_v15  ;;  %1206 = vmatpush1.msra.mxu1 %v6702_v16 }
 0x35f   :  { %1136 = vmatprep.subr.mxu0 %v6703_v17  ;;  %1207 = vmatprep.subr.mxu1 %v6704_v19 }
 0x360   :  { %1137 = vmatpush1.msra.mxu0 %v6705_v20  ;;  %1208 = vmatpush1.msra.mxu1 %v6706_v21 }
 0x361   :  { %1138 = vmatprep.subr.mxu0 %v6707_v22  ;;  %1209 = vmatprep.subr.mxu1 %v6708_v23  ;;  %v6730_v22 = vld [vmem:[#allocation10_spill] sm:$0xff]  ;;  %v6731_v23 = vld [vmem:[#allocation11_spill] sm:$0xff] }
 0x362   :  { %1139 = vmatpush1.msra.mxu0 %v6709_v24  ;;  %1210 = vmatpush1.msra.mxu1 %v6710_v25  ;;  %v5058_v24 = vld [vmem:[#allocation3 + $0x120] sm:$0xff]  ;;  %v5061_v25 = vld [vmem:[#allocation3 + $0x130] sm:$0xff] }
 0x363   :  { %1140 = vmatprep.subr.mxu0 %v6711_v26  ;;  %1211 = vmatprep.subr.mxu1 %v6712_v28  ;;  %v5064_v26 = vld [vmem:[#allocation3 + $0x108] sm:$0xff]  ;;  %v5067_v28 = vld [vmem:[#allocation3 + $0x118] sm:$0xff] }
 0x364   :  { %1141 = vmatpush1.msra.mxu0 %v6713_v29  ;;  %1174 = vmatprep.mubr.f32.mxu0 %v6714_v30  ;;  %v5070_v29 = vld [vmem:[#allocation3 + $0x100] sm:$0xff] }
 0x365   :  { %1212 = vmatpush1.msra.mxu1 %v6715_v31  ;;  %1245 = vmatprep.mubr.f32.mxu1 %v6714_v30  ;;  %v5073_v31 = vld [vmem:[#allocation3 + $0x110] sm:$0xff] }
 0x366   :  { %1281 = vmatprep.subr.mxu0 %v4890_v32  ;;  %1352 = vmatprep.subr.mxu1 %v4893_v33 }
 0x405   :  { %v1005_v39 = vpop.f32.mrf.mxu0  ;;  %v1076_v47 = vpop.f32.mrf.mxu1 }
 0x406   :  { %v1081_v41 = vadd.f32 %v1005_v39, %v6725_v40  ;;  %v1083_v53 = vadd.f32 %v1076_v47, %v6728_v52  ;;  %v5079_v39 = vld [vmem:[#allocation3 + $0xf8] sm:$0xff]  ;;  %v5082_v40 = vld [vmem:[#allocation3 + $0xe0] sm:$0xff]  ;;  %v5100_v47 = vld [vmem:[#allocation3 + $0xa8] sm:$0xff] }
 0x407   :  { %v1007_v42 = vpop.f32.mrf.mxu0  ;;  %v1078_v49 = vpop.f32.mrf.mxu1  ;;  %v5115_v52 = vld [vmem:[#allocation3 + $0x98] sm:$0xff] }
 0x408   :  { %v3675_v43 = vmul.f32 -1.442695, %v1081_v41  ;;  %v1082_v46 = vadd.f32 %v1007_v42, %v6726_v44  ;;  %v1084_v51 = vadd.f32 %v1078_v49, %v6727_v50  ;;  %v5085_v41 = vld [vmem:[#allocation3 + $0xf0] sm:$0xff]  ;;  %v5088_v42 = vld [vmem:[#allocation3 + $0xc8] sm:$0xff]  ;;  %v5094_v44 = vld [vmem:[#allocation3 + $0xc0] sm:$0xff] }
 0x409   :  { %v5106_v49 = vld [vmem:[#allocation3 + $0xa0] sm:$0xff]  ;;  %v5109_v50 = vld [vmem:[#allocation3 + $0xb0] sm:$0xff] }
 0x40a   :  { %3822 = vpow2.f32 %v3675_v43  ;;  %v3676_v48 = vmul.f32 -1.442695, %v1082_v46  ;;  %v3677_v55 = vmul.f32 -1.442695, %v1084_v51  ;;  %v5091_v43 = vld [vmem:[#allocation3 + $0xd8] sm:$0xff]  ;;  %v5097_v46 = vld [vmem:[#allocation3 + $0xd0] sm:$0xff] }
 0x40b   :  { %v5112_v51 = vld [vmem:[#allocation3 + $0x88] sm:$0xff] }
 0x40c   :  { %3824 = vpow2.f32 %v3676_v48  ;;  %v5103_v48 = vld [vmem:[#allocation3 + $0xb8] sm:$0xff] }
 0x40d   :  { %3826 = vtanh.f32 %v1083_v53  ;;  %v5118_v53 = vld [vmem:[#allocation3 + $0x80] sm:$0xff] }
 0x40e   :  { %3828 = vpow2.f32 %v3677_v55  ;;  %v5121_v55 = vld [vmem:[#allocation3 + $0x90] sm:$0xff] }
 0x40f   :  { %6732 = vst [vmem:[#allocation36_spill] sm:$0xff] %v5121_v55 }
 0x417   :  { %v3823_v56 = vpop.eup %3822 }
 0x418   :  { %v1088_v57 = vadd.f32 1.0, %v3823_v56  ;;  %v5124_v56 = vld [vmem:[#allocation3 + $0x68] sm:$0xff] }
 0x419   :  { %v3825_v27 = vpop.eup %3824  ;;  %6733 = vst [vmem:[#allocation34_spill] sm:$0xff] %v5124_v56 }
 0x41a   :  { %3830 = vrcp.f32 %v1088_v57  ;;  %v1094_v6 = vadd.f32 1.0, %v3825_v27  ;;  %v3827_v61 = vpop.eup %3826  ;;  %v5127_v57 = vld [vmem:[#allocation3 + $0x78] sm:$0xff]  ;;  %v5130_v27 = vld [vmem:[#allocation3 + $0x60] sm:$0xff] }
 0x41b   :  { %v3829_v60 = vpop.eup %3828  ;;  %6734 = vst [vmem:[#allocation16_spill] sm:$0xff] %v5127_v57  ;;  %6735 = vst [vmem:[#allocation17_spill] sm:$0xff] %v5130_v27 }
 0x41c   :  { %3832 = vrcp.f32 %v1094_v6  ;;  %v1101_v15 = vadd.f32 1.0, %v3829_v60  ;;  %v5133_v6 = vld [vmem:[#allocation3 + $0x70] sm:$0xff]  ;;  %v5139_v60 = vld [vmem:[#allocation3 + $0x58] sm:$0xff] }
 0x41d   :  { %6736 = vst [vmem:[#allocation18_spill] sm:$0xff] %v5133_v6  ;;  %6738 = vst [vmem:[#allocation20_spill] sm:$0xff] %v5139_v60 }
 0x41e   :  { %3834 = vrcp.f32 %v1101_v15  ;;  %v5151_v15 = vld [vmem:[#allocation3 + $0x38] sm:$0xff] }
 0x41f   :  { %6742 = vst [vmem:[#allocation24_spill] sm:$0xff] %v5151_v15 }
 0x427   :  { %v3831_v12 = vpop.eup %3830 }
 0x428   :  { %v1105_v13 = vmul.f32 %v3831_v12, %v3827_v61  ;;  %v5136_v61 = vld [vmem:[#allocation3 + $0x48] sm:$0xff]  ;;  %v5142_v12 = vld [vmem:[#allocation3 + $0x40] sm:$0xff] }
 0x429   :  { %v3833_v14 = vpop.eup %3832  ;;  %6737 = vst [vmem:[#allocation19_spill] sm:$0xff] %v5136_v61  ;;  %6739 = vst [vmem:[#allocation21_spill] sm:$0xff] %v5142_v12 }
 0x42a   :  { %v1104_v16 = vmul.f32 %v3833_v14, %v4901_v8  ;;  %v5076_v8 = vld [vmem:[#allocation3 + $0xe8] sm:$0xff] }
 0x42b   :  { %v3835_v19 = vpop.eup %3834  ;;  %v5148_v14 = vld [vmem:[#allocation3 + $0x28] sm:$0xff] }
 0x42c   :  { %v5027_v17 = vadd.f32 %v1105_v13, %v1104_v16  ;;  %v5145_v13 = vld [vmem:[#allocation3 + $0x50] sm:$0xff]  ;;  %6741 = vst [vmem:[#allocation23_spill] sm:$0xff] %v5148_v14  ;;  %v5154_v16 = vld [vmem:[#allocation3 + $0x20] sm:$0xff] }
 0x42d   :  { %6740 = vst [vmem:[#allocation22_spill] sm:$0xff] %v5145_v13  ;;  %6743 = vst [vmem:[#allocation25_spill] sm:$0xff] %v5154_v16 }
 0x42e   :  { %3836 = vtanh.f32 %v5027_v17 }
 0x43b   :  { %v3837_v20 = vpop.eup %3836 }
 0x43c   :  { %v5030_v21 = vmul.f32 %v3837_v20, %v3835_v19  ;;  %v5157_v19 = vld [vmem:[#allocation3 + $0x30] sm:$0xff]  ;;  %v5160_v20 = vld [vmem:[#allocation3 + $0x8] sm:$0xff] }
 0x43d   :  { %6744 = vst [vmem:[#allocation26_spill] sm:$0xff] %v5157_v19  ;;  %6745 = vst [vmem:[#allocation27_spill] sm:$0xff] %v5160_v20 }
 0x43e   :  { %6729 = vst [vmem:[#allocation35_spill] sm:$0xff] %v5030_v21  ;;  %1175 = vmatmul.mubr.f32.vlgmr.msra.gmra.mxu0 %v5030_v21  ;;  %1246 = vmatmul.mubr.f32.vlgmr.msra.gmra.mxu1 %v5030_v21  ;;  %v5163_v21 = vld [vmem:[#allocation3 + $0x18] sm:$0xff] }
 0x43f   :  { %1282 = vmatpush1.msra.mxu0 %v4908_v36  ;;  %1353 = vmatpush1.msra.mxu1 %v4911_v0  ;;  %6746 = vst [vmem:[#allocation28_spill] sm:$0xff] %v5163_v21 }
 0x440   :  { %1283 = vmatprep.subr.mxu0 %v4914_v45  ;;  %1354 = vmatprep.subr.mxu1 %v4917_v3 }
 0x441   :  { %1284 = vmatpush1.msra.mxu0 %v4920_v1  ;;  %1355 = vmatpush1.msra.mxu1 %v4923_v63 }
 0x442   :  { %1285 = vmatprep.subr.mxu0 %v4926_v62  ;;  %1356 = vmatprep.subr.mxu1 %v4929_v10 }
 0x443   :  { %1286 = vmatpush1.msra.mxu0 %v4932_v9  ;;  %1357 = vmatpush1.msra.mxu1 %v4935_v4 }
 0x444   :  { %1287 = vmatprep.subr.mxu0 %v4938_v2  ;;  %1358 = vmatprep.subr.mxu1 %v4941_v18 }
 0x445   :  { %1288 = vmatpush1.msra.mxu0 %v4944_v54  ;;  %1359 = vmatpush1.msra.mxu1 %v4947_v34 }
 0x446   :  { %1289 = vmatprep.subr.mxu0 %v4950_v35  ;;  %1360 = vmatprep.subr.mxu1 %v4953_v37 }
 0x447   :  { %1290 = vmatpush1.msra.mxu0 %v6730_v22  ;;  %1361 = vmatpush1.msra.mxu1 %v6731_v23 }
 0x448   :  { %1291 = vmatprep.subr.mxu0 %v4962_v7  ;;  %1362 = vmatprep.subr.mxu1 %v4965_v58 }
 0x449   :  { %1292 = vmatpush1.msra.mxu0 %v4968_v59  ;;  %1363 = vmatpush1.msra.mxu1 %v4971_v5 }
 0x44a   :  { %1293 = vmatprep.subr.mxu0 %v4974_v38  ;;  %1364 = vmatprep.subr.mxu1 %v4977_v11 }
 0x44b   :  { %1294 = vmatpush1.msra.mxu0 %v5058_v24  ;;  %1365 = vmatpush1.msra.mxu1 %v5061_v25 }
 0x44c   :  { %1295 = vmatprep.subr.mxu0 %v5064_v26  ;;  %1366 = vmatprep.subr.mxu1 %v5067_v28 }
 0x44d   :  { %1296 = vmatpush1.msra.mxu0 %v5070_v29  ;;  %1367 = vmatpush1.msra.mxu1 %v5073_v31 }
 0x44e   :  { %1297 = vmatprep.subr.mxu0 %v5076_v8  ;;  %1368 = vmatprep.subr.mxu1 %v5079_v39 }
 0x44f   :  { %1298 = vmatpush1.msra.mxu0 %v5082_v40  ;;  %1369 = vmatpush1.msra.mxu1 %v5085_v41 }
 0x450   :  { %1299 = vmatprep.subr.mxu0 %v5088_v42  ;;  %1370 = vmatprep.subr.mxu1 %v5091_v43 }
 0x451   :  { %1300 = vmatpush1.msra.mxu0 %v5094_v44  ;;  %1371 = vmatpush1.msra.mxu1 %v5097_v46 }
 0x452   :  { %1301 = vmatprep.subr.mxu0 %v5100_v47  ;;  %1372 = vmatprep.subr.mxu1 %v5103_v48 }
 0x453   :  { %1302 = vmatpush1.msra.mxu0 %v5106_v49  ;;  %1373 = vmatpush1.msra.mxu1 %v5109_v50 }
 0x454   :  { %1303 = vmatprep.subr.mxu0 %v5112_v51  ;;  %1374 = vmatprep.subr.mxu1 %v5115_v52 }
 0x455   :  { %1304 = vmatpush1.msra.mxu0 %v5118_v53  ;;  %1375 = vmatpush1.msra.mxu1 %v5121_v55 }
 0x456   :  { %1305 = vmatprep.subr.mxu0 %v5124_v56  ;;  %1376 = vmatprep.subr.mxu1 %v5127_v57  ;;  %v6752_v57 = vld [vmem:[#allocation46_spill] sm:$0xff] }
 0x457   :  { %1306 = vmatpush1.msra.mxu0 %v5130_v27  ;;  %1377 = vmatpush1.msra.mxu1 %v5133_v6  ;;  %v6751_v27 = vld [vmem:[#allocation48_spill] sm:$0xff] }
 0x458   :  { %1307 = vmatprep.subr.mxu0 %v5136_v61  ;;  %1378 = vmatprep.subr.mxu1 %v5139_v60 }
 0x459   :  { %1308 = vmatpush1.msra.mxu0 %v5142_v12  ;;  %1379 = vmatpush1.msra.mxu1 %v5145_v13  ;;  %v6750_v12 = vld [vmem:[#allocation47_spill] sm:$0xff] }
 0x45a   :  { %1309 = vmatprep.subr.mxu0 %v5148_v14  ;;  %1380 = vmatprep.subr.mxu1 %v5151_v15  ;;  %v5166_v14 = vld [vmem:[#allocation3] sm:$0xff]  ;;  %v5170_v15 = vld [vmem:[#allocation3 + $0x10] sm:$0xff] }
 0x45b   :  { %1310 = vmatpush1.msra.mxu0 %v5154_v16  ;;  %1381 = vmatpush1.msra.mxu1 %v5157_v19  ;;  %6747 = vst [vmem:[#allocation29_spill] sm:$0xff] %v5166_v14  ;;  %6748 = vst [vmem:[#allocation30_spill] sm:$0xff] %v5170_v15  ;;  %v6749_v19 = vld [vmem:[#allocation45_spill] sm:$0xff] }
 0x45c   :  { %1311 = vmatprep.subr.mxu0 %v5160_v20  ;;  %1382 = vmatprep.subr.mxu1 %v5163_v21 }
 0x45d   :  { %1312 = vmatpush1.msra.mxu0 %v5166_v14  ;;  %1345 = vmatprep.mubr.f32.mxu0 %v6714_v30 }
 0x45e   :  { %1383 = vmatpush1.msra.mxu1 %v5170_v15  ;;  %1416 = vmatprep.mubr.f32.mxu1 %v6714_v30 }
 0x45f   :  { %1452 = vmatprep.subr.mxu0 %v4890_v32  ;;  %1523 = vmatprep.subr.mxu1 %v4893_v33 }
 0x4fe   :  { %v1176_v20 = vpop.f32.mrf.mxu0  ;;  %v1247_v14 = vpop.f32.mrf.mxu1 }
 0x4ff   :  { %v1252_v16 = vadd.f32 %v1176_v20, %v6749_v19  ;;  %v1254_v30 = vadd.f32 %v1247_v14, %v6752_v57  ;;  %v6759_v14 = vld [vmem:[#allocation19_spill] sm:$0xff] }
 0x500   :  { %v1178_v21 = vpop.f32.mrf.mxu0  ;;  %v1249_v6 = vpop.f32.mrf.mxu1 }
 0x501   :  { %v3678_v13 = vmul.f32 -1.442695, %v1252_v16  ;;  %v1253_v60 = vadd.f32 %v1178_v21, %v6750_v12  ;;  %v1255_v15 = vadd.f32 %v1249_v6, %v6751_v27  ;;  %v6758_v6 = vld [vmem:[#allocation18_spill] sm:$0xff] }
 0x503   :  { %3838 = vpow2.f32 %v3678_v13  ;;  %v3679_v61 = vmul.f32 -1.442695, %v1253_v60  ;;  %v3680_v56 = vmul.f32 -1.442695, %v1255_v15  ;;  %v6760_v15 = vld [vmem:[#allocation20_spill] sm:$0xff] }
 0x505   :  { %3840 = vpow2.f32 %v3679_v61 }
 0x506   :  { %3842 = vtanh.f32 %v1254_v30 }
 0x507   :  { %3844 = vpow2.f32 %v3680_v56  ;;  %v6757_v56 = vld [vmem:[#allocation17_spill] sm:$0xff] }
 0x510   :  { %v3839_v32 = vpop.eup %3838 }
 0x511   :  { %v1259_v55 = vadd.f32 1.0, %v3839_v32 }
 0x512   :  { %v3841_v33 = vpop.eup %3840 }
 0x513   :  { %3846 = vrcp.f32 %v1259_v55  ;;  %v1265_v19 = vadd.f32 1.0, %v3841_v33  ;;  %v3843_v16 = vpop.eup %3842  ;;  %v6754_v33 = vld [vmem:[#allocation36_spill] sm:$0xff] }
 0x514   :  { %v3845_v21 = vpop.eup %3844  ;;  %v6756_v55 = vld [vmem:[#allocation16_spill] sm:$0xff] }
 0x515   :  { %3848 = vrcp.f32 %v1265_v19  ;;  %v1272_v61 = vadd.f32 1.0, %v3845_v21  ;;  %v6761_v19 = vld [vmem:[#allocation21_spill] sm:$0xff]  ;;  %v6763_v21 = vld [vmem:[#allocation23_spill] sm:$0xff] }
 0x517   :  { %3850 = vrcp.f32 %v1272_v61  ;;  %v6767_v61 = vld [vmem:[#allocation27_spill] sm:$0xff] }
 0x520   :  { %v3847_v12 = vpop.eup %3846 }
 0x521   :  { %v1276_v13 = vmul.f32 %v3847_v12, %v3843_v16  ;;  %v6762_v16 = vld [vmem:[#allocation22_spill] sm:$0xff]  ;;  %v6764_v12 = vld [vmem:[#allocation24_spill] sm:$0xff] }
 0x522   :  { %v3849_v60 = vpop.eup %3848 }
 0x523   :  { %v1275_v20 = vmul.f32 %v3849_v60, %v5027_v17  ;;  %v6755_v17 = vld [vmem:[#allocation34_spill] sm:$0xff] }
 0x524   :  { %v3851_v32 = vpop.eup %3850  ;;  %v6766_v60 = vld [vmem:[#allocation26_spill] sm:$0xff] }
 0x525   :  { %v5181_v27 = vadd.f32 %v1276_v13, %v1275_v20  ;;  %v6765_v13 = vld [vmem:[#allocation25_spill] sm:$0xff]  ;;  %v6768_v20 = vld [vmem:[#allocation28_spill] sm:$0xff] }
 0x527   :  { %3852 = vtanh.f32 %v5181_v27 }
 0x534   :  { %v3853_v30 = vpop.eup %3852 }
 0x535   :  { %v5184_v57 = vmul.f32 %v3853_v30, %v3851_v32  ;;  %v6769_v32 = vld [vmem:[#allocation29_spill] sm:$0xff]  ;;  %v6770_v30 = vmov 0.0  }
 0x537   :  { %6753 = vst [vmem:[#allocation31_spill] sm:$0xff] %v5184_v57  ;;  %1346 = vmatmul.mubr.f32.vlgmr.msra.gmra.mxu0 %v5184_v57  ;;  %1417 = vmatmul.mubr.f32.vlgmr.msra.gmra.mxu1 %v5184_v57  ;;  %v6771_v57 = vld [vmem:[#allocation30_spill] sm:$0xff] }
 0x538   :  { %1453 = vmatpush1.msra.mxu0 %v4908_v36  ;;  %1524 = vmatpush1.msra.mxu1 %v4911_v0 }
 0x539   :  { %1454 = vmatprep.subr.mxu0 %v4914_v45  ;;  %1525 = vmatprep.subr.mxu1 %v4917_v3 }
 0x53a   :  { %1455 = vmatpush1.msra.mxu0 %v4920_v1  ;;  %1526 = vmatpush1.msra.mxu1 %v4923_v63 }
 0x53b   :  { %1456 = vmatprep.subr.mxu0 %v4926_v62  ;;  %1527 = vmatprep.subr.mxu1 %v4929_v10 }
 0x53c   :  { %1457 = vmatpush1.msra.mxu0 %v4932_v9  ;;  %1528 = vmatpush1.msra.mxu1 %v4935_v4 }
 0x53d   :  { %1458 = vmatprep.subr.mxu0 %v4938_v2  ;;  %1529 = vmatprep.subr.mxu1 %v4941_v18 }
 0x53e   :  { %1459 = vmatpush1.msra.mxu0 %v4944_v54  ;;  %1530 = vmatpush1.msra.mxu1 %v4947_v34 }
 0x53f   :  { %1460 = vmatprep.subr.mxu0 %v4950_v35  ;;  %1531 = vmatprep.subr.mxu1 %v4953_v37 }
 0x540   :  { %1461 = vmatpush1.msra.mxu0 %v6730_v22  ;;  %1532 = vmatpush1.msra.mxu1 %v6731_v23 }
 0x541   :  { %1462 = vmatprep.subr.mxu0 %v4962_v7  ;;  %1533 = vmatprep.subr.mxu1 %v4965_v58 }
 0x542   :  { %1463 = vmatpush1.msra.mxu0 %v4968_v59  ;;  %1534 = vmatpush1.msra.mxu1 %v4971_v5 }
 0x543   :  { %1464 = vmatprep.subr.mxu0 %v4974_v38  ;;  %1535 = vmatprep.subr.mxu1 %v4977_v11 }
 0x544   :  { %1465 = vmatpush1.msra.mxu0 %v5058_v24  ;;  %1536 = vmatpush1.msra.mxu1 %v5061_v25 }
 0x545   :  { %1466 = vmatprep.subr.mxu0 %v5064_v26  ;;  %1537 = vmatprep.subr.mxu1 %v5067_v28 }
 0x546   :  { %1467 = vmatpush1.msra.mxu0 %v5070_v29  ;;  %1538 = vmatpush1.msra.mxu1 %v5073_v31 }
 0x547   :  { %1468 = vmatprep.subr.mxu0 %v5076_v8  ;;  %1539 = vmatprep.subr.mxu1 %v5079_v39 }
 0x548   :  { %1469 = vmatpush1.msra.mxu0 %v5082_v40  ;;  %1540 = vmatpush1.msra.mxu1 %v5085_v41 }
 0x549   :  { %1470 = vmatprep.subr.mxu0 %v5088_v42  ;;  %1541 = vmatprep.subr.mxu1 %v5091_v43 }
 0x54a   :  { %1471 = vmatpush1.msra.mxu0 %v5094_v44  ;;  %1542 = vmatpush1.msra.mxu1 %v5097_v46 }
 0x54b   :  { %1472 = vmatprep.subr.mxu0 %v5100_v47  ;;  %1543 = vmatprep.subr.mxu1 %v5103_v48 }
 0x54c   :  { %1473 = vmatpush1.msra.mxu0 %v5106_v49  ;;  %1544 = vmatpush1.msra.mxu1 %v5109_v50 }
 0x54d   :  { %1474 = vmatprep.subr.mxu0 %v5112_v51  ;;  %1545 = vmatprep.subr.mxu1 %v5115_v52 }
 0x54e   :  { %1475 = vmatpush1.msra.mxu0 %v5118_v53  ;;  %1546 = vmatpush1.msra.mxu1 %v6754_v33 }
 0x54f   :  { %1476 = vmatprep.subr.mxu0 %v6755_v17  ;;  %1547 = vmatprep.subr.mxu1 %v6756_v55  ;;  %v6777_v55 = vld [vmem:[#allocation50_spill] sm:$0xff] }
 0x550   :  { %1477 = vmatpush1.msra.mxu0 %v6757_v56  ;;  %1548 = vmatpush1.msra.mxu1 %v6758_v6  ;;  %v6776_v56 = vld [vmem:[#allocation52_spill] sm:$0xff] }
 0x551   :  { %1478 = vmatprep.subr.mxu0 %v6759_v14  ;;  %1549 = vmatprep.subr.mxu1 %v6760_v15 }
 0x552   :  { %1479 = vmatpush1.msra.mxu0 %v6761_v19  ;;  %1550 = vmatpush1.msra.mxu1 %v6762_v16  ;;  %v6772_v16 = vld [vmem:[#allocation13_spill] sm:$0xff] }
 0x553   :  { %1480 = vmatprep.subr.mxu0 %v6763_v21  ;;  %1551 = vmatprep.subr.mxu1 %v6764_v12  ;;  %v6773_v21 = vld [vmem:[#allocation14_spill] sm:$0xff] }
 0x554   :  { %1481 = vmatpush1.msra.mxu0 %v6765_v13  ;;  %1552 = vmatpush1.msra.mxu1 %v6766_v60  ;;  %v6774_v13 = vld [vmem:[#allocation49_spill] sm:$0xff] }
 0x555   :  { %1482 = vmatprep.subr.mxu0 %v6767_v61  ;;  %1553 = vmatprep.subr.mxu1 %v6768_v20  ;;  %v6775_v61 = vld [vmem:[#allocation51_spill] sm:$0xff] }
 0x556   :  { %1483 = vmatpush1.msra.mxu0 %v6769_v32  ;;  %1516 = vmatprep.mubr.f32.mxu0 %v6770_v30 }
 0x557   :  { %1554 = vmatpush1.msra.mxu1 %v6771_v57  ;;  %1587 = vmatprep.mubr.f32.mxu1 %v6770_v30 }
 0x558   :  { %1623 = vmatprep.subr.mxu0 %v6772_v16  ;;  %1694 = vmatprep.subr.mxu1 %v6773_v21 }
 0x5f7   :  { %v1347_v12 = vpop.f32.mrf.mxu0  ;;  %v1418_v20 = vpop.f32.mrf.mxu1 }
 0x5f8   :  { %v1423_v19 = vadd.f32 %v1347_v12, %v6774_v13  ;;  %v1425_v30 = vadd.f32 %v1418_v20, %v6777_v55 }
 0x5f9   :  { %v1349_v60 = vpop.f32.mrf.mxu0  ;;  %v1420_v6 = vpop.f32.mrf.mxu1 }
 0x5fa   :  { %v3681_v15 = vmul.f32 -1.442695, %v1423_v19  ;;  %v1424_v14 = vadd.f32 %v1349_v60, %v6775_v61  ;;  %v1426_v57 = vadd.f32 %v1420_v6, %v6776_v56 }
 0x5fc   :  { %3854 = vpow2.f32 %v3681_v15  ;;  %v3682_v32 = vmul.f32 -1.442695, %v1424_v14  ;;  %v3683_v17 = vmul.f32 -1.442695, %v1426_v57 }
 0x5fe   :  { %3856 = vpow2.f32 %v3682_v32 }
 0x5ff   :  { %3858 = vtanh.f32 %v1425_v30 }
 0x600   :  { %3860 = vpow2.f32 %v3683_v17 }
 0x609   :  { %v3855_v16 = vpop.eup %3854 }
 0x60a   :  { %v1430_v33 = vadd.f32 1.0, %v3855_v16  ;;  %v1862_v16 = vld [vmem:[#allocation5 + $0x1e0] sm:$0xff] }
 0x60b   :  { %v3857_v21 = vpop.eup %3856 }
 0x60c   :  { %3862 = vrcp.f32 %v1430_v33  ;;  %v1436_v12 = vadd.f32 1.0, %v3857_v21  ;;  %v3859_v19 = vpop.eup %3858  ;;  %v1864_v21 = vld [vmem:[#allocation5 + $0x1f0] sm:$0xff] }
 0x60d   :  { %v3861_v13 = vpop.eup %3860 }
 0x60e   :  { %3864 = vrcp.f32 %v1436_v12  ;;  %v1443_v61 = vadd.f32 1.0, %v3861_v13  ;;  %v1859_v12 = vld [vmem:[#allocation5 + $0x1c8] sm:$0xff]  ;;  %v1858_v13 = vld [vmem:[#allocation5 + $0x1c0] sm:$0xff] }
 0x610   :  { %3866 = vrcp.f32 %v1443_v61  ;;  %v1854_v61 = vld [vmem:[#allocation5 + $0x1a0] sm:$0xff] }
 0x619   :  { %v3863_v15 = vpop.eup %3862 }
 0x61a   :  { %v1447_v60 = vmul.f32 %v3863_v15, %v3859_v19  ;;  %v1861_v19 = vld [vmem:[#allocation5 + $0x1d8] sm:$0xff]  ;;  %v1860_v15 = vld [vmem:[#allocation5 + $0x1d0] sm:$0xff] }
 0x61b   :  { %v3865_v14 = vpop.eup %3864 }
 0x61c   :  { %v1446_v32 = vmul.f32 %v3865_v14, %v5181_v27  ;;  %v1857_v14 = vld [vmem:[#allocation5 + $0x1b8] sm:$0xff] }
 0x61d   :  { %v3867_v57 = vpop.eup %3866 }
 0x61e   :  { %v5259_v56 = vadd.f32 %v1447_v60, %v1446_v32  ;;  %v1855_v60 = vld [vmem:[#allocation5 + $0x1a8] sm:$0xff]  ;;  %v1856_v32 = vld [vmem:[#allocation5 + $0x1b0] sm:$0xff] }
 0x620   :  { %3868 = vtanh.f32 %v5259_v56 }
 0x62d   :  { %v3869_v55 = vpop.eup %3868 }
 0x62e   :  { %v5262_v6 = vmul.f32 %v3869_v55, %v3867_v57  ;;  %v1853_v57 = vld [vmem:[#allocation5 + $0x198] sm:$0xff]  ;;  %v1850_v55 = vld [vmem:[#allocation5 + $0x180] sm:$0xff] }
 0x630   :  { %1517 = vmatmul.mubr.f32.vlgmr.msra.gmra.mxu0 %v5262_v6  ;;  %1588 = vmatmul.mubr.f32.vlgmr.msra.gmra.mxu1 %v5262_v6 }
 0x631   :  { %1624 = vmatpush1.msra.mxu0 %v4908_v36  ;;  %1695 = vmatpush1.msra.mxu1 %v4911_v0  ;;  %v6780_v36 = vld [vmem:[#allocation16_spill] sm:$0xff]  ;;  %v6781_v0 = vld [vmem:[#allocation17_spill] sm:$0xff] }
 0x632   :  { %1625 = vmatprep.subr.mxu0 %v4914_v45  ;;  %1696 = vmatprep.subr.mxu1 %v4917_v3  ;;  %v6782_v45 = vld [vmem:[#allocation18_spill] sm:$0xff]  ;;  %v6783_v3 = vld [vmem:[#allocation19_spill] sm:$0xff] }
 0x633   :  { %1626 = vmatpush1.msra.mxu0 %v4920_v1  ;;  %1697 = vmatpush1.msra.mxu1 %v4923_v63  ;;  %v6784_v1 = vld [vmem:[#allocation20_spill] sm:$0xff]  ;;  %v6785_v63 = vld [vmem:[#allocation21_spill] sm:$0xff] }
 0x634   :  { %1627 = vmatprep.subr.mxu0 %v4926_v62  ;;  %1698 = vmatprep.subr.mxu1 %v4929_v10  ;;  %v6786_v62 = vld [vmem:[#allocation22_spill] sm:$0xff]  ;;  %v6787_v10 = vld [vmem:[#allocation23_spill] sm:$0xff] }
 0x635   :  { %1628 = vmatpush1.msra.mxu0 %v4932_v9  ;;  %1699 = vmatpush1.msra.mxu1 %v4935_v4  ;;  %v6788_v9 = vld [vmem:[#allocation24_spill] sm:$0xff]  ;;  %v6789_v4 = vld [vmem:[#allocation25_spill] sm:$0xff] }
 0x636   :  { %1629 = vmatprep.subr.mxu0 %v4938_v2  ;;  %1700 = vmatprep.subr.mxu1 %v4941_v18  ;;  %v6790_v2 = vld [vmem:[#allocation26_spill] sm:$0xff]  ;;  %v6791_v18 = vld [vmem:[#allocation27_spill] sm:$0xff] }
 0x637   :  { %1630 = vmatpush1.msra.mxu0 %v4944_v54  ;;  %1701 = vmatpush1.msra.mxu1 %v4947_v34  ;;  %v6792_v54 = vld [vmem:[#allocation28_spill] sm:$0xff]  ;;  %v6793_v34 = vld [vmem:[#allocation29_spill] sm:$0xff] }
 0x638   :  { %1631 = vmatprep.subr.mxu0 %v4950_v35  ;;  %1702 = vmatprep.subr.mxu1 %v4953_v37  ;;  %v6794_v35 = vld [vmem:[#allocation30_spill] sm:$0xff]  ;;  %v6795_v37 = vmov 0.0  }
 0x639   :  { %1632 = vmatpush1.msra.mxu0 %v6730_v22  ;;  %1703 = vmatpush1.msra.mxu1 %v6731_v23 }
 0x63a   :  { %1633 = vmatprep.subr.mxu0 %v4962_v7  ;;  %1704 = vmatprep.subr.mxu1 %v4965_v58  ;;  %v6796_v58 = vld [vmem:[#allocation53_spill] sm:$0xff] }
 0x63b   :  { %1634 = vmatpush1.msra.mxu0 %v4968_v59  ;;  %1705 = vmatpush1.msra.mxu1 %v4971_v5  ;;  %v6778_v5 = vld [vmem:[#allocation36_spill] sm:$0xff]  ;;  %v6779_v59 = vld [vmem:[#allocation34_spill] sm:$0xff] }
 0x63c   :  { %1635 = vmatprep.subr.mxu0 %v4974_v38  ;;  %1706 = vmatprep.subr.mxu1 %v4977_v11  ;;  %v1863_v38 = vld [vmem:[#allocation5 + $0x1e8] sm:$0xff]  ;;  %v1865_v11 = vld [vmem:[#allocation5 + $0x1f8] sm:$0xff] }
 0x63d   :  { %1636 = vmatpush1.msra.mxu0 %v5058_v24  ;;  %1707 = vmatpush1.msra.mxu1 %v5061_v25  ;;  %v6797_v25 = vld [vmem:[#allocation55_spill] sm:$0xff] }
 0x63e   :  { %1637 = vmatprep.subr.mxu0 %v5064_v26  ;;  %1708 = vmatprep.subr.mxu1 %v5067_v28 }
 0x63f   :  { %1638 = vmatpush1.msra.mxu0 %v5070_v29  ;;  %1709 = vmatpush1.msra.mxu1 %v5073_v31 }
 0x640   :  { %1639 = vmatprep.subr.mxu0 %v5076_v8  ;;  %1710 = vmatprep.subr.mxu1 %v5079_v39  ;;  %v6798_v8 = vld [vmem:[#allocation56_spill] sm:$0xff] }
 0x641   :  { %1640 = vmatpush1.msra.mxu0 %v5082_v40  ;;  %1711 = vmatpush1.msra.mxu1 %v5085_v41  ;;  %v6799_v40 = vld [vmem:[#allocation54_spill] sm:$0xff] }
 0x642   :  { %1641 = vmatprep.subr.mxu0 %v5088_v42  ;;  %1712 = vmatprep.subr.mxu1 %v5091_v43 }
 0x643   :  { %1642 = vmatpush1.msra.mxu0 %v5094_v44  ;;  %1713 = vmatpush1.msra.mxu1 %v5097_v46 }
 0x644   :  { %1643 = vmatprep.subr.mxu0 %v5100_v47  ;;  %1714 = vmatprep.subr.mxu1 %v5103_v48 }
 0x645   :  { %1644 = vmatpush1.msra.mxu0 %v5106_v49  ;;  %1715 = vmatpush1.msra.mxu1 %v5109_v50 }
 0x646   :  { %1645 = vmatprep.subr.mxu0 %v5112_v51  ;;  %1716 = vmatprep.subr.mxu1 %v5115_v52 }
 0x647   :  { %1646 = vmatpush1.msra.mxu0 %v5118_v53  ;;  %1717 = vmatpush1.msra.mxu1 %v6778_v5  ;;  %v1852_v5 = vld [vmem:[#allocation5 + $0x190] sm:$0xff] }
 0x648   :  { %1647 = vmatprep.subr.mxu0 %v6779_v59  ;;  %1718 = vmatprep.subr.mxu1 %v6780_v36  ;;  %v1847_v59 = vld [vmem:[#allocation5 + $0x168] sm:$0xff]  ;;  %v1849_v36 = vld [vmem:[#allocation5 + $0x178] sm:$0xff] }
 0x649   :  { %1648 = vmatpush1.msra.mxu0 %v6781_v0  ;;  %1719 = vmatpush1.msra.mxu1 %v6782_v45  ;;  %v1846_v0 = vld [vmem:[#allocation5 + $0x160] sm:$0xff]  ;;  %v1848_v45 = vld [vmem:[#allocation5 + $0x170] sm:$0xff] }
 0x64a   :  { %1649 = vmatprep.subr.mxu0 %v6783_v3  ;;  %1720 = vmatprep.subr.mxu1 %v6784_v1  ;;  %v1843_v3 = vld [vmem:[#allocation5 + $0x148] sm:$0xff]  ;;  %v1845_v1 = vld [vmem:[#allocation5 + $0x158] sm:$0xff] }
 0x64b   :  { %1650 = vmatpush1.msra.mxu0 %v6785_v63  ;;  %1721 = vmatpush1.msra.mxu1 %v6786_v62  ;;  %v1842_v63 = vld [vmem:[#allocation5 + $0x140] sm:$0xff]  ;;  %v1844_v62 = vld [vmem:[#allocation5 + $0x150] sm:$0xff] }
 0x64c   :  { %1651 = vmatprep.subr.mxu0 %v6787_v10  ;;  %1722 = vmatprep.subr.mxu1 %v6788_v9  ;;  %v1839_v10 = vld [vmem:[#allocation5 + $0x128] sm:$0xff]  ;;  %v1841_v9 = vld [vmem:[#allocation5 + $0x138] sm:$0xff] }
 0x64d   :  { %1652 = vmatpush1.msra.mxu0 %v6789_v4  ;;  %1723 = vmatpush1.msra.mxu1 %v6790_v2  ;;  %v1838_v4 = vld [vmem:[#allocation5 + $0x120] sm:$0xff]  ;;  %v1840_v2 = vld [vmem:[#allocation5 + $0x130] sm:$0xff] }
 0x64e   :  { %1653 = vmatprep.subr.mxu0 %v6791_v18  ;;  %1724 = vmatprep.subr.mxu1 %v6792_v54  ;;  %v1835_v18 = vld [vmem:[#allocation5 + $0x108] sm:$0xff]  ;;  %v1837_v54 = vld [vmem:[#allocation5 + $0x118] sm:$0xff] }
 0x64f   :  { %1654 = vmatpush1.msra.mxu0 %v6793_v34  ;;  %1725 = vmatpush1.msra.mxu1 %v6794_v35  ;;  %v1834_v34 = vld [vmem:[#allocation5 + $0x100] sm:$0xff]  ;;  %v1836_v35 = vld [vmem:[#allocation5 + $0x110] sm:$0xff] }
 0x650   :  { %1687 = vmatprep.mubr.f32.mxu0 %v6795_v37  ;;  %1758 = vmatprep.mubr.f32.mxu1 %v6795_v37 }
 0x651   :  { %1888 = vmatprep.subr.mxu0 %v1863_v38  ;;  %2001 = vmatprep.subr.mxu1 %v1865_v11  ;;  %v1831_v38 = vld [vmem:[#allocation5 + $0xe8] sm:$0xff]  ;;  %v1833_v11 = vld [vmem:[#allocation5 + $0xf8] sm:$0xff] }
 0x6f0   :  { %v1518_v7 = vpop.f32.mrf.mxu0  ;;  %v1589_v28 = vpop.f32.mrf.mxu1 }
 0x6f1   :  { %v1594_v22 = vadd.f32 %v1518_v7, %v6796_v58  ;;  %v1596_v41 = vadd.f32 %v1589_v28, %v6799_v40  ;;  %v1830_v7 = vld [vmem:[#allocation5 + $0xe0] sm:$0xff]  ;;  %v1832_v58 = vld [vmem:[#allocation5 + $0xf0] sm:$0xff]  ;;  %v1825_v28 = vld [vmem:[#allocation5 + $0xb8] sm:$0xff] }
 0x6f2   :  { %v1520_v23 = vpop.f32.mrf.mxu0  ;;  %v1591_v31 = vpop.f32.mrf.mxu1  ;;  %v1818_v40 = vld [vmem:[#allocation5 + $0x80] sm:$0xff] }
 0x6f3   :  { %v3684_v24 = vmul.f32 -1.442695, %v1594_v22  ;;  %v1595_v26 = vadd.f32 %v1520_v23, %v6797_v25  ;;  %v1597_v39 = vadd.f32 %v1591_v31, %v6798_v8  ;;  %v1827_v22 = vld [vmem:[#allocation5 + $0xc8] sm:$0xff]  ;;  %v1829_v23 = vld [vmem:[#allocation5 + $0xd8] sm:$0xff]  ;;  %v1828_v25 = vld [vmem:[#allocation5 + $0xd0] sm:$0xff] }
 0x6f4   :  { %v1824_v31 = vld [vmem:[#allocation5 + $0xb0] sm:$0xff]  ;;  %v1819_v8 = vld [vmem:[#allocation5 + $0x88] sm:$0xff] }
 0x6f5   :  { %3870 = vpow2.f32 %v3684_v24  ;;  %v3685_v29 = vmul.f32 -1.442695, %v1595_v26  ;;  %v3686_v42 = vmul.f32 -1.442695, %v1597_v39  ;;  %v1826_v24 = vld [vmem:[#allocation5 + $0xc0] sm:$0xff]  ;;  %v1823_v26 = vld [vmem:[#allocation5 + $0xa8] sm:$0xff] }
 0x6f6   :  { %v1821_v39 = vld [vmem:[#allocation5 + $0x98] sm:$0xff] }
 0x6f7   :  { %3872 = vpow2.f32 %v3685_v29  ;;  %v1822_v29 = vld [vmem:[#allocation5 + $0xa0] sm:$0xff] }
 0x6f8   :  { %3874 = vtanh.f32 %v1596_v41  ;;  %v1820_v41 = vld [vmem:[#allocation5 + $0x90] sm:$0xff] }
 0x6f9   :  { %3876 = vpow2.f32 %v3686_v42  ;;  %v1815_v42 = vld [vmem:[#allocation5 + $0x68] sm:$0xff] }
 0x702   :  { %v3871_v43 = vpop.eup %3870 }
 0x703   :  { %v1601_v44 = vadd.f32 1.0, %v3871_v43  ;;  %v1817_v43 = vld [vmem:[#allocation5 + $0x78] sm:$0xff] }
 0x704   :  { %v3873_v46 = vpop.eup %3872 }
 0x705   :  { %3878 = vrcp.f32 %v1601_v44  ;;  %v1607_v47 = vadd.f32 1.0, %v3873_v46  ;;  %v3875_v48 = vpop.eup %3874  ;;  %v1814_v44 = vld [vmem:[#allocation5 + $0x60] sm:$0xff]  ;;  %v1816_v46 = vld [vmem:[#allocation5 + $0x70] sm:$0xff] }
 0x706   :  { %v3877_v49 = vpop.eup %3876 }
 0x707   :  { %3880 = vrcp.f32 %v1607_v47  ;;  %v1614_v53 = vadd.f32 1.0, %v3877_v49  ;;  %v1811_v47 = vld [vmem:[#allocation5 + $0x48] sm:$0xff]  ;;  %v1810_v49 = vld [vmem:[#allocation5 + $0x40] sm:$0xff] }
 0x709   :  { %3882 = vrcp.f32 %v1614_v53  ;;  %v1806_v53 = vld [vmem:[#allocation5 + $0x20] sm:$0xff] }
 0x712   :  { %v3879_v50 = vpop.eup %3878 }
 0x713   :  { %v1618_v51 = vmul.f32 %v3879_v50, %v3875_v48  ;;  %v1813_v48 = vld [vmem:[#allocation5 + $0x58] sm:$0xff]  ;;  %v1812_v50 = vld [vmem:[#allocation5 + $0x50] sm:$0xff] }
 0x714   :  { %v3881_v52 = vpop.eup %3880 }
 0x715   :  { %v1617_v27 = vmul.f32 %v3881_v52, %v5259_v56  ;;  %v1851_v56 = vld [vmem:[#allocation5 + $0x188] sm:$0xff]  ;;  %v1809_v52 = vld [vmem:[#allocation5 + $0x38] sm:$0xff] }
 0x716   :  { %v3883_v17 = vpop.eup %3882 }
 0x717   :  { %v5335_v33 = vadd.f32 %v1618_v51, %v1617_v27  ;;  %v1807_v51 = vld [vmem:[#allocation5 + $0x28] sm:$0xff]  ;;  %v1808_v27 = vld [vmem:[#allocation5 + $0x30] sm:$0xff] }
 0x719   :  { %3884 = vtanh.f32 %v5335_v33 }
 0x726   :  { %v3885_v20 = vpop.eup %3884 }
 0x727   :  { %v5338_v30 = vmul.f32 %v3885_v20, %v3883_v17  ;;  %v1803_v17 = vld [vmem:[#allocation5 + $0x8] sm:$0xff]  ;;  %v1805_v20 = vld [vmem:[#allocation5 + $0x18] sm:$0xff] }
 0x729   :  { %1688 = vmatmul.mubr.f32.vlgmr.msra.gmra.mxu0 %v5338_v30  ;;  %1759 = vmatmul.mubr.f32.vlgmr.msra.gmra.mxu1 %v5338_v30 }
 0x72a   :  { %1889 = vmatpush1.msra.mxu0 %v1862_v16  ;;  %2002 = vmatpush1.msra.mxu1 %v1864_v21  ;;  %v1802_v16 = vld [vmem:[#allocation5] sm:$0xff]  ;;  %v1804_v21 = vld [vmem:[#allocation5 + $0x10] sm:$0xff] }
 0x72b   :  { %1890 = vmatprep.subr.mxu0 %v1859_v12  ;;  %2003 = vmatprep.subr.mxu1 %v1861_v19  ;;  %v6800_v12 = vld [vmem:[#allocation61_spill] sm:$0xff]  ;;  %v6801_v19 = vld [vmem:[#allocation12_spill] sm:$0xff] }
 0x72c   :  { %1891 = vmatpush1.msra.mxu0 %v1858_v13  ;;  %2004 = vmatpush1.msra.mxu1 %v1860_v15  ;;  %v6802_v13 = vld [vmem:[#allocation15_spill] sm:$0xff] }
 0x72d   :  { %1892 = vmatprep.subr.mxu0 %v1855_v60  ;;  %2005 = vmatprep.subr.mxu1 %v1857_v14  ;;  %v6803_v15 = vld [vmem:[#allocation35_spill] sm:$0xff] }
 0x72e   :  { %1893 = vmatpush1.msra.mxu0 %v1854_v61  ;;  %2006 = vmatpush1.msra.mxu1 %v1856_v32  ;;  %v6804_v60 = vld [vmem:[#allocation31_spill] sm:$0xff]  ;;  %v5374_v61 = vld [vmem:[#allocation7 + $0x1f8] sm:$0xff]  ;;  %v5380_v32 = vld [vmem:[#allocation7 + $0x1f0] sm:$0xff] }
 0x72f   :  { %1894 = vmatprep.subr.mxu0 %v1851_v56  ;;  %2007 = vmatprep.subr.mxu1 %v1853_v57  ;;  %v5372_v14 = vld [vmem:[#allocation7 + $0x1e8] sm:$0xff]  ;;  %6806 = vst [vmem:[#allocation37_spill] sm:$0xff] %v5374_v61  ;;  %v5386_v56 = vld [vmem:[#allocation7 + $0x1d8] sm:$0xff]  ;;  %v5390_v57 = vld [vmem:[#allocation7 + $0x1c0] sm:$0xff] }
 0x730   :  { %1895 = vmatpush1.msra.mxu0 %v1850_v55  ;;  %2008 = vmatpush1.msra.mxu1 %v1852_v5  ;;  %6805 = vst [vmem:[#allocation32_spill] sm:$0xff] %v5372_v14  ;;  %v5392_v55 = vld [vmem:[#allocation7 + $0x1d0] sm:$0xff]  ;;  %v5396_v5 = vld [vmem:[#allocation7 + $0x1a8] sm:$0xff] }
 0x731   :  { %1896 = vmatprep.subr.mxu0 %v1847_v59  ;;  %2009 = vmatprep.subr.mxu1 %v1849_v36  ;;  %v5398_v59 = vld [vmem:[#allocation7 + $0x1b8] sm:$0xff]  ;;  %v5402_v36 = vld [vmem:[#allocation7 + $0x1a0] sm:$0xff] }
 0x732   :  { %1897 = vmatpush1.msra.mxu0 %v1846_v0  ;;  %2010 = vmatpush1.msra.mxu1 %v1848_v45  ;;  %v5404_v0 = vld [vmem:[#allocation7 + $0x1b0] sm:$0xff]  ;;  %v5408_v45 = vld [vmem:[#allocation7 + $0x188] sm:$0xff] }
 0x733   :  { %1898 = vmatprep.subr.mxu0 %v1843_v3  ;;  %2011 = vmatprep.subr.mxu1 %v1845_v1  ;;  %v5410_v3 = vld [vmem:[#allocation7 + $0x198] sm:$0xff]  ;;  %v5414_v1 = vld [vmem:[#allocation7 + $0x180] sm:$0xff] }
 0x734   :  { %1899 = vmatpush1.msra.mxu0 %v1842_v63  ;;  %2012 = vmatpush1.msra.mxu1 %v1844_v62  ;;  %v5416_v63 = vld [vmem:[#allocation7 + $0x190] sm:$0xff]  ;;  %v5420_v62 = vld [vmem:[#allocation7 + $0x168] sm:$0xff] }
 0x735   :  { %1900 = vmatprep.subr.mxu0 %v1839_v10  ;;  %2013 = vmatprep.subr.mxu1 %v1841_v9  ;;  %v5422_v10 = vld [vmem:[#allocation7 + $0x178] sm:$0xff]  ;;  %v5426_v9 = vld [vmem:[#allocation7 + $0x160] sm:$0xff] }
 0x736   :  { %1901 = vmatpush1.msra.mxu0 %v1838_v4  ;;  %2014 = vmatpush1.msra.mxu1 %v1840_v2  ;;  %v5428_v4 = vld [vmem:[#allocation7 + $0x170] sm:$0xff]  ;;  %v5432_v2 = vld [vmem:[#allocation7 + $0x148] sm:$0xff] }
 0x737   :  { %1902 = vmatprep.subr.mxu0 %v1835_v18  ;;  %2015 = vmatprep.subr.mxu1 %v1837_v54  ;;  %v5434_v18 = vld [vmem:[#allocation7 + $0x158] sm:$0xff]  ;;  %v5438_v54 = vld [vmem:[#allocation7 + $0x140] sm:$0xff] }
 0x738   :  { %1903 = vmatpush1.msra.mxu0 %v1834_v34  ;;  %2016 = vmatpush1.msra.mxu1 %v1836_v35  ;;  %v5440_v34 = vld [vmem:[#allocation7 + $0x150] sm:$0xff]  ;;  %v5444_v35 = vld [vmem:[#allocation7 + $0x128] sm:$0xff] }
 0x739   :  { %1904 = vmatprep.subr.mxu0 %v1831_v38  ;;  %2017 = vmatprep.subr.mxu1 %v1833_v11  ;;  %v5446_v38 = vld [vmem:[#allocation7 + $0x138] sm:$0xff]  ;;  %v5450_v11 = vld [vmem:[#allocation7 + $0x120] sm:$0xff] }
 0x73a   :  { %1905 = vmatpush1.msra.mxu0 %v1830_v7  ;;  %2018 = vmatpush1.msra.mxu1 %v1832_v58  ;;  %v5452_v7 = vld [vmem:[#allocation7 + $0x130] sm:$0xff]  ;;  %v5456_v58 = vld [vmem:[#allocation7 + $0x108] sm:$0xff] }
 0x73b   :  { %1906 = vmatprep.subr.mxu0 %v1827_v22  ;;  %2019 = vmatprep.subr.mxu1 %v1829_v23  ;;  %v5458_v22 = vld [vmem:[#allocation7 + $0x118] sm:$0xff]  ;;  %v5462_v23 = vld [vmem:[#allocation7 + $0x100] sm:$0xff] }
 0x73c   :  { %1907 = vmatpush1.msra.mxu0 %v1826_v24  ;;  %2020 = vmatpush1.msra.mxu1 %v1828_v25  ;;  %v5464_v24 = vld [vmem:[#allocation7 + $0x110] sm:$0xff]  ;;  %v5468_v25 = vld [vmem:[#allocation7 + $0xe8] sm:$0xff] }
 0x73d   :  { %1908 = vmatprep.subr.mxu0 %v1823_v26  ;;  %2021 = vmatprep.subr.mxu1 %v1825_v28  ;;  %v5470_v26 = vld [vmem:[#allocation7 + $0xf8] sm:$0xff]  ;;  %v5474_v28 = vld [vmem:[#allocation7 + $0xe0] sm:$0xff] }
 0x73e   :  { %1909 = vmatpush1.msra.mxu0 %v1822_v29  ;;  %2022 = vmatpush1.msra.mxu1 %v1824_v31  ;;  %v5476_v29 = vld [vmem:[#allocation7 + $0xf0] sm:$0xff]  ;;  %v5480_v31 = vld [vmem:[#allocation7 + $0xc8] sm:$0xff] }
 0x73f   :  { %1910 = vmatprep.subr.mxu0 %v1819_v8  ;;  %2023 = vmatprep.subr.mxu1 %v1821_v39  ;;  %v5482_v8 = vld [vmem:[#allocation7 + $0xd8] sm:$0xff]  ;;  %v5486_v39 = vld [vmem:[#allocation7 + $0xc0] sm:$0xff] }
 0x740   :  { %1911 = vmatpush1.msra.mxu0 %v1818_v40  ;;  %2024 = vmatpush1.msra.mxu1 %v1820_v41  ;;  %v5488_v40 = vld [vmem:[#allocation7 + $0xd0] sm:$0xff]  ;;  %v5492_v41 = vld [vmem:[#allocation7 + $0xa8] sm:$0xff] }
 0x741   :  { %1912 = vmatprep.subr.mxu0 %v1815_v42  ;;  %2025 = vmatprep.subr.mxu1 %v1817_v43  ;;  %v5494_v42 = vld [vmem:[#allocation7 + $0xb8] sm:$0xff]  ;;  %v5498_v43 = vld [vmem:[#allocation7 + $0xa0] sm:$0xff] }
 0x742   :  { %1913 = vmatpush1.msra.mxu0 %v1814_v44  ;;  %2026 = vmatpush1.msra.mxu1 %v1816_v46  ;;  %v5500_v44 = vld [vmem:[#allocation7 + $0xb0] sm:$0xff]  ;;  %v5504_v46 = vld [vmem:[#allocation7 + $0x88] sm:$0xff] }
 0x743   :  { %1914 = vmatprep.subr.mxu0 %v1811_v47  ;;  %2027 = vmatprep.subr.mxu1 %v1813_v48  ;;  %6807 = vst [vmem:[#allocation39_spill] sm:$0xff] %v5500_v44  ;;  %6808 = vst [vmem:[#allocation40_spill] sm:$0xff] %v5504_v46  ;;  %v5506_v47 = vld [vmem:[#allocation7 + $0x98] sm:$0xff]  ;;  %v5510_v48 = vld [vmem:[#allocation7 + $0x80] sm:$0xff] }
 0x744   :  { %1915 = vmatpush1.msra.mxu0 %v1810_v49  ;;  %2028 = vmatpush1.msra.mxu1 %v1812_v50  ;;  %6809 = vst [vmem:[#allocation38_spill] sm:$0xff] %v5506_v47  ;;  %6810 = vst [vmem:[#allocation41_spill] sm:$0xff] %v5510_v48  ;;  %v5512_v49 = vld [vmem:[#allocation7 + $0x90] sm:$0xff]  ;;  %v5516_v50 = vld [vmem:[#allocation7 + $0x68] sm:$0xff] }
 0x745   :  { %1916 = vmatprep.subr.mxu0 %v1807_v51  ;;  %2029 = vmatprep.subr.mxu1 %v1809_v52  ;;  %6811 = vst [vmem:[#allocation43_spill] sm:$0xff] %v5512_v49  ;;  %6812 = vst [vmem:[#allocation44_spill] sm:$0xff] %v5516_v50  ;;  %v5518_v51 = vld [vmem:[#allocation7 + $0x78] sm:$0xff]  ;;  %v5522_v52 = vld [vmem:[#allocation7 + $0x60] sm:$0xff] }
 0x746   :  { %1917 = vmatpush1.msra.mxu0 %v1806_v53  ;;  %2030 = vmatpush1.msra.mxu1 %v1808_v27  ;;  %6813 = vst [vmem:[#allocation42_spill] sm:$0xff] %v5518_v51  ;;  %6814 = vst [vmem:[#allocation10_spill] sm:$0xff] %v5522_v52  ;;  %v5524_v53 = vld [vmem:[#allocation7 + $0x70] sm:$0xff]  ;;  %v5528_v27 = vld [vmem:[#allocation7 + $0x48] sm:$0xff] }
 0x747   :  { %1918 = vmatprep.subr.mxu0 %v1803_v17  ;;  %2031 = vmatprep.subr.mxu1 %v1805_v20  ;;  %6815 = vst [vmem:[#allocation11_spill] sm:$0xff] %v5524_v53  ;;  %6816 = vst [vmem:[#allocation45_spill] sm:$0xff] %v5528_v27  ;;  %v5530_v17 = vld [vmem:[#allocation7 + $0x58] sm:$0xff]  ;;  %v5534_v20 = vld [vmem:[#allocation7 + $0x40] sm:$0xff] }
 0x748   :  { %1919 = vmatpush1.msra.mxu0 %v1802_v16  ;;  %1952 = vmatprep.mubr.f32.mxu0 %v6795_v37  ;;  %6817 = vst [vmem:[#allocation47_spill] sm:$0xff] %v5530_v17  ;;  %6818 = vst [vmem:[#allocation48_spill] sm:$0xff] %v5534_v20  ;;  %v5536_v16 = vld [vmem:[#allocation7 + $0x50] sm:$0xff] }
 0x749   :  { %2032 = vmatpush1.msra.mxu1 %v1804_v21  ;;  %2065 = vmatprep.mubr.f32.mxu1 %v6795_v37  ;;  %6819 = vst [vmem:[#allocation46_spill] sm:$0xff] %v5536_v16  ;;  %v5540_v21 = vld [vmem:[#allocation7 + $0x28] sm:$0xff] }
 0x74a   :  { %1953 = vmatmul.mubr.f32.vlgmr.msra.gmra.mxu0 %v6800_v12  ;;  %2066 = vmatmul.mubr.f32.vlgmr.msra.gmra.mxu1 %v6800_v12  ;;  %6820 = vst [vmem:[#allocation13_spill] sm:$0xff] %v5540_v21  ;;  %v5542_v12 = vld [vmem:[#allocation7 + $0x38] sm:$0xff] }
 0x74b   :  { %1958 = vmatprep.mubr.f32.mxu0 %v6795_v37  ;;  %2071 = vmatprep.mubr.f32.mxu1 %v6795_v37  ;;  %6821 = vst [vmem:[#allocation14_spill] sm:$0xff] %v5542_v12 }
 0x74c   :  { %2178 = vmatprep.subr.mxu0 %v5372_v14  ;;  %2249 = vmatprep.subr.mxu1 %v5374_v61 }
 0x74d   :  { %2250 = vmatpush1.msra.mxu1 %v5380_v32 }
 0x74e   :  { %1959 = vmatmul.mubr.f32.gmra.mxu0 %v6801_v19  ;;  %2072 = vmatmul.mubr.f32.gmra.mxu1 %v6801_v19  ;;  %v5546_v19 = vld [vmem:[#allocation7 + $0x20] sm:$0xff] }
 0x74f   :  { %1964 = vmatprep.mubr.f32.mxu0 %v6795_v37  ;;  %2077 = vmatprep.mubr.f32.mxu1 %v6795_v37  ;;  %6822 = vst [vmem:[#allocation49_spill] sm:$0xff] %v5546_v19 }
 0x750   :  { %2251 = vmatprep.subr.mxu1 %v5386_v56 }
 0x751   :  { %2252 = vmatpush1.msra.mxu1 %v5392_v55 }
 0x752   :  { %1965 = vmatmul.mubr.f32.gmra.mxu0 %v6802_v13  ;;  %2078 = vmatmul.mubr.f32.gmra.mxu1 %v6802_v13  ;;  %v5548_v13 = vld [vmem:[#allocation7 + $0x30] sm:$0xff] }
 0x753   :  { %1970 = vmatprep.mubr.f32.mxu0 %v6795_v37  ;;  %2083 = vmatprep.mubr.f32.mxu1 %v6795_v37  ;;  %6823 = vst [vmem:[#allocation51_spill] sm:$0xff] %v5548_v13 }
 0x754   :  { %2253 = vmatprep.subr.mxu1 %v5398_v59 }
 0x755   :  { %2254 = vmatpush1.msra.mxu1 %v5404_v0 }
 0x756   :  { %1971 = vmatmul.mubr.f32.gmra.mxu0 %v6803_v15  ;;  %2084 = vmatmul.mubr.f32.gmra.mxu1 %v6803_v15  ;;  %v5552_v15 = vld [vmem:[#allocation7 + $0x8] sm:$0xff] }
 0x757   :  { %1976 = vmatprep.mubr.f32.mxu0 %v6795_v37  ;;  %2089 = vmatprep.mubr.f32.mxu1 %v6795_v37  ;;  %6824 = vst [vmem:[#allocation52_spill] sm:$0xff] %v5552_v15 }
 0x758   :  { %2255 = vmatprep.subr.mxu1 %v5410_v3 }
 0x759   :  { %2256 = vmatpush1.msra.mxu1 %v5416_v63 }
 0x75a   :  { %1977 = vmatmul.mubr.f32.gmra.mxu0 %v6804_v60  ;;  %2090 = vmatmul.mubr.f32.gmra.mxu1 %v6804_v60  ;;  %v5554_v60 = vld [vmem:[#allocation7 + $0x18] sm:$0xff] }
 0x75b   :  { %1982 = vmatprep.mubr.f32.mxu0 %v6795_v37  ;;  %2095 = vmatprep.mubr.f32.mxu1 %v6795_v37  ;;  %6825 = vst [vmem:[#allocation50_spill] sm:$0xff] %v5554_v60 }
 0x75c   :  { %2257 = vmatprep.subr.mxu1 %v5422_v10 }
 0x75d   :  { %2258 = vmatpush1.msra.mxu1 %v5428_v4 }
 0x75e   :  { %1983 = vmatmul.mubr.f32.gmra.mxu0 %v5262_v6  ;;  %2096 = vmatmul.mubr.f32.gmra.mxu1 %v5262_v6  ;;  %v5378_v6 = vld [vmem:[#allocation7 + $0x1e0] sm:$0xff] }
 0x75f   :  { %1988 = vmatprep.mubr.f32.mxu0 %v6795_v37  ;;  %2101 = vmatprep.mubr.f32.mxu1 %v6795_v37 }
 0x760   :  { %2179 = vmatpush1.msra.mxu0 %v5378_v6  ;;  %2259 = vmatprep.subr.mxu1 %v5434_v18 }
 0x761   :  { %2260 = vmatpush1.msra.mxu1 %v5440_v34 }
 0x762   :  { %1989 = vmatmul.mubr.f32.gmra.mxu0 %v5338_v30  ;;  %2102 = vmatmul.mubr.f32.gmra.mxu1 %v5338_v30  ;;  %v5384_v30 = vld [vmem:[#allocation7 + $0x1c8] sm:$0xff] }
 0x763   :  { %1994 = vmatprep.mubr.f32.mxu0 %v6795_v37  ;;  %2107 = vmatprep.mubr.f32.mxu1 %v6795_v37 }
 0x764   :  { %2180 = vmatprep.subr.mxu0 %v5384_v30  ;;  %2261 = vmatprep.subr.mxu1 %v5446_v38 }
 0x765   :  { %2181 = vmatpush1.msra.mxu0 %v5390_v57  ;;  %2262 = vmatpush1.msra.mxu1 %v5452_v7 }
 0x766   :  { %2182 = vmatprep.subr.mxu0 %v5396_v5  ;;  %2263 = vmatprep.subr.mxu1 %v5458_v22 }
 0x767   :  { %2183 = vmatpush1.msra.mxu0 %v5402_v36  ;;  %2264 = vmatpush1.msra.mxu1 %v5464_v24 }
 0x768   :  { %2184 = vmatprep.subr.mxu0 %v5408_v45  ;;  %2265 = vmatprep.subr.mxu1 %v5470_v26 }
 0x769   :  { %2185 = vmatpush1.msra.mxu0 %v5414_v1  ;;  %2266 = vmatpush1.msra.mxu1 %v5476_v29 }
 0x76a   :  { %2186 = vmatprep.subr.mxu0 %v5420_v62  ;;  %2267 = vmatprep.subr.mxu1 %v5482_v8 }
 0x76b   :  { %2187 = vmatpush1.msra.mxu0 %v5426_v9  ;;  %2268 = vmatpush1.msra.mxu1 %v5488_v40 }
 0x76c   :  { %2188 = vmatprep.subr.mxu0 %v5432_v2  ;;  %2269 = vmatprep.subr.mxu1 %v5494_v42 }
 0x76d   :  { %2189 = vmatpush1.msra.mxu0 %v5438_v54  ;;  %2270 = vmatpush1.msra.mxu1 %v5500_v44 }
 0x76e   :  { %2190 = vmatprep.subr.mxu0 %v5444_v35  ;;  %2271 = vmatprep.subr.mxu1 %v5506_v47 }
 0x76f   :  { %2191 = vmatpush1.msra.mxu0 %v5450_v11  ;;  %2272 = vmatpush1.msra.mxu1 %v5512_v49 }
 0x770   :  { %2192 = vmatprep.subr.mxu0 %v5456_v58  ;;  %2273 = vmatprep.subr.mxu1 %v5518_v51  ;;  %v6830_v51 = vld [vmem:[#allocation60_spill] sm:$0xff] }
 0x771   :  { %2193 = vmatpush1.msra.mxu0 %v5462_v23  ;;  %2274 = vmatpush1.msra.mxu1 %v5524_v53 }
 0x772   :  { %2194 = vmatprep.subr.mxu0 %v5468_v25  ;;  %2275 = vmatprep.subr.mxu1 %v5530_v17 }
 0x773   :  { %2195 = vmatpush1.msra.mxu0 %v5474_v28  ;;  %2276 = vmatpush1.msra.mxu1 %v5536_v16  ;;  %v5556_v16 = vld [vmem:[#allocation7] sm:$0xff] }
 0x774   :  { %2196 = vmatprep.subr.mxu0 %v5480_v31  ;;  %2277 = vmatprep.subr.mxu1 %v5542_v12  ;;  %6826 = vst [vmem:[#allocation36_spill] sm:$0xff] %v5556_v16 }
 0x775   :  { %2197 = vmatpush1.msra.mxu0 %v5486_v39  ;;  %2278 = vmatpush1.msra.mxu1 %v5548_v13 }
 0x776   :  { %2198 = vmatprep.subr.mxu0 %v5492_v41  ;;  %2279 = vmatprep.subr.mxu1 %v5554_v60 }
 0x777   :  { %2199 = vmatpush1.msra.mxu0 %v5498_v43 }
 0x778   :  { %2200 = vmatprep.subr.mxu0 %v5504_v46 }
 0x779   :  { %2201 = vmatpush1.msra.mxu0 %v5510_v48 }
 0x77a   :  { %2202 = vmatprep.subr.mxu0 %v5516_v50  ;;  %v6831_v50 = vld [vmem:[#allocation58_spill] sm:$0xff] }
 0x77b   :  { %2203 = vmatpush1.msra.mxu0 %v5522_v52 }
 0x77c   :  { %2204 = vmatprep.subr.mxu0 %v5528_v27  ;;  %v6829_v27 = vld [vmem:[#allocation59_spill] sm:$0xff] }
 0x77d   :  { %2205 = vmatpush1.msra.mxu0 %v5534_v20 }
 0x77e   :  { %2206 = vmatprep.subr.mxu0 %v5540_v21  ;;  %v5560_v21 = vld [vmem:[#allocation7 + $0x10] sm:$0xff] }
 0x77f   :  { %2207 = vmatpush1.msra.mxu0 %v5546_v19  ;;  %6827 = vst [vmem:[#allocation34_spill] sm:$0xff] %v5560_v21  ;;  %2280 = vmatpush1.msra.mxu1 %v5560_v21  ;;  %v6828_v19 = vld [vmem:[#allocation57_spill] sm:$0xff] }
 0x780   :  { %2208 = vmatprep.subr.mxu0 %v5552_v15  ;;  %2419 = vmatprep.subr.mxu1 %v5374_v61 }
 0x781   :  { %2209 = vmatpush1.msra.mxu0 %v5556_v16 }
 0x782   :  { %2348 = vmatprep.subr.mxu0 %v5372_v14 }
 0x7e9   :  { %v1689_v13 = vpop.f32.mrf.mxu0  ;;  %v1760_v15 = vpop.f32.mrf.mxu1 }
 0x7ea   :  { %v1765_v12 = vadd.f32 %v1689_v13, %v6828_v19  ;;  %v1767_v21 = vadd.f32 %v1760_v15, %v6831_v50  ;;  %v6838_v15 = vld [vmem:[#allocation45_spill] sm:$0xff] }
 0x7eb   :  { %v1691_v20 = vpop.f32.mrf.mxu0  ;;  %v1762_v52 = vpop.f32.mrf.mxu1 }
 0x7ec   :  { %v3687_v17 = vmul.f32 -1.442695, %v1765_v12  ;;  %v1766_v53 = vadd.f32 %v1691_v20, %v6829_v27  ;;  %v1768_v16 = vadd.f32 %v1762_v52, %v6830_v51 }
 0x7ee   :  { %3886 = vpow2.f32 %v3687_v17  ;;  %v3688_v60 = vmul.f32 -1.442695, %v1766_v53  ;;  %v3689_v49 = vmul.f32 -1.442695, %v1768_v16  ;;  %v6836_v16 = vld [vmem:[#allocation10_spill] sm:$0xff] }
 0x7f0   :  { %3888 = vpow2.f32 %v3688_v60 }
 0x7f1   :  { %3890 = vtanh.f32 %v1767_v21  ;;  %v6837_v21 = vld [vmem:[#allocation11_spill] sm:$0xff] }
 0x7f2   :  { %3892 = vpow2.f32 %v3689_v49  ;;  %v6835_v49 = vld [vmem:[#allocation42_spill] sm:$0xff] }
 0x7fb   :  { %v3887_v14 = vpop.eup %3886 }
 0x7fc   :  { %v1772_v48 = vadd.f32 1.0, %v3887_v14 }
 0x7fd   :  { %v3889_v61 = vpop.eup %3888 }
 0x7fe   :  { %3894 = vrcp.f32 %v1772_v48  ;;  %v1778_v19 = vadd.f32 1.0, %v3889_v61  ;;  %v3891_v12 = vpop.eup %3890  ;;  %v6833_v61 = vld [vmem:[#allocation43_spill] sm:$0xff]  ;;  %v6834_v48 = vld [vmem:[#allocation44_spill] sm:$0xff] }
 0x7ff   :  { %v3893_v27 = vpop.eup %3892 }
 0x800   :  { %3896 = vrcp.f32 %v1778_v19  ;;  %v1785_v13 = vadd.f32 1.0, %v3893_v27  ;;  %v6839_v19 = vld [vmem:[#allocation47_spill] sm:$0xff]  ;;  %v6841_v27 = vld [vmem:[#allocation46_spill] sm:$0xff] }
 0x802   :  { %3898 = vrcp.f32 %v1785_v13  ;;  %v6845_v13 = vld [vmem:[#allocation51_spill] sm:$0xff] }
 0x80b   :  { %v3895_v17 = vpop.eup %3894 }
 0x80c   :  { %v1789_v20 = vmul.f32 %v3895_v17, %v3891_v12  ;;  %v6840_v12 = vld [vmem:[#allocation48_spill] sm:$0xff]  ;;  %v6842_v17 = vld [vmem:[#allocation13_spill] sm:$0xff] }
 0x80d   :  { %v3897_v53 = vpop.eup %3896 }
 0x80e   :  { %v1788_v60 = vmul.f32 %v3897_v53, %v5335_v33  ;;  %v6832_v33 = vld [vmem:[#allocation41_spill] sm:$0xff] }
 0x80f   :  { %v3899_v50 = vpop.eup %3898  ;;  %v6844_v53 = vld [vmem:[#allocation49_spill] sm:$0xff] }
 0x810   :  { %v1790_v51 = vadd.f32 %v1789_v20, %v1788_v60  ;;  %v6843_v20 = vld [vmem:[#allocation14_spill] sm:$0xff]  ;;  %v6846_v60 = vld [vmem:[#allocation52_spill] sm:$0xff] }
 0x812   :  { %3900 = vtanh.f32 %v1790_v51  ;;  %v6847_v51 = vld [vmem:[#allocation50_spill] sm:$0xff] }
 0x81f   :  { %v3901_v52 = vpop.eup %3900 }
 0x820   :  { %v1792_v14 = vmul.f32 %v3901_v52, %v3899_v50  ;;  %v6848_v50 = vld [vmem:[#allocation36_spill] sm:$0xff]  ;;  %v6849_v52 = vld [vmem:[#allocation34_spill] sm:$0xff] }
 0x822   :  { %1995 = vmatmul.mubr.f32.gmra.mxu0 %v1792_v14  ;;  %2108 = vmatmul.mubr.f32.gmra.mxu1 %v1792_v14  ;;  %v6850_v14 = vld [vmem:[#allocation32_spill] sm:$0xff] }
 0x823   :  { %2242 = vmatprep.mubr.f32.mxu0 %v6795_v37  ;;  %2313 = vmatprep.mubr.f32.mxu1 %v6795_v37 }
 0x826   :  { %2243 = vmatmul.mubr.f32.vlgmr.msra.gmra.mxu0 %v6795_v37  ;;  %2314 = vmatmul.mubr.f32.vlgmr.msra.gmra.mxu1 %v6795_v37 }
 0x827   :  { %2349 = vmatpush1.msra.mxu0 %v5378_v6  ;;  %2420 = vmatpush1.msra.mxu1 %v5380_v32 }
 0x828   :  { %2350 = vmatprep.subr.mxu0 %v5384_v30  ;;  %2421 = vmatprep.subr.mxu1 %v5386_v56 }
 0x829   :  { %2351 = vmatpush1.msra.mxu0 %v5390_v57  ;;  %2422 = vmatpush1.msra.mxu1 %v5392_v55 }
 0x82a   :  { %2352 = vmatprep.subr.mxu0 %v5396_v5  ;;  %2423 = vmatprep.subr.mxu1 %v5398_v59 }
 0x82b   :  { %2353 = vmatpush1.msra.mxu0 %v5402_v36  ;;  %2424 = vmatpush1.msra.mxu1 %v5404_v0 }
 0x82c   :  { %2354 = vmatprep.subr.mxu0 %v5408_v45  ;;  %2425 = vmatprep.subr.mxu1 %v5410_v3 }
 0x82d   :  { %2355 = vmatpush1.msra.mxu0 %v5414_v1  ;;  %2426 = vmatpush1.msra.mxu1 %v5416_v63 }
 0x82e   :  { %2356 = vmatprep.subr.mxu0 %v5420_v62  ;;  %2427 = vmatprep.subr.mxu1 %v5422_v10 }
 0x82f   :  { %2357 = vmatpush1.msra.mxu0 %v5426_v9  ;;  %2428 = vmatpush1.msra.mxu1 %v5428_v4 }
 0x830   :  { %2358 = vmatprep.subr.mxu0 %v5432_v2  ;;  %2429 = vmatprep.subr.mxu1 %v5434_v18 }
 0x831   :  { %2359 = vmatpush1.msra.mxu0 %v5438_v54  ;;  %2430 = vmatpush1.msra.mxu1 %v5440_v34 }
 0x832   :  { %2360 = vmatprep.subr.mxu0 %v5444_v35  ;;  %2431 = vmatprep.subr.mxu1 %v5446_v38 }
 0x833   :  { %2361 = vmatpush1.msra.mxu0 %v5450_v11  ;;  %2432 = vmatpush1.msra.mxu1 %v5452_v7 }
 0x834   :  { %2362 = vmatprep.subr.mxu0 %v5456_v58  ;;  %2433 = vmatprep.subr.mxu1 %v5458_v22 }
 0x835   :  { %2363 = vmatpush1.msra.mxu0 %v5462_v23  ;;  %2434 = vmatpush1.msra.mxu1 %v5464_v24 }
 0x836   :  { %2364 = vmatprep.subr.mxu0 %v5468_v25  ;;  %2435 = vmatprep.subr.mxu1 %v5470_v26 }
 0x837   :  { %2365 = vmatpush1.msra.mxu0 %v5474_v28  ;;  %2436 = vmatpush1.msra.mxu1 %v5476_v29 }
 0x838   :  { %2366 = vmatprep.subr.mxu0 %v5480_v31  ;;  %2437 = vmatprep.subr.mxu1 %v5482_v8 }
 0x839   :  { %2367 = vmatpush1.msra.mxu0 %v5486_v39  ;;  %2438 = vmatpush1.msra.mxu1 %v5488_v40 }
 0x83a   :  { %2368 = vmatprep.subr.mxu0 %v5492_v41  ;;  %2439 = vmatprep.subr.mxu1 %v5494_v42 }
 0x83b   :  { %2369 = vmatpush1.msra.mxu0 %v5498_v43  ;;  %2440 = vmatpush1.msra.mxu1 %v5500_v44 }
 0x83c   :  { %2370 = vmatprep.subr.mxu0 %v5504_v46  ;;  %2441 = vmatprep.subr.mxu1 %v5506_v47 }
 0x83d   :  { %2371 = vmatpush1.msra.mxu0 %v6832_v33  ;;  %2442 = vmatpush1.msra.mxu1 %v6833_v61 }
 0x83e   :  { %2372 = vmatprep.subr.mxu0 %v6834_v48  ;;  %2443 = vmatprep.subr.mxu1 %v6835_v49 }
 0x83f   :  { %2373 = vmatpush1.msra.mxu0 %v6836_v16  ;;  %2444 = vmatpush1.msra.mxu1 %v6837_v21 }
 0x840   :  { %2374 = vmatprep.subr.mxu0 %v6838_v15  ;;  %2445 = vmatprep.subr.mxu1 %v6839_v19 }
 0x841   :  { %2375 = vmatpush1.msra.mxu0 %v6840_v12  ;;  %2446 = vmatpush1.msra.mxu1 %v6841_v27 }
 0x842   :  { %2376 = vmatprep.subr.mxu0 %v6842_v17  ;;  %2447 = vmatprep.subr.mxu1 %v6843_v20  ;;  %v6851_v17 = vld [vmem:[#allocation37_spill] sm:$0xff]  ;;  %v1954_v20 = vpop.f32.mrf.mxu0 }
 0x843   :  { %2377 = vmatpush1.msra.mxu0 %v6844_v53  ;;  %2448 = vmatpush1.msra.mxu1 %v6845_v13  ;;  %v2067_v53 = vpop.f32.mrf.mxu1 }
 0x844   :  { %2378 = vmatprep.subr.mxu0 %v6846_v60  ;;  %2449 = vmatprep.subr.mxu1 %v6847_v51  ;;  %v1956_v27 = vpop.f32.mrf.mxu0 }
 0x845   :  { %2379 = vmatpush1.msra.mxu0 %v6848_v50  ;;  %2412 = vmatprep.mubr.f32.mxu0 %v6795_v37  ;;  %v2069_v13 = vpop.f32.mrf.mxu1 }
 0x846   :  { %2450 = vmatpush1.msra.mxu1 %v6849_v52  ;;  %2483 = vmatprep.mubr.f32.mxu1 %v6795_v37  ;;  %v5641_v12 = vpop.f32.mrf.mxu0 }
 0x847   :  { %2518 = vmatprep.subr.mxu0 %v6850_v14  ;;  %2589 = vmatprep.subr.mxu1 %v6851_v17  ;;  %6852 = vst [vmem:[#allocation16_spill] sm:$0xff] %v5641_v12  ;;  %v5643_v60 = vpop.f32.mrf.mxu1 }
 0x848   :  { %6853 = vst [vmem:[#allocation17_spill] sm:$0xff] %v5643_v60  ;;  %v5645_v51 = vpop.f32.mrf.mxu0 }
 0x849   :  { %6854 = vst [vmem:[#allocation18_spill] sm:$0xff] %v5645_v51  ;;  %v5647_v50 = vpop.f32.mrf.mxu1 }
 0x84a   :  { %6855 = vst [vmem:[#allocation19_spill] sm:$0xff] %v5647_v50  ;;  %v5649_v19 = vpop.f32.mrf.mxu0 }
 0x84b   :  { %6856 = vst [vmem:[#allocation20_spill] sm:$0xff] %v5649_v19  ;;  %v5651_v52 = vpop.f32.mrf.mxu1 }
 0x84c   :  { %6857 = vst [vmem:[#allocation21_spill] sm:$0xff] %v5651_v52  ;;  %v5653_v37 = vpop.f32.mrf.mxu0 }
 0x84d   :  { %6858 = vst [vmem:[#allocation22_spill] sm:$0xff] %v5653_v37  ;;  %v5655_v14 = vpop.f32.mrf.mxu1 }
 0x84e   :  { %6859 = vst [vmem:[#allocation23_spill] sm:$0xff] %v5655_v14  ;;  %v5657_v17 = vpop.f32.mrf.mxu0 }
 0x84f   :  { %6860 = vst [vmem:[#allocation24_spill] sm:$0xff] %v5657_v17  ;;  %v5659_v15 = vpop.f32.mrf.mxu1 }
 0x850   :  { %6861 = vst [vmem:[#allocation25_spill] sm:$0xff] %v5659_v15  ;;  %v5661_v21 = vpop.f32.mrf.mxu0 }
 0x851   :  { %6862 = vst [vmem:[#allocation26_spill] sm:$0xff] %v5661_v21  ;;  %v5663_v12 = vpop.f32.mrf.mxu1 }
 0x852   :  { %6863 = vst [vmem:[#allocation27_spill] sm:$0xff] %v5663_v12  ;;  %v5665_v60 = vpop.f32.mrf.mxu0 }
 0x853   :  { %6864 = vst [vmem:[#allocation28_spill] sm:$0xff] %v5665_v60  ;;  %v5667_v51 = vpop.f32.mrf.mxu1 }
 0x854   :  { %6865 = vst [vmem:[#allocation29_spill] sm:$0xff] %v5667_v51  ;;  %v5669_v50 = vpop.f32.mrf.mxu0  ;;  %v1866_v51 = vld [vmem:[%s6406_s6] sm:$0xf] }
 0x855   :  { %6866 = vst [vmem:[#allocation30_spill] sm:$0xff] %v5669_v50  ;;  %v5671_v19 = vpop.f32.mrf.mxu1  ;;  %v6875_v50 = vld [vmem:[#allocation33_spill] sm:$0xff] }
 0x856   :  { %6867 = vst [vmem:[#allocation53_spill] sm:$0xff] %v5671_v19  ;;  %v5673_v52 = vpop.f32.mrf.mxu0  ;;  %v6876_v19 = vsub.s32 0, %v6875_v50 }
 0x857   :  { %6868 = vst [vmem:[#allocation55_spill] sm:$0xff] %v5673_v52  ;;  %v5675_v37 = vpop.f32.mrf.mxu1 }
 0x858   :  { %6869 = vst [vmem:[#allocation56_spill] sm:$0xff] %v5675_v37  ;;  %v5677_v14 = vpop.f32.mrf.mxu0  ;;  %v5692_v12 = vrot.slane %v1866_v51, %v6876_v19 }
 0x859   :  { %6870 = vst [vmem:[#allocation54_spill] sm:$0xff] %v5677_v14  ;;  %v5679_v17 = vpop.f32.mrf.mxu1 }
 0x85a   :  { %6871 = vst [vmem:[#allocation61_spill] sm:$0xff] %v5679_v17  ;;  %v5681_v15 = vpop.f32.mrf.mxu0  ;;  %6877 = vst [vmem:[#allocation31_spill] sm:$0xff] %v5692_v12  ;;  %v6880_v17 = vsub.s32 1, %v6875_v50  ;;  %v1955_v16 = vadd.f32 %v1954_v20, %v5692_v12 }
 0x85b   :  { %6872 = vst [vmem:[#allocation12_spill] sm:$0xff] %v5681_v15  ;;  %v5683_v21 = vpop.f32.mrf.mxu1 }
 0x85c   :  { %6873 = vst [vmem:[#allocation15_spill] sm:$0xff] %v5683_v21  ;;  %v5688_v60 = vpop.f32.mrf.mxu0  ;;  %v5700_v14 = vrot.slane %v1866_v51, %v6880_v17  ;;  %v6884_v17 = vsub.s32 3, %v6875_v50 }
 0x85d   :  { %6874 = vst [vmem:[#allocation35_spill] sm:$0xff] %v5688_v60  ;;  %v5694_v52 = vpop.f32.mrf.mxu1 }
 0x85e   :  { %6878 = vst [vmem:[#allocation57_spill] sm:$0xff] %v5694_v52  ;;  %v1957_v60 = vadd.f32 %v1956_v27, %v5700_v14  ;;  %v5712_v46 = vrot.slane %v1866_v51, %v6884_v17 }
 0x860   :  { %6885 = vst [vmem:[#allocation62_spill] sm:$0xff] %v5712_v46  ;;  %v2070_v20 = vadd.f32 %v2069_v13, %v5712_v46 }
 0x8e2   :  { %v5696_v37 = vpop.f32.mrf.mxu0  ;;  %v5702_v15 = vpop.f32.mrf.mxu1 }
 0x8e3   :  { %6879 = vst [vmem:[#allocation59_spill] sm:$0xff] %v5696_v37  ;;  %6881 = vst [vmem:[#allocation60_spill] sm:$0xff] %v5702_v15 }
 0x8e4   :  { %v5704_v21 = vpop.f32.mrf.mxu0  ;;  %v5708_v48 = vpop.f32.mrf.mxu1 }
 0x8e5   :  { %6882 = vst [vmem:[#allocation58_spill] sm:$0xff] %v5704_v21  ;;  %6883 = vst [vmem:[#allocation33_spill] sm:$0xff] %v5708_v48  ;;  %v6886_v21 = vsub.s32 2, %v6875_v50 }
 0x8e6   :  { %v2244_v49 = vpop.f32.mrf.mxu0  ;;  %v2315_v37 = vpop.f32.mrf.mxu1 }
 0x8e7   :  { %v2320_v19 = vadd.f32 %v2244_v49, %v1955_v16  ;;  %v5717_v27 = vrot.slane %v1866_v51, %v6886_v21 }
 0x8e8   :  { %v2246_v61 = vpop.f32.mrf.mxu0  ;;  %v2317_v15 = vpop.f32.mrf.mxu1 }
 0x8e9   :  { %v3690_v52 = vmul.f32 -1.442695, %v2320_v19  ;;  %v2321_v33 = vadd.f32 %v2246_v61, %v1957_v60  ;;  %v2323_v48 = vadd.f32 %v2317_v15, %v2070_v20  ;;  %v2068_v49 = vadd.f32 %v2067_v53, %v5717_v27  ;;  %v6888_v20 = vld [vmem:[#allocation38_spill] sm:$0xff] }
 0x8eb   :  { %3902 = vpow2.f32 %v3690_v52  ;;  %v3691_v47 = vmul.f32 -1.442695, %v2321_v33  ;;  %v3692_v16 = vmul.f32 -1.442695, %v2323_v48  ;;  %v2322_v60 = vadd.f32 %v2315_v37, %v2068_v49  ;;  %v6889_v49 = vld [vmem:[#allocation41_spill] sm:$0xff] }
 0x8ed   :  { %3904 = vpow2.f32 %v3691_v47 }
 0x8ee   :  { %3906 = vpow2.f32 %v3692_v16  ;;  %v6890_v16 = vld [vmem:[#allocation43_spill] sm:$0xff] }
 0x8f8   :  { %v3903_v61 = vpop.eup %3902 }
 0x8f9   :  { %v2327_v52 = vadd.f32 1.0, %v3903_v61  ;;  %v6891_v61 = vld [vmem:[#allocation44_spill] sm:$0xff] }
 0x8fa   :  { %v3905_v33 = vpop.eup %3904 }
 0x8fb   :  { %3908 = vrcp.f32 %v2327_v52  ;;  %v2333_v19 = vadd.f32 1.0, %v3905_v33  ;;  %v3907_v47 = vpop.eup %3906  ;;  %v6893_v52 = vld [vmem:[#allocation10_spill] sm:$0xff]  ;;  %v6894_v33 = vld [vmem:[#allocation11_spill] sm:$0xff] }
 0x8fc   :  { %3910 = vtanh.f32 %v2322_v60  ;;  %v2340_v50 = vadd.f32 1.0, %v3907_v47  ;;  %v6892_v60 = vld [vmem:[#allocation42_spill] sm:$0xff]  ;;  %v6896_v47 = vld [vmem:[#allocation47_spill] sm:$0xff] }
 0x8fd   :  { %3912 = vrcp.f32 %v2333_v19  ;;  %v6895_v19 = vld [vmem:[#allocation45_spill] sm:$0xff] }
 0x8fe   :  { %3914 = vrcp.f32 %v2340_v50  ;;  %v6899_v50 = vld [vmem:[#allocation13_spill] sm:$0xff] }
 0x908   :  { %v3909_v17 = vpop.eup %3908 }
 0x909   :  { %v3911_v13 = vpop.eup %3910 }
 0x90a   :  { %v3913_v46 = vpop.eup %3912  ;;  %v2344_v51 = vmul.f32 %v3911_v13, %v3909_v17  ;;  %v6897_v17 = vld [vmem:[#allocation48_spill] sm:$0xff]  ;;  %v6898_v13 = vld [vmem:[#allocation46_spill] sm:$0xff] }
 0x90b   :  { %v2343_v21 = vmul.f32 0.0, %v3913_v46  ;;  %v3915_v37 = vpop.eup %3914  ;;  %v6887_v46 = vld [vmem:[#allocation40_spill] sm:$0xff] }
 0x90d   :  { %v5720_v15 = vadd.f32 %v2344_v51, %v2343_v21  ;;  %v6900_v21 = vld [vmem:[#allocation14_spill] sm:$0xff]  ;;  %v6901_v51 = vld [vmem:[#allocation49_spill] sm:$0xff] }
 0x90f   :  { %3916 = vtanh.f32 %v5720_v15 }
 0x91c   :  { %v3917_v48 = vpop.eup %3916 }
 0x91d   :  { %v2347_v53 = vmul.f32 %v3917_v48, %v3915_v37  ;;  %v6902_v37 = vld [vmem:[#allocation51_spill] sm:$0xff]  ;;  %v6903_v48 = vld [vmem:[#allocation52_spill] sm:$0xff] }
 0x91f   :  { %2413 = vmatmul.mubr.f32.vlgmr.msra.gmra.mxu0 %v2347_v53  ;;  %2484 = vmatmul.mubr.f32.vlgmr.msra.gmra.mxu1 %v2347_v53  ;;  %v6904_v53 = vld [vmem:[#allocation50_spill] sm:$0xff] }
 0x920   :  { %2519 = vmatpush1.msra.mxu0 %v5378_v6  ;;  %2590 = vmatpush1.msra.mxu1 %v5380_v32 }
 0x921   :  { %2520 = vmatprep.subr.mxu0 %v5384_v30  ;;  %2591 = vmatprep.subr.mxu1 %v5386_v56 }
 0x922   :  { %2521 = vmatpush1.msra.mxu0 %v5390_v57  ;;  %2592 = vmatpush1.msra.mxu1 %v5392_v55 }
 0x923   :  { %2522 = vmatprep.subr.mxu0 %v5396_v5  ;;  %2593 = vmatprep.subr.mxu1 %v5398_v59 }
 0x924   :  { %2523 = vmatpush1.msra.mxu0 %v5402_v36  ;;  %2594 = vmatpush1.msra.mxu1 %v5404_v0 }
 0x925   :  { %2524 = vmatprep.subr.mxu0 %v5408_v45  ;;  %2595 = vmatprep.subr.mxu1 %v5410_v3 }
 0x926   :  { %2525 = vmatpush1.msra.mxu0 %v5414_v1  ;;  %2596 = vmatpush1.msra.mxu1 %v5416_v63 }
 0x927   :  { %2526 = vmatprep.subr.mxu0 %v5420_v62  ;;  %2597 = vmatprep.subr.mxu1 %v5422_v10 }
 0x928   :  { %2527 = vmatpush1.msra.mxu0 %v5426_v9  ;;  %2598 = vmatpush1.msra.mxu1 %v5428_v4 }
 0x929   :  { %2528 = vmatprep.subr.mxu0 %v5432_v2  ;;  %2599 = vmatprep.subr.mxu1 %v5434_v18 }
 0x92a   :  { %2529 = vmatpush1.msra.mxu0 %v5438_v54  ;;  %2600 = vmatpush1.msra.mxu1 %v5440_v34 }
 0x92b   :  { %2530 = vmatprep.subr.mxu0 %v5444_v35  ;;  %2601 = vmatprep.subr.mxu1 %v5446_v38 }
 0x92c   :  { %2531 = vmatpush1.msra.mxu0 %v5450_v11  ;;  %2602 = vmatpush1.msra.mxu1 %v5452_v7 }
 0x92d   :  { %2532 = vmatprep.subr.mxu0 %v5456_v58  ;;  %2603 = vmatprep.subr.mxu1 %v5458_v22 }
 0x92e   :  { %2533 = vmatpush1.msra.mxu0 %v5462_v23  ;;  %2604 = vmatpush1.msra.mxu1 %v5464_v24 }
 0x92f   :  { %2534 = vmatprep.subr.mxu0 %v5468_v25  ;;  %2605 = vmatprep.subr.mxu1 %v5470_v26 }
 0x930   :  { %2535 = vmatpush1.msra.mxu0 %v5474_v28  ;;  %2606 = vmatpush1.msra.mxu1 %v5476_v29 }
 0x931   :  { %2536 = vmatprep.subr.mxu0 %v5480_v31  ;;  %2607 = vmatprep.subr.mxu1 %v5482_v8 }
 0x932   :  { %2537 = vmatpush1.msra.mxu0 %v5486_v39  ;;  %2608 = vmatpush1.msra.mxu1 %v5488_v40 }
 0x933   :  { %2538 = vmatprep.subr.mxu0 %v5492_v41  ;;  %2609 = vmatprep.subr.mxu1 %v5494_v42 }
 0x934   :  { %2539 = vmatpush1.msra.mxu0 %v5498_v43  ;;  %2610 = vmatpush1.msra.mxu1 %v5500_v44 }
 0x935   :  { %2540 = vmatprep.subr.mxu0 %v6887_v46  ;;  %2611 = vmatprep.subr.mxu1 %v6888_v20  ;;  %v6914_v20 = vld [vmem:[#allocation17_spill] sm:$0xff] }
 0x936   :  { %2541 = vmatpush1.msra.mxu0 %v6889_v49  ;;  %2612 = vmatpush1.msra.mxu1 %v6890_v16  ;;  %v6912_v16 = vld [vmem:[#allocation62_spill] sm:$0xff] }
 0x937   :  { %2542 = vmatprep.subr.mxu0 %v6891_v61  ;;  %2613 = vmatprep.subr.mxu1 %v6892_v60 }
 0x938   :  { %2543 = vmatpush1.msra.mxu0 %v6893_v52  ;;  %2614 = vmatpush1.msra.mxu1 %v6894_v33  ;;  %v6905_v33 = vld [vmem:[#allocation36_spill] sm:$0xff] }
 0x939   :  { %2544 = vmatprep.subr.mxu0 %v6895_v19  ;;  %2615 = vmatprep.subr.mxu1 %v6896_v47  ;;  %v6906_v19 = vmov 0.0   ;;  %v6907_v47 = vld [vmem:[#allocation34_spill] sm:$0xff] }
 0x93a   :  { %2545 = vmatpush1.msra.mxu0 %v6897_v17  ;;  %2616 = vmatpush1.msra.mxu1 %v6898_v13  ;;  %v6908_v13 = vld [vmem:[#allocation32_spill] sm:$0xff] }
 0x93b   :  { %2546 = vmatprep.subr.mxu0 %v6899_v50  ;;  %2617 = vmatprep.subr.mxu1 %v6900_v21  ;;  %v6909_v50 = vld [vmem:[#allocation37_spill] sm:$0xff] }
 0x93c   :  { %2547 = vmatpush1.msra.mxu0 %v6901_v51  ;;  %2618 = vmatpush1.msra.mxu1 %v6902_v37  ;;  %v6910_v51 = vld [vmem:[#allocation16_spill] sm:$0xff] }
 0x93d   :  { %2548 = vmatprep.subr.mxu0 %v6903_v48  ;;  %2619 = vmatprep.subr.mxu1 %v6904_v53  ;;  %v1961_v21 = vadd.f32 %v6910_v51, %v5692_v12  ;;  %v6911_v48 = vld [vmem:[#allocation18_spill] sm:$0xff]  ;;  %v2074_v51 = vadd.f32 %v6914_v20, %v5717_v27 }
 0x93e   :  { %2549 = vmatpush1.msra.mxu0 %v6905_v33  ;;  %2582 = vmatprep.mubr.f32.mxu0 %v6906_v19  ;;  %v1963_v17 = vadd.f32 %v6911_v48, %v5700_v14 }
 0x93f   :  { %2620 = vmatpush1.msra.mxu1 %v6907_v47  ;;  %2653 = vmatprep.mubr.f32.mxu1 %v6906_v19 }
 0x940   :  { %2688 = vmatprep.subr.mxu0 %v6908_v13  ;;  %2759 = vmatprep.subr.mxu1 %v6909_v50  ;;  %v6913_v13 = vld [vmem:[#allocation19_spill] sm:$0xff] }
 0x941   :  { %v2076_v49 = vadd.f32 %v6913_v13, %v6912_v16 }
 0x9df   :  { %v2414_v37 = vpop.f32.mrf.mxu0  ;;  %v2485_v61 = vpop.f32.mrf.mxu1 }
 0x9e0   :  { %v2490_v53 = vadd.f32 %v2414_v37, %v1961_v21  ;;  %v2492_v12 = vadd.f32 %v2485_v61, %v2074_v51  ;;  %v6927_v61 = vld [vmem:[#allocation46_spill] sm:$0xff]  ;;  %v6930_v51 = vld [vmem:[#allocation49_spill] sm:$0xff] }
 0x9e1   :  { %v2416_v52 = vpop.f32.mrf.mxu0  ;;  %v2487_v19 = vpop.f32.mrf.mxu1 }
 0x9e2   :  { %v3693_v33 = vmul.f32 -1.442695, %v2490_v53  ;;  %v2491_v60 = vadd.f32 %v2416_v52, %v1963_v17  ;;  %v2493_v50 = vadd.f32 %v2487_v19, %v2076_v49  ;;  %v6929_v53 = vld [vmem:[#allocation14_spill] sm:$0xff] }
 0x9e4   :  { %3918 = vpow2.f32 %v3693_v33  ;;  %v3694_v47 = vmul.f32 -1.442695, %v2491_v60  ;;  %v3695_v46 = vmul.f32 -1.442695, %v2493_v50  ;;  %v6928_v50 = vld [vmem:[#allocation13_spill] sm:$0xff] }
 0x9e6   :  { %3920 = vpow2.f32 %v3694_v47 }
 0x9e7   :  { %3922 = vtanh.f32 %v2492_v12 }
 0x9e8   :  { %3924 = vpow2.f32 %v3695_v46  ;;  %v6926_v46 = vld [vmem:[#allocation48_spill] sm:$0xff] }
 0x9f1   :  { %v3919_v44 = vpop.eup %3918 }
 0x9f2   :  { %v2497_v48 = vadd.f32 1.0, %v3919_v44 }
 0x9f3   :  { %v3921_v21 = vpop.eup %3920 }
 0x9f4   :  { %3926 = vrcp.f32 %v2497_v48  ;;  %v2503_v52 = vadd.f32 1.0, %v3921_v21  ;;  %v3923_v60 = vpop.eup %3922  ;;  %v6931_v48 = vld [vmem:[#allocation51_spill] sm:$0xff]  ;;  %v6932_v21 = vld [vmem:[#allocation52_spill] sm:$0xff] }
 0x9f5   :  { %v3925_v33 = vpop.eup %3924 }
 0x9f6   :  { %3928 = vrcp.f32 %v2503_v52  ;;  %v2510_v13 = vadd.f32 1.0, %v3925_v33  ;;  %v6933_v52 = vld [vmem:[#allocation50_spill] sm:$0xff]  ;;  %v6935_v33 = vmov 0.0  }
 0x9f8   :  { %3930 = vrcp.f32 %v2510_v13  ;;  %v6939_v13 = vld [vmem:[#allocation31_spill] sm:$0xff] }
 0xa01   :  { %v3927_v47 = vpop.eup %3926 }
 0xa02   :  { %v2514_v17 = vmul.f32 %v3927_v47, %v3923_v60  ;;  %v6934_v60 = vld [vmem:[#allocation36_spill] sm:$0xff]  ;;  %v6936_v47 = vld [vmem:[#allocation34_spill] sm:$0xff] }
 0xa03   :  { %v3929_v37 = vpop.eup %3928 }
 0xa04   :  { %v2513_v49 = vmul.f32 %v3929_v37, %v5720_v15  ;;  %v6925_v15 = vld [vmem:[#allocation47_spill] sm:$0xff]  ;;  %v6938_v37 = vld [vmem:[#allocation37_spill] sm:$0xff] }
 0xa05   :  { %v3931_v44 = vpop.eup %3930 }
 0xa06   :  { %v5798_v19 = vadd.f32 %v2514_v17, %v2513_v49  ;;  %v6937_v17 = vld [vmem:[#allocation32_spill] sm:$0xff] }
 0xa07   :  { %v6940_v49 = vld [vmem:[#allocation20_spill] sm:$0xff] }
 0xa08   :  { %3932 = vtanh.f32 %v5798_v19 }
 0xa15   :  { %v3933_v12 = vpop.eup %3932 }
 0xa16   :  { %v2517_v20 = vmul.f32 %v3933_v12, %v3931_v44  ;;  %v1967_v44 = vadd.f32 %v6940_v49, %v6939_v13 }
 0xa18   :  { %2583 = vmatmul.mubr.f32.vlgmr.msra.gmra.mxu0 %v2517_v20  ;;  %2654 = vmatmul.mubr.f32.vlgmr.msra.gmra.mxu1 %v2517_v20  ;;  %v6941_v20 = vld [vmem:[#allocation22_spill] sm:$0xff] }
 0xa19   :  { %2689 = vmatpush1.msra.mxu0 %v5378_v6  ;;  %2760 = vmatpush1.msra.mxu1 %v5380_v32  ;;  %v6915_v6 = vld [vmem:[#allocation39_spill] sm:$0xff]  ;;  %v6916_v32 = vld [vmem:[#allocation40_spill] sm:$0xff] }
 0xa1a   :  { %2690 = vmatprep.subr.mxu0 %v5384_v30  ;;  %2761 = vmatprep.subr.mxu1 %v5386_v56  ;;  %v6917_v30 = vld [vmem:[#allocation38_spill] sm:$0xff]  ;;  %v6918_v56 = vld [vmem:[#allocation41_spill] sm:$0xff] }
 0xa1b   :  { %2691 = vmatpush1.msra.mxu0 %v5390_v57  ;;  %2762 = vmatpush1.msra.mxu1 %v5392_v55  ;;  %v6919_v57 = vld [vmem:[#allocation43_spill] sm:$0xff]  ;;  %v6920_v55 = vld [vmem:[#allocation44_spill] sm:$0xff] }
 0xa1c   :  { %2692 = vmatprep.subr.mxu0 %v5396_v5  ;;  %2763 = vmatprep.subr.mxu1 %v5398_v59  ;;  %v6921_v5 = vld [vmem:[#allocation42_spill] sm:$0xff] }
 0xa1d   :  { %2693 = vmatpush1.msra.mxu0 %v5402_v36  ;;  %2764 = vmatpush1.msra.mxu1 %v5404_v0  ;;  %v6922_v59 = vld [vmem:[#allocation10_spill] sm:$0xff]  ;;  %v6923_v36 = vld [vmem:[#allocation11_spill] sm:$0xff]  ;;  %v6924_v0 = vld [vmem:[#allocation45_spill] sm:$0xff] }
 0xa1e   :  { %2694 = vmatprep.subr.mxu0 %v5408_v45  ;;  %2765 = vmatprep.subr.mxu1 %v5410_v3 }
 0xa1f   :  { %2695 = vmatpush1.msra.mxu0 %v5414_v1  ;;  %2766 = vmatpush1.msra.mxu1 %v5416_v63 }
 0xa20   :  { %2696 = vmatprep.subr.mxu0 %v5420_v62  ;;  %2767 = vmatprep.subr.mxu1 %v5422_v10 }
 0xa21   :  { %2697 = vmatpush1.msra.mxu0 %v5426_v9  ;;  %2768 = vmatpush1.msra.mxu1 %v5428_v4 }
 0xa22   :  { %2698 = vmatprep.subr.mxu0 %v5432_v2  ;;  %2769 = vmatprep.subr.mxu1 %v5434_v18 }
 0xa23   :  { %2699 = vmatpush1.msra.mxu0 %v5438_v54  ;;  %2770 = vmatpush1.msra.mxu1 %v5440_v34 }
 0xa24   :  { %2700 = vmatprep.subr.mxu0 %v5444_v35  ;;  %2771 = vmatprep.subr.mxu1 %v5446_v38 }
 0xa25   :  { %2701 = vmatpush1.msra.mxu0 %v5450_v11  ;;  %2772 = vmatpush1.msra.mxu1 %v5452_v7 }
 0xa26   :  { %2702 = vmatprep.subr.mxu0 %v5456_v58  ;;  %2773 = vmatprep.subr.mxu1 %v5458_v22 }
 0xa27   :  { %2703 = vmatpush1.msra.mxu0 %v5462_v23  ;;  %2774 = vmatpush1.msra.mxu1 %v5464_v24 }
 0xa28   :  { %2704 = vmatprep.subr.mxu0 %v5468_v25  ;;  %2775 = vmatprep.subr.mxu1 %v5470_v26 }
 0xa29   :  { %2705 = vmatpush1.msra.mxu0 %v5474_v28  ;;  %2776 = vmatpush1.msra.mxu1 %v5476_v29 }
 0xa2a   :  { %2706 = vmatprep.subr.mxu0 %v5480_v31  ;;  %2777 = vmatprep.subr.mxu1 %v5482_v8 }
 0xa2b   :  { %2707 = vmatpush1.msra.mxu0 %v5486_v39  ;;  %2778 = vmatpush1.msra.mxu1 %v5488_v40 }
 0xa2c   :  { %2708 = vmatprep.subr.mxu0 %v5492_v41  ;;  %2779 = vmatprep.subr.mxu1 %v5494_v42 }
 0xa2d   :  { %2709 = vmatpush1.msra.mxu0 %v5498_v43  ;;  %2780 = vmatpush1.msra.mxu1 %v6915_v6 }
 0xa2e   :  { %2710 = vmatprep.subr.mxu0 %v6916_v32  ;;  %2781 = vmatprep.subr.mxu1 %v6917_v30 }
 0xa2f   :  { %2711 = vmatpush1.msra.mxu0 %v6918_v56  ;;  %2782 = vmatpush1.msra.mxu1 %v6919_v57 }
 0xa30   :  { %2712 = vmatprep.subr.mxu0 %v6920_v55  ;;  %2783 = vmatprep.subr.mxu1 %v6921_v5 }
 0xa31   :  { %2713 = vmatpush1.msra.mxu0 %v6922_v59  ;;  %2784 = vmatpush1.msra.mxu1 %v6923_v36 }
 0xa32   :  { %2714 = vmatprep.subr.mxu0 %v6924_v0  ;;  %2785 = vmatprep.subr.mxu1 %v6925_v15 }
 0xa33   :  { %2715 = vmatpush1.msra.mxu0 %v6926_v46  ;;  %2786 = vmatpush1.msra.mxu1 %v6927_v61  ;;  %v6943_v61 = vld [vmem:[#allocation21_spill] sm:$0xff] }
 0xa34   :  { %2716 = vmatprep.subr.mxu0 %v6928_v50  ;;  %2787 = vmatprep.subr.mxu1 %v6929_v53  ;;  %v2080_v49 = vadd.f32 %v6943_v61, %v5717_v27 }
 0xa35   :  { %2717 = vmatpush1.msra.mxu0 %v6930_v51  ;;  %2788 = vmatpush1.msra.mxu1 %v6931_v48 }
 0xa36   :  { %2718 = vmatprep.subr.mxu0 %v6932_v21  ;;  %2789 = vmatprep.subr.mxu1 %v6933_v52  ;;  %v1969_v21 = vadd.f32 %v6941_v20, %v5700_v14 }
 0xa37   :  { %2719 = vmatpush1.msra.mxu0 %v6934_v60  ;;  %2752 = vmatprep.mubr.f32.mxu0 %v6935_v33 }
 0xa38   :  { %2790 = vmatpush1.msra.mxu1 %v6936_v47  ;;  %2823 = vmatprep.mubr.f32.mxu1 %v6935_v33 }
 0xa39   :  { %2858 = vmatprep.subr.mxu0 %v6937_v17  ;;  %2929 = vmatprep.subr.mxu1 %v6938_v37  ;;  %v6942_v17 = vld [vmem:[#allocation23_spill] sm:$0xff] }
 0xa3a   :  { %v2082_v50 = vadd.f32 %v6942_v17, %v6912_v16  ;;  %v5885_v17 = vld [vmem:[#allocation7 + $0x1c8] sm:$0xff] }
 0xad8   :  { %v2584_v12 = vpop.f32.mrf.mxu0  ;;  %v2655_v53 = vpop.f32.mrf.mxu1 }
 0xad9   :  { %v2660_v52 = vadd.f32 %v2584_v12, %v1967_v44  ;;  %v2662_v13 = vadd.f32 %v2655_v53, %v2080_v49  ;;  %v5894_v49 = vld [vmem:[#allocation7 + $0x1d0] sm:$0xff] }
 0xada   :  { %v2586_v48 = vpop.f32.mrf.mxu0  ;;  %v2657_v33 = vpop.f32.mrf.mxu1 }
 0xadb   :  { %v3696_v60 = vmul.f32 -1.442695, %v2660_v52  ;;  %v2661_v51 = vadd.f32 %v2586_v48, %v1969_v21  ;;  %v2663_v37 = vadd.f32 %v2657_v33, %v2082_v50 }
 0xadd   :  { %3934 = vpow2.f32 %v3696_v60  ;;  %v3697_v47 = vmul.f32 -1.442695, %v2661_v51  ;;  %v3698_v46 = vmul.f32 -1.442695, %v2663_v37  ;;  %v5891_v37 = vld [vmem:[#allocation7 + $0x1c0] sm:$0xff] }
 0xadf   :  { %3936 = vpow2.f32 %v3697_v47 }
 0xae0   :  { %3938 = vtanh.f32 %v2662_v13  ;;  %v5882_v13 = vld [vmem:[#allocation7 + $0x1f0] sm:$0xff] }
 0xae1   :  { %3940 = vpow2.f32 %v3698_v46  ;;  %v5879_v46 = vld [vmem:[#allocation7 + $0x1e0] sm:$0xff] }
 0xaea   :  { %v3935_v15 = vpop.eup %3934 }
 0xaeb   :  { %v2667_v20 = vadd.f32 1.0, %v3935_v15 }
 0xaec   :  { %v3937_v44 = vpop.eup %3936 }
 0xaed   :  { %3942 = vrcp.f32 %v2667_v20  ;;  %v2673_v48 = vadd.f32 1.0, %v3937_v44  ;;  %v3939_v51 = vpop.eup %3938  ;;  %v5897_v20 = vld [vmem:[#allocation7 + $0x1a8] sm:$0xff]  ;;  %v5900_v44 = vld [vmem:[#allocation7 + $0x1b8] sm:$0xff] }
 0xaee   :  { %v3941_v21 = vpop.eup %3940 }
 0xaef   :  { %3944 = vrcp.f32 %v2673_v48  ;;  %v2680_v12 = vadd.f32 1.0, %v3941_v21  ;;  %v5903_v48 = vld [vmem:[#allocation7 + $0x1a0] sm:$0xff] }
 0xaf1   :  { %3946 = vrcp.f32 %v2680_v12 }
 0xafa   :  { %v3943_v52 = vpop.eup %3942 }
 0xafb   :  { %v2684_v60 = vmul.f32 %v3943_v52, %v3939_v51  ;;  %v5906_v51 = vld [vmem:[#allocation7 + $0x1b0] sm:$0xff] }
 0xafc   :  { %v3945_v47 = vpop.eup %3944 }
 0xafd   :  { %v2683_v50 = vmul.f32 %v3945_v47, %v5798_v19  ;;  %v5888_v19 = vld [vmem:[#allocation7 + $0x1d8] sm:$0xff] }
 0xafe   :  { %v3947_v15 = vpop.eup %3946 }
 0xaff   :  { %v5876_v33 = vadd.f32 %v2684_v60, %v2683_v50 }
 0xb01   :  { %3948 = vtanh.f32 %v5876_v33 }
 0xb0e   :  { %v3949_v61 = vpop.eup %3948 }
 0xb0f   :  { %v2687_v53 = vmul.f32 %v3949_v61, %v3947_v15 }
 0xb11   :  { %2753 = vmatmul.mubr.f32.vlgmr.msra.gmra.mxu0 %v2687_v53  ;;  %2824 = vmatmul.mubr.f32.vlgmr.msra.gmra.mxu1 %v2687_v53  ;;  %v5994_v53 = vld [vmem:[#allocation7 + $0x198] sm:$0xff] }
 0xb12   :  { %2859 = vmatpush1.msra.mxu0 %v5879_v46  ;;  %2930 = vmatpush1.msra.mxu1 %v5882_v13 }
 0xb13   :  { %2860 = vmatprep.subr.mxu0 %v5885_v17  ;;  %2931 = vmatprep.subr.mxu1 %v5888_v19 }
 0xb14   :  { %2861 = vmatpush1.msra.mxu0 %v5891_v37  ;;  %2932 = vmatpush1.msra.mxu1 %v5894_v49 }
 0xb15   :  { %2862 = vmatprep.subr.mxu0 %v5897_v20  ;;  %2933 = vmatprep.subr.mxu1 %v5900_v44 }
 0xb16   :  { %2863 = vmatpush1.msra.mxu0 %v5903_v48  ;;  %2934 = vmatpush1.msra.mxu1 %v5906_v51 }
 0xb17   :  { %2864 = vmatprep.subr.mxu0 %v5408_v45  ;;  %2935 = vmatprep.subr.mxu1 %v5410_v3  ;;  %v6944_v45 = vld [vmem:[#allocation47_spill] sm:$0xff]  ;;  %v6945_v3 = vld [vmem:[#allocation48_spill] sm:$0xff] }
 0xb18   :  { %2865 = vmatpush1.msra.mxu0 %v5414_v1  ;;  %2936 = vmatpush1.msra.mxu1 %v5416_v63  ;;  %v6946_v1 = vld [vmem:[#allocation46_spill] sm:$0xff]  ;;  %v6947_v63 = vld [vmem:[#allocation13_spill] sm:$0xff] }
 0xb19   :  { %2866 = vmatprep.subr.mxu0 %v5420_v62  ;;  %2937 = vmatprep.subr.mxu1 %v5422_v10  ;;  %v6948_v62 = vld [vmem:[#allocation14_spill] sm:$0xff]  ;;  %v6949_v10 = vld [vmem:[#allocation49_spill] sm:$0xff] }
 0xb1a   :  { %2867 = vmatpush1.msra.mxu0 %v5426_v9  ;;  %2938 = vmatpush1.msra.mxu1 %v5428_v4  ;;  %v6950_v9 = vld [vmem:[#allocation51_spill] sm:$0xff]  ;;  %v6951_v4 = vld [vmem:[#allocation52_spill] sm:$0xff] }
 0xb1b   :  { %2868 = vmatprep.subr.mxu0 %v5432_v2  ;;  %2939 = vmatprep.subr.mxu1 %v5434_v18  ;;  %v6952_v2 = vld [vmem:[#allocation50_spill] sm:$0xff]  ;;  %v6953_v18 = vld [vmem:[#allocation36_spill] sm:$0xff] }
 0xb1c   :  { %2869 = vmatpush1.msra.mxu0 %v5438_v54  ;;  %2940 = vmatpush1.msra.mxu1 %v5440_v34  ;;  %v6954_v54 = vmov 0.0   ;;  %v6955_v34 = vld [vmem:[#allocation34_spill] sm:$0xff] }
 0xb1d   :  { %2870 = vmatprep.subr.mxu0 %v5444_v35  ;;  %2941 = vmatprep.subr.mxu1 %v5446_v38  ;;  %v5963_v35 = vld [vmem:[#allocation7 + $0x1e8] sm:$0xff]  ;;  %v5966_v38 = vld [vmem:[#allocation7 + $0x1f8] sm:$0xff] }
 0xb1e   :  { %2871 = vmatpush1.msra.mxu0 %v5450_v11  ;;  %2942 = vmatpush1.msra.mxu1 %v5452_v7  ;;  %6956 = vst [vmem:[#allocation16_spill] sm:$0xff] %v5963_v35  ;;  %6957 = vst [vmem:[#allocation18_spill] sm:$0xff] %v5966_v38  ;;  %v6958_v11 = vld [vmem:[#allocation31_spill] sm:$0xff]  ;;  %v6959_v7 = vld [vmem:[#allocation24_spill] sm:$0xff] }
 0xb1f   :  { %2872 = vmatprep.subr.mxu0 %v5456_v58  ;;  %2943 = vmatprep.subr.mxu1 %v5458_v22  ;;  %v1973_v58 = vadd.f32 %v6959_v7, %v6958_v11  ;;  %v6030_v7 = vld [vmem:[#allocation7 + $0x138] sm:$0xff] }
 0xb20   :  { %2873 = vmatpush1.msra.mxu0 %v5462_v23  ;;  %2944 = vmatpush1.msra.mxu1 %v5464_v24  ;;  %v6960_v23 = vld [vmem:[#allocation26_spill] sm:$0xff] }
 0xb21   :  { %2874 = vmatprep.subr.mxu0 %v5468_v25  ;;  %2945 = vmatprep.subr.mxu1 %v5470_v26  ;;  %v1975_v24 = vadd.f32 %v6960_v23, %v5700_v14  ;;  %v6039_v23 = vld [vmem:[#allocation7 + $0x108] sm:$0xff] }
 0xb22   :  { %2875 = vmatpush1.msra.mxu0 %v5474_v28  ;;  %2946 = vmatpush1.msra.mxu1 %v5476_v29 }
 0xb23   :  { %2876 = vmatprep.subr.mxu0 %v5480_v31  ;;  %2947 = vmatprep.subr.mxu1 %v5482_v8 }
 0xb24   :  { %2877 = vmatpush1.msra.mxu0 %v5486_v39  ;;  %2948 = vmatpush1.msra.mxu1 %v5488_v40  ;;  %v6961_v40 = vld [vmem:[#allocation27_spill] sm:$0xff] }
 0xb25   :  { %2878 = vmatprep.subr.mxu0 %v5492_v41  ;;  %2949 = vmatprep.subr.mxu1 %v5494_v42  ;;  %v2088_v41 = vadd.f32 %v6961_v40, %v6912_v16  ;;  %v6066_v40 = vld [vmem:[#allocation7 + $0xd8] sm:$0xff] }
 0xb26   :  { %2879 = vmatpush1.msra.mxu0 %v5498_v43  ;;  %2950 = vmatpush1.msra.mxu1 %v6915_v6  ;;  %v6962_v43 = vld [vmem:[#allocation25_spill] sm:$0xff] }
 0xb27   :  { %2880 = vmatprep.subr.mxu0 %v6916_v32  ;;  %2951 = vmatprep.subr.mxu1 %v6917_v30  ;;  %v2086_v6 = vadd.f32 %v6962_v43, %v5717_v27  ;;  %v6075_v43 = vld [vmem:[#allocation7 + $0xa8] sm:$0xff] }
 0xb28   :  { %2881 = vmatpush1.msra.mxu0 %v6918_v56  ;;  %2952 = vmatpush1.msra.mxu1 %v6919_v57 }
 0xb29   :  { %2882 = vmatprep.subr.mxu0 %v6920_v55  ;;  %2953 = vmatprep.subr.mxu1 %v6921_v5 }
 0xb2a   :  { %2883 = vmatpush1.msra.mxu0 %v6922_v59  ;;  %2954 = vmatpush1.msra.mxu1 %v6923_v36 }
 0xb2b   :  { %2884 = vmatprep.subr.mxu0 %v6924_v0  ;;  %2955 = vmatprep.subr.mxu1 %v6944_v45  ;;  %v5997_v45 = vld [vmem:[#allocation7 + $0x180] sm:$0xff] }
 0xb2c   :  { %2885 = vmatpush1.msra.mxu0 %v6945_v3  ;;  %2956 = vmatpush1.msra.mxu1 %v6946_v1  ;;  %v6000_v3 = vld [vmem:[#allocation7 + $0x190] sm:$0xff]  ;;  %v6003_v1 = vld [vmem:[#allocation7 + $0x168] sm:$0xff] }
 0xb2d   :  { %2886 = vmatprep.subr.mxu0 %v6947_v63  ;;  %2957 = vmatprep.subr.mxu1 %v6948_v62  ;;  %v6006_v63 = vld [vmem:[#allocation7 + $0x178] sm:$0xff]  ;;  %v6009_v62 = vld [vmem:[#allocation7 + $0x160] sm:$0xff] }
 0xb2e   :  { %2887 = vmatpush1.msra.mxu0 %v6949_v10  ;;  %2958 = vmatpush1.msra.mxu1 %v6950_v9  ;;  %v6012_v10 = vld [vmem:[#allocation7 + $0x170] sm:$0xff]  ;;  %v6015_v9 = vld [vmem:[#allocation7 + $0x148] sm:$0xff] }
 0xb2f   :  { %2888 = vmatprep.subr.mxu0 %v6951_v4  ;;  %2959 = vmatprep.subr.mxu1 %v6952_v2  ;;  %v6018_v4 = vld [vmem:[#allocation7 + $0x158] sm:$0xff]  ;;  %v6021_v2 = vld [vmem:[#allocation7 + $0x140] sm:$0xff] }
 0xb30   :  { %2889 = vmatpush1.msra.mxu0 %v6953_v18  ;;  %2922 = vmatprep.mubr.f32.mxu0 %v6954_v54  ;;  %v6024_v18 = vld [vmem:[#allocation7 + $0x150] sm:$0xff] }
 0xb31   :  { %2960 = vmatpush1.msra.mxu1 %v6955_v34  ;;  %2993 = vmatprep.mubr.f32.mxu1 %v6954_v54  ;;  %v6027_v34 = vld [vmem:[#allocation7 + $0x128] sm:$0xff] }
 0xb32   :  { %3028 = vmatprep.subr.mxu0 %v5963_v35  ;;  %3099 = vmatprep.subr.mxu1 %v5966_v38 }
 0xbd1   :  { %v2754_v22 = vpop.f32.mrf.mxu0  ;;  %v2825_v31 = vpop.f32.mrf.mxu1 }
 0xbd2   :  { %v2830_v25 = vadd.f32 %v2754_v22, %v1973_v58  ;;  %v2832_v32 = vadd.f32 %v2825_v31, %v2086_v6  ;;  %v6033_v58 = vld [vmem:[#allocation7 + $0x120] sm:$0xff]  ;;  %v6036_v22 = vld [vmem:[#allocation7 + $0x130] sm:$0xff]  ;;  %v6078_v6 = vld [vmem:[#allocation7 + $0xb8] sm:$0xff] }
 0xbd3   :  { %v2756_v26 = vpop.f32.mrf.mxu0  ;;  %v2827_v39 = vpop.f32.mrf.mxu1  ;;  %v6057_v31 = vld [vmem:[#allocation7 + $0xe0] sm:$0xff] }
 0xbd4   :  { %v3699_v28 = vmul.f32 -1.442695, %v2830_v25  ;;  %v2831_v29 = vadd.f32 %v2756_v26, %v1975_v24  ;;  %v2833_v42 = vadd.f32 %v2827_v39, %v2088_v41  ;;  %v6042_v24 = vld [vmem:[#allocation7 + $0x118] sm:$0xff]  ;;  %v6045_v25 = vld [vmem:[#allocation7 + $0x100] sm:$0xff]  ;;  %v6048_v26 = vld [vmem:[#allocation7 + $0x110] sm:$0xff] }
 0xbd5   :  { %v6063_v39 = vld [vmem:[#allocation7 + $0xc8] sm:$0xff]  ;;  %v6069_v41 = vld [vmem:[#allocation7 + $0xc0] sm:$0xff] }
 0xbd6   :  { %3950 = vpow2.f32 %v3699_v28  ;;  %v3700_v8 = vmul.f32 -1.442695, %v2831_v29  ;;  %v3701_v30 = vmul.f32 -1.442695, %v2833_v42  ;;  %v6051_v28 = vld [vmem:[#allocation7 + $0xe8] sm:$0xff]  ;;  %v6054_v29 = vld [vmem:[#allocation7 + $0xf8] sm:$0xff] }
 0xbd7   :  { %v6072_v42 = vld [vmem:[#allocation7 + $0xd0] sm:$0xff] }
 0xbd8   :  { %3952 = vpow2.f32 %v3700_v8  ;;  %v6060_v8 = vld [vmem:[#allocation7 + $0xf0] sm:$0xff] }
 0xbd9   :  { %3954 = vtanh.f32 %v2832_v32  ;;  %v6081_v32 = vld [vmem:[#allocation7 + $0xa0] sm:$0xff] }
 0xbda   :  { %3956 = vpow2.f32 %v3701_v30  ;;  %v6084_v30 = vld [vmem:[#allocation7 + $0xb0] sm:$0xff] }
 0xbdb   :  { %6963 = vst [vmem:[#allocation62_spill] sm:$0xff] %v6084_v30 }
 0xbe3   :  { %v3951_v56 = vpop.eup %3950 }
 0xbe4   :  { %v2837_v57 = vadd.f32 1.0, %v3951_v56  ;;  %v6087_v56 = vld [vmem:[#allocation7 + $0x88] sm:$0xff] }
 0xbe5   :  { %v3953_v55 = vpop.eup %3952  ;;  %6964 = vst [vmem:[#allocation19_spill] sm:$0xff] %v6087_v56 }
 0xbe6   :  { %3958 = vrcp.f32 %v2837_v57  ;;  %v2843_v5 = vadd.f32 1.0, %v3953_v55  ;;  %v3955_v59 = vpop.eup %3954  ;;  %v6090_v57 = vld [vmem:[#allocation7 + $0x98] sm:$0xff]  ;;  %v6093_v55 = vld [vmem:[#allocation7 + $0x80] sm:$0xff] }
 0xbe7   :  { %v3957_v36 = vpop.eup %3956  ;;  %6965 = vst [vmem:[#allocation17_spill] sm:$0xff] %v6090_v57  ;;  %6966 = vst [vmem:[#allocation39_spill] sm:$0xff] %v6093_v55 }
 0xbe8   :  { %3960 = vrcp.f32 %v2843_v5  ;;  %v2850_v60 = vadd.f32 1.0, %v3957_v36  ;;  %v6096_v5 = vld [vmem:[#allocation7 + $0x90] sm:$0xff]  ;;  %v6102_v36 = vld [vmem:[#allocation7 + $0x78] sm:$0xff] }
 0xbe9   :  { %6967 = vst [vmem:[#allocation40_spill] sm:$0xff] %v6096_v5  ;;  %6969 = vst [vmem:[#allocation41_spill] sm:$0xff] %v6102_v36 }
 0xbea   :  { %3962 = vrcp.f32 %v2850_v60  ;;  %v6114_v60 = vld [vmem:[#allocation7 + $0x58] sm:$0xff] }
 0xbeb   :  { %6973 = vst [vmem:[#allocation10_spill] sm:$0xff] %v6114_v60 }
 0xbf3   :  { %v3959_v0 = vpop.eup %3958 }
 0xbf4   :  { %v2854_v21 = vmul.f32 %v3959_v0, %v3955_v59  ;;  %v6099_v59 = vld [vmem:[#allocation7 + $0x68] sm:$0xff]  ;;  %v6105_v0 = vld [vmem:[#allocation7 + $0x60] sm:$0xff] }
 0xbf5   :  { %v3961_v52 = vpop.eup %3960  ;;  %6968 = vst [vmem:[#allocation38_spill] sm:$0xff] %v6099_v59  ;;  %6970 = vst [vmem:[#allocation43_spill] sm:$0xff] %v6105_v0 }
 0xbf6   :  { %v2853_v47 = vmul.f32 %v3961_v52, %v5876_v33  ;;  %v5991_v33 = vld [vmem:[#allocation7 + $0x188] sm:$0xff] }
 0xbf7   :  { %v3963_v50 = vpop.eup %3962  ;;  %v6111_v52 = vld [vmem:[#allocation7 + $0x48] sm:$0xff] }
 0xbf8   :  { %v5978_v12 = vadd.f32 %v2854_v21, %v2853_v47  ;;  %v6108_v21 = vld [vmem:[#allocation7 + $0x70] sm:$0xff]  ;;  %6972 = vst [vmem:[#allocation42_spill] sm:$0xff] %v6111_v52  ;;  %v6117_v47 = vld [vmem:[#allocation7 + $0x40] sm:$0xff] }
 0xbf9   :  { %6971 = vst [vmem:[#allocation44_spill] sm:$0xff] %v6108_v21  ;;  %6974 = vst [vmem:[#allocation11_spill] sm:$0xff] %v6117_v47 }
 0xbfa   :  { %3964 = vtanh.f32 %v5978_v12 }
 0xc07   :  { %v3965_v15 = vpop.eup %3964 }
 0xc08   :  { %v2857_v61 = vmul.f32 %v3965_v15, %v3963_v50  ;;  %v6120_v50 = vld [vmem:[#allocation7 + $0x50] sm:$0xff]  ;;  %v6123_v15 = vld [vmem:[#allocation7 + $0x28] sm:$0xff] }
 0xc09   :  { %6975 = vst [vmem:[#allocation45_spill] sm:$0xff] %v6120_v50  ;;  %6976 = vst [vmem:[#allocation32_spill] sm:$0xff] %v6123_v15 }
 0xc0a   :  { %2923 = vmatmul.mubr.f32.vlgmr.msra.gmra.mxu0 %v2857_v61  ;;  %2994 = vmatmul.mubr.f32.vlgmr.msra.gmra.mxu1 %v2857_v61  ;;  %v6126_v61 = vld [vmem:[#allocation7 + $0x38] sm:$0xff] }
 0xc0b   :  { %3029 = vmatpush1.msra.mxu0 %v5879_v46  ;;  %3100 = vmatpush1.msra.mxu1 %v5882_v13  ;;  %6977 = vst [vmem:[#allocation37_spill] sm:$0xff] %v6126_v61 }
 0xc0c   :  { %3030 = vmatprep.subr.mxu0 %v5885_v17  ;;  %3101 = vmatprep.subr.mxu1 %v5888_v19 }
 0xc0d   :  { %3031 = vmatpush1.msra.mxu0 %v5891_v37  ;;  %3102 = vmatpush1.msra.mxu1 %v5894_v49 }
 0xc0e   :  { %3032 = vmatprep.subr.mxu0 %v5897_v20  ;;  %3103 = vmatprep.subr.mxu1 %v5900_v44 }
 0xc0f   :  { %3033 = vmatpush1.msra.mxu0 %v5903_v48  ;;  %3104 = vmatpush1.msra.mxu1 %v5906_v51 }
 0xc10   :  { %3034 = vmatprep.subr.mxu0 %v5991_v33  ;;  %3105 = vmatprep.subr.mxu1 %v5994_v53 }
 0xc11   :  { %3035 = vmatpush1.msra.mxu0 %v5997_v45  ;;  %3106 = vmatpush1.msra.mxu1 %v6000_v3 }
 0xc12   :  { %3036 = vmatprep.subr.mxu0 %v6003_v1  ;;  %3107 = vmatprep.subr.mxu1 %v6006_v63 }
 0xc13   :  { %3037 = vmatpush1.msra.mxu0 %v6009_v62  ;;  %3108 = vmatpush1.msra.mxu1 %v6012_v10 }
 0xc14   :  { %3038 = vmatprep.subr.mxu0 %v6015_v9  ;;  %3109 = vmatprep.subr.mxu1 %v6018_v4 }
 0xc15   :  { %3039 = vmatpush1.msra.mxu0 %v6021_v2  ;;  %3110 = vmatpush1.msra.mxu1 %v6024_v18 }
 0xc16   :  { %3040 = vmatprep.subr.mxu0 %v6027_v34  ;;  %3111 = vmatprep.subr.mxu1 %v6030_v7 }
 0xc17   :  { %3041 = vmatpush1.msra.mxu0 %v6033_v58  ;;  %3112 = vmatpush1.msra.mxu1 %v6036_v22 }
 0xc18   :  { %3042 = vmatprep.subr.mxu0 %v6039_v23  ;;  %3113 = vmatprep.subr.mxu1 %v6042_v24 }
 0xc19   :  { %3043 = vmatpush1.msra.mxu0 %v6045_v25  ;;  %3114 = vmatpush1.msra.mxu1 %v6048_v26 }
 0xc1a   :  { %3044 = vmatprep.subr.mxu0 %v6051_v28  ;;  %3115 = vmatprep.subr.mxu1 %v6054_v29 }
 0xc1b   :  { %3045 = vmatpush1.msra.mxu0 %v6057_v31  ;;  %3116 = vmatpush1.msra.mxu1 %v6060_v8 }
 0xc1c   :  { %3046 = vmatprep.subr.mxu0 %v6063_v39  ;;  %3117 = vmatprep.subr.mxu1 %v6066_v40 }
 0xc1d   :  { %3047 = vmatpush1.msra.mxu0 %v6069_v41  ;;  %3118 = vmatpush1.msra.mxu1 %v6072_v42 }
 0xc1e   :  { %3048 = vmatprep.subr.mxu0 %v6075_v43  ;;  %3119 = vmatprep.subr.mxu1 %v6078_v6 }
 0xc1f   :  { %3049 = vmatpush1.msra.mxu0 %v6081_v32  ;;  %3120 = vmatpush1.msra.mxu1 %v6084_v30 }
 0xc20   :  { %3050 = vmatprep.subr.mxu0 %v6087_v56  ;;  %3121 = vmatprep.subr.mxu1 %v6090_v57  ;;  %v6987_v57 = vld [vmem:[#allocation29_spill] sm:$0xff] }
 0xc21   :  { %3051 = vmatpush1.msra.mxu0 %v6093_v55  ;;  %3122 = vmatpush1.msra.mxu1 %v6096_v5 }
 0xc22   :  { %3052 = vmatprep.subr.mxu0 %v6099_v59  ;;  %3123 = vmatprep.subr.mxu1 %v6102_v36 }
 0xc23   :  { %3053 = vmatpush1.msra.mxu0 %v6105_v0  ;;  %3124 = vmatpush1.msra.mxu1 %v6108_v21 }
 0xc24   :  { %3054 = vmatprep.subr.mxu0 %v6111_v52  ;;  %3125 = vmatprep.subr.mxu1 %v6114_v60  ;;  %v6129_v52 = vld [vmem:[#allocation7 + $0x20] sm:$0xff]  ;;  %v6132_v60 = vld [vmem:[#allocation7 + $0x30] sm:$0xff] }
 0xc25   :  { %3055 = vmatpush1.msra.mxu0 %v6117_v47  ;;  %3126 = vmatpush1.msra.mxu1 %v6120_v50  ;;  %6978 = vst [vmem:[#allocation20_spill] sm:$0xff] %v6129_v52  ;;  %6979 = vst [vmem:[#allocation22_spill] sm:$0xff] %v6132_v60  ;;  %v6135_v47 = vld [vmem:[#allocation7 + $0x8] sm:$0xff]  ;;  %v6138_v50 = vld [vmem:[#allocation7 + $0x18] sm:$0xff] }
 0xc26   :  { %3056 = vmatprep.subr.mxu0 %v6123_v15  ;;  %3127 = vmatprep.subr.mxu1 %v6126_v61  ;;  %6980 = vst [vmem:[#allocation23_spill] sm:$0xff] %v6135_v47  ;;  %6981 = vst [vmem:[#allocation21_spill] sm:$0xff] %v6138_v50  ;;  %v6141_v15 = vld [vmem:[#allocation7] sm:$0xff]  ;;  %v6145_v61 = vld [vmem:[#allocation7 + $0x10] sm:$0xff] }
 0xc27   :  { %3057 = vmatpush1.msra.mxu0 %v6129_v52  ;;  %3128 = vmatpush1.msra.mxu1 %v6132_v60  ;;  %6982 = vst [vmem:[#allocation47_spill] sm:$0xff] %v6141_v15  ;;  %6983 = vst [vmem:[#allocation48_spill] sm:$0xff] %v6145_v61  ;;  %v6985_v52 = vld [vmem:[#allocation30_spill] sm:$0xff] }
 0xc28   :  { %3058 = vmatprep.subr.mxu0 %v6135_v47  ;;  %3129 = vmatprep.subr.mxu1 %v6138_v50  ;;  %v6984_v47 = vld [vmem:[#allocation28_spill] sm:$0xff]  ;;  %v1981_v21 = vadd.f32 %v6985_v52, %v5700_v14 }
 0xc29   :  { %3059 = vmatpush1.msra.mxu0 %v6141_v15  ;;  %3092 = vmatprep.mubr.f32.mxu0 %v6954_v54  ;;  %v1979_v60 = vadd.f32 %v6984_v47, %v6958_v11  ;;  %v2092_v47 = vadd.f32 %v6987_v57, %v5717_v27  ;;  %v6990_v57 = vld [vmem:[#allocation17_spill] sm:$0xff] }
 0xc2a   :  { %3130 = vmatpush1.msra.mxu1 %v6145_v61  ;;  %3163 = vmatprep.mubr.f32.mxu1 %v6954_v54 }
 0xc2b   :  { %3198 = vmatprep.subr.mxu0 %v5963_v35  ;;  %3269 = vmatprep.subr.mxu1 %v5966_v38  ;;  %v6986_v35 = vld [vmem:[#allocation53_spill] sm:$0xff] }
 0xc2c   :  { %v2094_v55 = vadd.f32 %v6986_v35, %v6912_v16 }
 0xcca   :  { %v2924_v50 = vpop.f32.mrf.mxu0  ;;  %v2995_v5 = vpop.f32.mrf.mxu1 }
 0xccb   :  { %v3000_v15 = vadd.f32 %v2924_v50, %v1979_v60  ;;  %v3002_v11 = vadd.f32 %v2995_v5, %v2092_v47  ;;  %v6991_v5 = vld [vmem:[#allocation39_spill] sm:$0xff]  ;;  %v6993_v47 = vld [vmem:[#allocation38_spill] sm:$0xff] }
 0xccc   :  { %v2926_v0 = vpop.f32.mrf.mxu0  ;;  %v2997_v54 = vpop.f32.mrf.mxu1 }
 0xccd   :  { %v3702_v36 = vmul.f32 -1.442695, %v3000_v15  ;;  %v3001_v59 = vadd.f32 %v2926_v0, %v1981_v21  ;;  %v3003_v38 = vadd.f32 %v2997_v54, %v2094_v55 }
 0xccf   :  { %3966 = vpow2.f32 %v3702_v36  ;;  %v3703_v61 = vmul.f32 -1.442695, %v3001_v59  ;;  %v3704_v56 = vmul.f32 -1.442695, %v3003_v38 }
 0xcd1   :  { %3968 = vpow2.f32 %v3703_v61  ;;  %v6992_v61 = vld [vmem:[#allocation40_spill] sm:$0xff] }
 0xcd2   :  { %3970 = vtanh.f32 %v3002_v11 }
 0xcd3   :  { %3972 = vpow2.f32 %v3704_v56  ;;  %v6989_v56 = vld [vmem:[#allocation19_spill] sm:$0xff] }
 0xcdc   :  { %v3967_v30 = vpop.eup %3966 }
 0xcdd   :  { %v3007_v52 = vadd.f32 1.0, %v3967_v30 }
 0xcde   :  { %v3969_v60 = vpop.eup %3968 }
 0xcdf   :  { %3974 = vrcp.f32 %v3007_v52  ;;  %v3013_v36 = vadd.f32 1.0, %v3969_v60  ;;  %v3971_v59 = vpop.eup %3970  ;;  %v6994_v52 = vld [vmem:[#allocation41_spill] sm:$0xff]  ;;  %v6995_v60 = vld [vmem:[#allocation43_spill] sm:$0xff] }
 0xce0   :  { %v3973_v0 = vpop.eup %3972 }
 0xce1   :  { %3976 = vrcp.f32 %v3013_v36  ;;  %v3020_v35 = vadd.f32 1.0, %v3973_v0  ;;  %v6996_v36 = vld [vmem:[#allocation44_spill] sm:$0xff]  ;;  %v6998_v0 = vld [vmem:[#allocation10_spill] sm:$0xff] }
 0xce3   :  { %3978 = vrcp.f32 %v3020_v35  ;;  %v7002_v35 = vld [vmem:[#allocation37_spill] sm:$0xff] }
 0xcec   :  { %v3975_v21 = vpop.eup %3974 }
 0xced   :  { %v3024_v50 = vmul.f32 %v3975_v21, %v3971_v59  ;;  %v6997_v59 = vld [vmem:[#allocation42_spill] sm:$0xff]  ;;  %v6999_v21 = vld [vmem:[#allocation11_spill] sm:$0xff] }
 0xcee   :  { %v3977_v15 = vpop.eup %3976 }
 0xcef   :  { %v3023_v54 = vmul.f32 %v3977_v15, %v5978_v12  ;;  %v6988_v12 = vld [vmem:[#allocation62_spill] sm:$0xff]  ;;  %v7001_v15 = vld [vmem:[#allocation32_spill] sm:$0xff] }
 0xcf0   :  { %v3979_v38 = vpop.eup %3978 }
 0xcf1   :  { %v6160_v55 = vadd.f32 %v3024_v50, %v3023_v54  ;;  %v7000_v50 = vld [vmem:[#allocation45_spill] sm:$0xff]  ;;  %v7003_v54 = vld [vmem:[#allocation20_spill] sm:$0xff] }
 0xcf3   :  { %3980 = vtanh.f32 %v6160_v55 }
 0xd00   :  { %v3981_v11 = vpop.eup %3980 }
 0xd01   :  { %v3027_v30 = vmul.f32 %v3981_v11, %v3979_v38  ;;  %v7004_v38 = vld [vmem:[#allocation22_spill] sm:$0xff]  ;;  %v7005_v11 = vld [vmem:[#allocation23_spill] sm:$0xff] }
 0xd03   :  { %3093 = vmatmul.mubr.f32.vlgmr.msra.gmra.mxu0 %v3027_v30  ;;  %3164 = vmatmul.mubr.f32.vlgmr.msra.gmra.mxu1 %v3027_v30  ;;  %v7006_v30 = vld [vmem:[#allocation21_spill] sm:$0xff] }
 0xd04   :  { %3199 = vmatpush1.msra.mxu0 %v5879_v46  ;;  %3270 = vmatpush1.msra.mxu1 %v5882_v13 }
 0xd05   :  { %3200 = vmatprep.subr.mxu0 %v5885_v17  ;;  %3271 = vmatprep.subr.mxu1 %v5888_v19 }
 0xd06   :  { %3201 = vmatpush1.msra.mxu0 %v5891_v37  ;;  %3272 = vmatpush1.msra.mxu1 %v5894_v49 }
 0xd07   :  { %3202 = vmatprep.subr.mxu0 %v5897_v20  ;;  %3273 = vmatprep.subr.mxu1 %v5900_v44 }
 0xd08   :  { %3203 = vmatpush1.msra.mxu0 %v5903_v48  ;;  %3274 = vmatpush1.msra.mxu1 %v5906_v51 }
 0xd09   :  { %3204 = vmatprep.subr.mxu0 %v5991_v33  ;;  %3275 = vmatprep.subr.mxu1 %v5994_v53 }
 0xd0a   :  { %3205 = vmatpush1.msra.mxu0 %v5997_v45  ;;  %3276 = vmatpush1.msra.mxu1 %v6000_v3 }
 0xd0b   :  { %3206 = vmatprep.subr.mxu0 %v6003_v1  ;;  %3277 = vmatprep.subr.mxu1 %v6006_v63 }
 0xd0c   :  { %3207 = vmatpush1.msra.mxu0 %v6009_v62  ;;  %3278 = vmatpush1.msra.mxu1 %v6012_v10 }
 0xd0d   :  { %3208 = vmatprep.subr.mxu0 %v6015_v9  ;;  %3279 = vmatprep.subr.mxu1 %v6018_v4 }
 0xd0e   :  { %3209 = vmatpush1.msra.mxu0 %v6021_v2  ;;  %3280 = vmatpush1.msra.mxu1 %v6024_v18 }
 0xd0f   :  { %3210 = vmatprep.subr.mxu0 %v6027_v34  ;;  %3281 = vmatprep.subr.mxu1 %v6030_v7 }
 0xd10   :  { %3211 = vmatpush1.msra.mxu0 %v6033_v58  ;;  %3282 = vmatpush1.msra.mxu1 %v6036_v22 }
 0xd11   :  { %3212 = vmatprep.subr.mxu0 %v6039_v23  ;;  %3283 = vmatprep.subr.mxu1 %v6042_v24 }
 0xd12   :  { %3213 = vmatpush1.msra.mxu0 %v6045_v25  ;;  %3284 = vmatpush1.msra.mxu1 %v6048_v26 }
 0xd13   :  { %3214 = vmatprep.subr.mxu0 %v6051_v28  ;;  %3285 = vmatprep.subr.mxu1 %v6054_v29 }
 0xd14   :  { %3215 = vmatpush1.msra.mxu0 %v6057_v31  ;;  %3286 = vmatpush1.msra.mxu1 %v6060_v8 }
 0xd15   :  { %3216 = vmatprep.subr.mxu0 %v6063_v39  ;;  %3287 = vmatprep.subr.mxu1 %v6066_v40 }
 0xd16   :  { %3217 = vmatpush1.msra.mxu0 %v6069_v41  ;;  %3288 = vmatpush1.msra.mxu1 %v6072_v42 }
 0xd17   :  { %3218 = vmatprep.subr.mxu0 %v6075_v43  ;;  %3289 = vmatprep.subr.mxu1 %v6078_v6 }
 0xd18   :  { %3219 = vmatpush1.msra.mxu0 %v6081_v32  ;;  %3290 = vmatpush1.msra.mxu1 %v6988_v12 }
 0xd19   :  { %3220 = vmatprep.subr.mxu0 %v6989_v56  ;;  %3291 = vmatprep.subr.mxu1 %v6990_v57  ;;  %v7016_v57 = vld [vmem:[#allocation56_spill] sm:$0xff] }
 0xd1a   :  { %3221 = vmatpush1.msra.mxu0 %v6991_v5  ;;  %3292 = vmatpush1.msra.mxu1 %v6992_v61 }
 0xd1b   :  { %3222 = vmatprep.subr.mxu0 %v6993_v47  ;;  %3293 = vmatprep.subr.mxu1 %v6994_v52 }
 0xd1c   :  { %3223 = vmatpush1.msra.mxu0 %v6995_v60  ;;  %3294 = vmatpush1.msra.mxu1 %v6996_v36  ;;  %v7007_v36 = vld [vmem:[#allocation47_spill] sm:$0xff] }
 0xd1d   :  { %3224 = vmatprep.subr.mxu0 %v6997_v59  ;;  %3295 = vmatprep.subr.mxu1 %v6998_v0  ;;  %v7008_v59 = vmov 0.0   ;;  %v7009_v0 = vld [vmem:[#allocation48_spill] sm:$0xff] }
 0xd1e   :  { %3225 = vmatpush1.msra.mxu0 %v6999_v21  ;;  %3296 = vmatpush1.msra.mxu1 %v7000_v50  ;;  %v7010_v50 = vld [vmem:[#allocation16_spill] sm:$0xff] }
 0xd1f   :  { %3226 = vmatprep.subr.mxu0 %v7001_v15  ;;  %3297 = vmatprep.subr.mxu1 %v7002_v35  ;;  %v7011_v15 = vld [vmem:[#allocation18_spill] sm:$0xff]  ;;  %v7012_v35 = vld [vmem:[#allocation31_spill] sm:$0xff] }
 0xd20   :  { %3227 = vmatpush1.msra.mxu0 %v7003_v54  ;;  %3298 = vmatpush1.msra.mxu1 %v7004_v38  ;;  %v7013_v54 = vld [vmem:[#allocation55_spill] sm:$0xff] }
 0xd21   :  { %3228 = vmatprep.subr.mxu0 %v7005_v11  ;;  %3299 = vmatprep.subr.mxu1 %v7006_v30  ;;  %v1985_v21 = vadd.f32 %v7013_v54, %v7012_v35  ;;  %v7014_v11 = vld [vmem:[#allocation54_spill] sm:$0xff]  ;;  %v2098_v54 = vadd.f32 %v7016_v57, %v5717_v27 }
 0xd22   :  { %3229 = vmatpush1.msra.mxu0 %v7007_v36  ;;  %3262 = vmatprep.mubr.f32.mxu0 %v7008_v59  ;;  %v1987_v60 = vadd.f32 %v7014_v11, %v5700_v14 }
 0xd23   :  { %3300 = vmatpush1.msra.mxu1 %v7009_v0  ;;  %3333 = vmatprep.mubr.f32.mxu1 %v7008_v59 }
 0xd24   :  { %3368 = vmatprep.subr.mxu0 %v7010_v50  ;;  %3439 = vmatprep.subr.mxu1 %v7011_v15  ;;  %v7015_v50 = vld [vmem:[#allocation61_spill] sm:$0xff] }
 0xd25   :  { %v2100_v5 = vadd.f32 %v7015_v50, %v6912_v16 }
 0xdc3   :  { %v3094_v38 = vpop.f32.mrf.mxu0  ;;  %v3165_v61 = vpop.f32.mrf.mxu1 }
 0xdc4   :  { %v3170_v30 = vadd.f32 %v3094_v38, %v1985_v21  ;;  %v3172_v35 = vadd.f32 %v3165_v61, %v2098_v54 }
 0xdc5   :  { %v3096_v52 = vpop.f32.mrf.mxu0  ;;  %v3167_v59 = vpop.f32.mrf.mxu1 }
 0xdc6   :  { %v3705_v36 = vmul.f32 -1.442695, %v3170_v30  ;;  %v3171_v47 = vadd.f32 %v3096_v52, %v1987_v60  ;;  %v3173_v15 = vadd.f32 %v3167_v59, %v2100_v5 }
 0xdc8   :  { %3982 = vpow2.f32 %v3705_v36  ;;  %v3706_v0 = vmul.f32 -1.442695, %v3171_v47  ;;  %v3707_v56 = vmul.f32 -1.442695, %v3173_v15 }
 0xdca   :  { %3984 = vpow2.f32 %v3706_v0 }
 0xdcb   :  { %3986 = vtanh.f32 %v3172_v35 }
 0xdcc   :  { %3988 = vpow2.f32 %v3707_v56 }
 0xdd5   :  { %v3983_v12 = vpop.eup %3982 }
 0xdd6   :  { %v3177_v11 = vadd.f32 1.0, %v3983_v12 }
 0xdd7   :  { %v3985_v21 = vpop.eup %3984 }
 0xdd8   :  { %3990 = vrcp.f32 %v3177_v11  ;;  %v3183_v52 = vadd.f32 1.0, %v3985_v21  ;;  %v3987_v47 = vpop.eup %3986 }
 0xdd9   :  { %v3989_v60 = vpop.eup %3988 }
 0xdda   :  { %3992 = vrcp.f32 %v3183_v52  ;;  %v3190_v30 = vadd.f32 1.0, %v3989_v60 }
 0xddc   :  { %3994 = vrcp.f32 %v3190_v30 }
 0xde5   :  { %v3991_v36 = vpop.eup %3990 }
 0xde6   :  { %v3194_v0 = vmul.f32 %v3991_v36, %v3987_v47 }
 0xde7   :  { %v3993_v38 = vpop.eup %3992 }
 0xde8   :  { %v3193_v5 = vmul.f32 %v3993_v38, %v6160_v55 }
 0xde9   :  { %v3995_v12 = vpop.eup %3994 }
 0xdea   :  { %v6238_v59 = vadd.f32 %v3194_v0, %v3193_v5 }
 0xdec   :  { %3996 = vtanh.f32 %v6238_v59 }
 0xdf9   :  { %v3997_v57 = vpop.eup %3996 }
 0xdfa   :  { %v3197_v61 = vmul.f32 %v3997_v57, %v3995_v12  ;;  %v3553_v12 = vld [vmem:[%s6407_s7 + $0x78] sm:$0xff]  ;;  %v3551_v57 = vld [vmem:[%s6407_s7 + $0x68] sm:$0xff] }
 0xdfc   :  { %3263 = vmatmul.mubr.f32.vlgmr.msra.gmra.mxu0 %v3197_v61  ;;  %3334 = vmatmul.mubr.f32.vlgmr.msra.gmra.mxu1 %v3197_v61  ;;  %v3550_v61 = vld [vmem:[%s6407_s7 + $0x60] sm:$0xff] }
 0xdfd   :  { %3369 = vmatpush1.msra.mxu0 %v5879_v46  ;;  %3440 = vmatpush1.msra.mxu1 %v5882_v13  ;;  %v7017_v46 = vld [vmem:[#allocation62_spill] sm:$0xff]  ;;  %v7018_v13 = vld [vmem:[#allocation19_spill] sm:$0xff] }
 0xdfe   :  { %3370 = vmatprep.subr.mxu0 %v5885_v17  ;;  %3441 = vmatprep.subr.mxu1 %v5888_v19  ;;  %v7019_v17 = vld [vmem:[#allocation17_spill] sm:$0xff]  ;;  %v7020_v19 = vld [vmem:[#allocation39_spill] sm:$0xff] }
 0xdff   :  { %3371 = vmatpush1.msra.mxu0 %v5891_v37  ;;  %3442 = vmatpush1.msra.mxu1 %v5894_v49  ;;  %v7021_v37 = vld [vmem:[#allocation40_spill] sm:$0xff]  ;;  %v7022_v49 = vld [vmem:[#allocation38_spill] sm:$0xff] }
 0xe00   :  { %3372 = vmatprep.subr.mxu0 %v5897_v20  ;;  %3443 = vmatprep.subr.mxu1 %v5900_v44  ;;  %v7023_v20 = vld [vmem:[#allocation41_spill] sm:$0xff]  ;;  %v7024_v44 = vld [vmem:[#allocation43_spill] sm:$0xff] }
 0xe01   :  { %3373 = vmatpush1.msra.mxu0 %v5903_v48  ;;  %3444 = vmatpush1.msra.mxu1 %v5906_v51  ;;  %v7025_v48 = vld [vmem:[#allocation44_spill] sm:$0xff]  ;;  %v7026_v51 = vld [vmem:[#allocation42_spill] sm:$0xff] }
 0xe02   :  { %3374 = vmatprep.subr.mxu0 %v5991_v33  ;;  %3445 = vmatprep.subr.mxu1 %v5994_v53  ;;  %v7027_v33 = vld [vmem:[#allocation10_spill] sm:$0xff]  ;;  %v7028_v53 = vld [vmem:[#allocation11_spill] sm:$0xff] }
 0xe03   :  { %3375 = vmatpush1.msra.mxu0 %v5997_v45  ;;  %3446 = vmatpush1.msra.mxu1 %v6000_v3  ;;  %v7029_v45 = vld [vmem:[#allocation45_spill] sm:$0xff]  ;;  %v7030_v3 = vld [vmem:[#allocation32_spill] sm:$0xff] }
 0xe04   :  { %3376 = vmatprep.subr.mxu0 %v6003_v1  ;;  %3447 = vmatprep.subr.mxu1 %v6006_v63  ;;  %v7031_v1 = vld [vmem:[#allocation37_spill] sm:$0xff]  ;;  %v7032_v63 = vld [vmem:[#allocation20_spill] sm:$0xff] }
 0xe05   :  { %3377 = vmatpush1.msra.mxu0 %v6009_v62  ;;  %3448 = vmatpush1.msra.mxu1 %v6012_v10  ;;  %v7033_v62 = vld [vmem:[#allocation22_spill] sm:$0xff]  ;;  %v7034_v10 = vld [vmem:[#allocation23_spill] sm:$0xff] }
 0xe06   :  { %3378 = vmatprep.subr.mxu0 %v6015_v9  ;;  %3449 = vmatprep.subr.mxu1 %v6018_v4  ;;  %v7035_v9 = vld [vmem:[#allocation21_spill] sm:$0xff]  ;;  %v7036_v4 = vld [vmem:[#allocation47_spill] sm:$0xff] }
 0xe07   :  { %3379 = vmatpush1.msra.mxu0 %v6021_v2  ;;  %3450 = vmatpush1.msra.mxu1 %v6024_v18  ;;  %v7037_v2 = vmov 0.0   ;;  %v7038_v18 = vld [vmem:[#allocation48_spill] sm:$0xff] }
 0xe08   :  { %3380 = vmatprep.subr.mxu0 %v6027_v34  ;;  %3451 = vmatprep.subr.mxu1 %v6030_v7  ;;  %v7039_v34 = vld [vmem:[#allocation31_spill] sm:$0xff]  ;;  %v7040_v7 = vld [vmem:[#allocation12_spill] sm:$0xff] }
 0xe09   :  { %3381 = vmatpush1.msra.mxu0 %v6033_v58  ;;  %3452 = vmatpush1.msra.mxu1 %v6036_v22  ;;  %v1991_v58 = vadd.f32 %v7040_v7, %v7039_v34 }
 0xe0a   :  { %3382 = vmatprep.subr.mxu0 %v6039_v23  ;;  %3453 = vmatprep.subr.mxu1 %v6042_v24  ;;  %v7041_v23 = vld [vmem:[#allocation35_spill] sm:$0xff] }
 0xe0b   :  { %3383 = vmatpush1.msra.mxu0 %v6045_v25  ;;  %3454 = vmatpush1.msra.mxu1 %v6048_v26  ;;  %v1993_v24 = vadd.f32 %v7041_v23, %v5700_v14  ;;  %v7046_v23 = vld [vmem:[#allocation33_spill] sm:$0xff] }
 0xe0c   :  { %3384 = vmatprep.subr.mxu0 %v6051_v28  ;;  %3455 = vmatprep.subr.mxu1 %v6054_v29 }
 0xe0d   :  { %3385 = vmatpush1.msra.mxu0 %v6057_v31  ;;  %3456 = vmatpush1.msra.mxu1 %v6060_v8 }
 0xe0e   :  { %3386 = vmatprep.subr.mxu0 %v6063_v39  ;;  %3457 = vmatprep.subr.mxu1 %v6066_v40  ;;  %v7042_v40 = vld [vmem:[#allocation57_spill] sm:$0xff] }
 0xe0f   :  { %3387 = vmatpush1.msra.mxu0 %v6069_v41  ;;  %3458 = vmatpush1.msra.mxu1 %v6072_v42  ;;  %v2106_v41 = vadd.f32 %v7042_v40, %v6912_v16 }
 0xe10   :  { %3388 = vmatprep.subr.mxu0 %v6075_v43  ;;  %3459 = vmatprep.subr.mxu1 %v6078_v6  ;;  %v7043_v43 = vld [vmem:[#allocation15_spill] sm:$0xff] }
 0xe11   :  { %3389 = vmatpush1.msra.mxu0 %v6081_v32  ;;  %3460 = vmatpush1.msra.mxu1 %v7017_v46  ;;  %v2104_v6 = vadd.f32 %v7043_v43, %v5717_v27  ;;  %v3549_v46 = vld [vmem:[%s6407_s7 + $0x58] sm:$0xff] }
 0xe12   :  { %3390 = vmatprep.subr.mxu0 %v7018_v13  ;;  %3461 = vmatprep.subr.mxu1 %v7019_v17  ;;  %v3548_v13 = vld [vmem:[%s6407_s7 + $0x50] sm:$0xff]  ;;  %v3547_v17 = vld [vmem:[%s6407_s7 + $0x48] sm:$0xff] }
 0xe13   :  { %3391 = vmatpush1.msra.mxu0 %v7020_v19  ;;  %3462 = vmatpush1.msra.mxu1 %v7021_v37  ;;  %v3546_v19 = vld [vmem:[%s6407_s7 + $0x40] sm:$0xff]  ;;  %v3545_v37 = vld [vmem:[%s6407_s7 + $0x38] sm:$0xff] }
 0xe14   :  { %3392 = vmatprep.subr.mxu0 %v7022_v49  ;;  %3463 = vmatprep.subr.mxu1 %v7023_v20  ;;  %v3544_v49 = vld [vmem:[%s6407_s7 + $0x30] sm:$0xff]  ;;  %v3543_v20 = vld [vmem:[%s6407_s7 + $0x28] sm:$0xff] }
 0xe15   :  { %3393 = vmatpush1.msra.mxu0 %v7024_v44  ;;  %3464 = vmatpush1.msra.mxu1 %v7025_v48  ;;  %v3542_v44 = vld [vmem:[%s6407_s7 + $0x20] sm:$0xff]  ;;  %v3541_v48 = vld [vmem:[%s6407_s7 + $0x18] sm:$0xff] }
 0xe16   :  { %3394 = vmatprep.subr.mxu0 %v7026_v51  ;;  %3465 = vmatprep.subr.mxu1 %v7027_v33  ;;  %v3540_v51 = vld [vmem:[%s6407_s7 + $0x10] sm:$0xff]  ;;  %v3539_v33 = vld [vmem:[%s6407_s7 + $0x8] sm:$0xff] }
 0xe17   :  { %3395 = vmatpush1.msra.mxu0 %v7028_v53  ;;  %3466 = vmatpush1.msra.mxu1 %v7029_v45  ;;  %v3538_v53 = vld [vmem:[%s6407_s7] sm:$0xff]  ;;  %v7044_v45 = vld [vmem:[#allocation59_spill] sm:$0xff] }
 0xe18   :  { %3396 = vmatprep.subr.mxu0 %v7030_v3  ;;  %3467 = vmatprep.subr.mxu1 %v7031_v1  ;;  %v1997_v3 = vadd.f32 %v7044_v45, %v7039_v34 }
 0xe19   :  { %3397 = vmatpush1.msra.mxu0 %v7032_v63  ;;  %3468 = vmatpush1.msra.mxu1 %v7033_v62  ;;  %v7045_v63 = vld [vmem:[#allocation58_spill] sm:$0xff] }
 0xe1a   :  { %3398 = vmatprep.subr.mxu0 %v7034_v10  ;;  %3469 = vmatprep.subr.mxu1 %v7035_v9  ;;  %v1999_v62 = vadd.f32 %v7045_v63, %v5700_v14 }
 0xe1b   :  { %3399 = vmatpush1.msra.mxu0 %v7036_v4  ;;  %3432 = vmatprep.mubr.f32.mxu0 %v7037_v2 }
 0xe1c   :  { %3470 = vmatpush1.msra.mxu1 %v7038_v18  ;;  %3503 = vmatprep.mubr.f32.mxu1 %v7037_v2 }
 0xe1d   :  { %3732 = vmatprep.subr.mxu0 %v7037_v2 }
 0xebc   :  { %v3264_v22 = vpop.f32.mrf.mxu0  ;;  %v3335_v31 = vpop.f32.mrf.mxu1 }
 0xebd   :  { %v3340_v25 = vadd.f32 %v3264_v22, %v1991_v58  ;;  %v3342_v32 = vadd.f32 %v3335_v31, %v2104_v6 }
 0xebe   :  { %v3266_v26 = vpop.f32.mrf.mxu0  ;;  %v3337_v39 = vpop.f32.mrf.mxu1 }
 0xebf   :  { %v3708_v28 = vmul.f32 -1.442695, %v3340_v25  ;;  %v3341_v29 = vadd.f32 %v3266_v26, %v1993_v24  ;;  %v3343_v42 = vadd.f32 %v3337_v39, %v2106_v41  ;;  %v7047_v25 = vld [vmem:[#allocation60_spill] sm:$0xff] }
 0xec0   :  { %v2110_v34 = vadd.f32 %v7047_v25, %v5717_v27 }
 0xec1   :  { %3998 = vpow2.f32 %v3708_v28  ;;  %v3709_v8 = vmul.f32 -1.442695, %v3341_v29  ;;  %v3710_v55 = vmul.f32 -1.442695, %v3343_v42 }
 0xec3   :  { %4000 = vpow2.f32 %v3709_v8 }
 0xec4   :  { %4002 = vtanh.f32 %v3342_v32 }
 0xec5   :  { %4004 = vpow2.f32 %v3710_v55 }
 0xece   :  { %v3999_v56 = vpop.eup %3998 }
 0xecf   :  { %v3347_v35 = vadd.f32 1.0, %v3999_v56 }
 0xed0   :  { %v4001_v50 = vpop.eup %4000 }
 0xed1   :  { %4006 = vrcp.f32 %v3347_v35  ;;  %v3353_v15 = vadd.f32 1.0, %v4001_v50  ;;  %v4003_v54 = vpop.eup %4002  ;;  %v3714_v35 = vld [vmem:[%s6408_s8] ss:$0 sm:$0xff] }
 0xed2   :  { %v4005_v11 = vpop.eup %4004 }
 0xed3   :  { %4008 = vrcp.f32 %v3353_v15  ;;  %v3360_v60 = vadd.f32 1.0, %v4005_v11 }
 0xed5   :  { %4010 = vrcp.f32 %v3360_v60 }
 0xede   :  { %v4007_v21 = vpop.eup %4006 }
 0xedf   :  { %v3364_v52 = vmul.f32 %v4007_v21, %v4003_v54 }
 0xee0   :  { %v4009_v47 = vpop.eup %4008 }
 0xee1   :  { %v3363_v36 = vmul.f32 %v4009_v47, %v6238_v59  ;;  %v3552_v59 = vld [vmem:[%s6407_s7 + $0x70] sm:$0xff] }
 0xee2   :  { %v4011_v38 = vpop.eup %4010 }
 0xee3   :  { %v6315_v0 = vadd.f32 %v3364_v52, %v3363_v36 }
 0xee5   :  { %4012 = vtanh.f32 %v6315_v0 }
 0xef2   :  { %v4013_v30 = vpop.eup %4012 }
 0xef3   :  { %v3367_v5 = vmul.f32 %v4013_v30, %v4011_v38 }
 0xef5   :  { %3433 = vmatmul.mubr.f32.vlgmr.msra.gmra.mxu0 %v3367_v5  ;;  %3504 = vmatmul.mubr.f32.vlgmr.msra.gmra.mxu1 %v3367_v5 }
 0xef6   :  { %3733 = vmatpush3.msra.mxu0 %v3553_v12  ;;  %3764 = vmatprep.mubr.msk.f32.mxu0 %vm4232_vm1, %v7037_v2 }
 0xef7   :  { %3734 = vmatprep.subr.mxu0 %v7037_v2 }
 0xef8   :  { %3735 = vmatpush3.msra.mxu0 %v3552_v59 }
 0xef9   :  { %3736 = vmatprep.subr.mxu0 %v7037_v2 }
 0xefa   :  { %3737 = vmatpush3.msra.mxu0 %v3551_v57 }
 0xefb   :  { %3738 = vmatprep.subr.mxu0 %v7037_v2 }
 0xefc   :  { %3739 = vmatpush3.msra.mxu0 %v3550_v61 }
 0xefd   :  { %3740 = vmatprep.subr.mxu0 %v7037_v2 }
 0xefe   :  { %3741 = vmatpush3.msra.mxu0 %v3549_v46 }
 0xeff   :  { %3742 = vmatprep.subr.mxu0 %v7037_v2 }
 0xf00   :  { %3743 = vmatpush3.msra.mxu0 %v3548_v13 }
 0xf01   :  { %3744 = vmatprep.subr.mxu0 %v7037_v2 }
 0xf02   :  { %3745 = vmatpush3.msra.mxu0 %v3547_v17 }
 0xf03   :  { %3746 = vmatprep.subr.mxu0 %v7037_v2 }
 0xf04   :  { %3747 = vmatpush3.msra.mxu0 %v3546_v19 }
 0xf05   :  { %3748 = vmatprep.subr.mxu0 %v7037_v2 }
 0xf06   :  { %3749 = vmatpush3.msra.mxu0 %v3545_v37 }
 0xf07   :  { %3750 = vmatprep.subr.mxu0 %v7037_v2 }
 0xf08   :  { %3751 = vmatpush3.msra.mxu0 %v3544_v49 }
 0xf09   :  { %3752 = vmatprep.subr.mxu0 %v7037_v2 }
 0xf0a   :  { %3753 = vmatpush3.msra.mxu0 %v3543_v20 }
 0xf0b   :  { %3754 = vmatprep.subr.mxu0 %v7037_v2 }
 0xf0c   :  { %3755 = vmatpush3.msra.mxu0 %v3542_v44 }
 0xf0d   :  { %3756 = vmatprep.subr.mxu0 %v7037_v2 }
 0xf0e   :  { %3757 = vmatpush3.msra.mxu0 %v3541_v48 }
 0xf0f   :  { %3758 = vmatprep.subr.mxu0 %v7037_v2 }
 0xf10   :  { %3759 = vmatpush3.msra.mxu0 %v3540_v51 }
 0xf11   :  { %3760 = vmatprep.subr.mxu0 %v7037_v2 }
 0xf12   :  { %3761 = vmatpush3.msra.mxu0 %v3539_v33 }
 0xf13   :  { %3762 = vmatprep.subr.mxu0 %v7037_v2  ;;  %v2112_v2 = vadd.f32 %v7046_v23, %v6912_v16 }
 0xf14   :  { %3763 = vmatpush3.msra.mxu0 %v3538_v53 }
 0xfb5   :  { %v3434_v1 = vpop.f32.mrf.mxu0  ;;  %v3505_v7 = vpop.f32.mrf.mxu1 }
 0xfb6   :  { %v3510_v10 = vadd.f32 %v3434_v1, %v1997_v3  ;;  %v3512_v26 = vadd.f32 %v3505_v7, %v2110_v34 }
 0xfb7   :  { %v3436_v9 = vpop.f32.mrf.mxu0  ;;  %v3507_v22 = vpop.f32.mrf.mxu1 }
 0xfb8   :  { %v3711_v4 = vmul.f32 -1.442695, %v3510_v10  ;;  %v3511_v18 = vadd.f32 %v3436_v9, %v1999_v62  ;;  %v3513_v24 = vadd.f32 %v3507_v22, %v2112_v2 }
 0xfba   :  { %4014 = vpow2.f32 %v3711_v4  ;;  %v3712_v58 = vmul.f32 -1.442695, %v3511_v18  ;;  %v3713_v28 = vmul.f32 -1.442695, %v3513_v24 }
 0xfbc   :  { %4016 = vpow2.f32 %v3712_v58 }
 0xfbd   :  { %4018 = vtanh.f32 %v3512_v26 }
 0xfbe   :  { %4020 = vpow2.f32 %v3713_v28 }
 0xfc7   :  { %v4015_v29 = vpop.eup %4014 }
 0xfc8   :  { %v3517_v14 = vadd.f32 1.0, %v4015_v29 }
 0xfc9   :  { %v4017_v31 = vpop.eup %4016 }
 0xfca   :  { %4022 = vrcp.f32 %v3517_v14  ;;  %v3523_v8 = vadd.f32 1.0, %v4017_v31  ;;  %v4019_v39 = vpop.eup %4018 }
 0xfcb   :  { %v4021_v40 = vpop.eup %4020 }
 0xfcc   :  { %4024 = vrcp.f32 %v3523_v8  ;;  %v3530_v16 = vadd.f32 1.0, %v4021_v40 }
 0xfce   :  { %4026 = vrcp.f32 %v3530_v16 }
 0xfd7   :  { %v4023_v41 = vpop.eup %4022 }
 0xfd8   :  { %v3534_v42 = vmul.f32 %v4023_v41, %v4019_v39 }
 0xfd9   :  { %v4025_v43 = vpop.eup %4024 }
 0xfda   :  { %v3533_v6 = vmul.f32 %v4025_v43, %v6315_v0 }
 0xfdb   :  { %v4027_v27 = vpop.eup %4026 }
 0xfdc   :  { %v3535_v32 = vadd.f32 %v3534_v42, %v3533_v6 }
 0xfde   :  { %4028 = vtanh.f32 %v3535_v32 }
 0xfeb   :  { %v4029_v55 = vpop.eup %4028 }
 0xfec   :  { %v3537_v56 = vmul.f32 %v4029_v55, %v4027_v27 }
 0xfee   :  { %3765 = vmatmul.mubr.f32.vlgmr.msra.gmra.mxu0 %v3537_v56 }
0x10ae   :  { %v3627_v50 = vpop.f32.mrf.mxu0 }
0x10af   :  { %v3628_v15 = vadd.f32 %v3714_v35, %v3627_v50 }
0x10b0   :  { %v3766_v54 = vpop.f32.mrf.mxu0 }
0x10b1   :  { %v3632_v11 = vsel %vm3631_vm2, %v3628_v15, -inf }
0x10b2   :  { %3633 = vmax.xlane.f32.xlu0 %v3632_v11 }
0x113b   :  { %v3634_v21 = vpop.xlane.xlu0 %3633 }
0x113c   :  { %v3635_v52 = vsub.f32 %v3628_v15, %v3634_v21 }
0x113e   :  { %v3636_v47 = vmul.f32 1.442695, %v3635_v52 }
0x1140   :  { %4030 = vpow2.f32 %v3636_v47 }
0x114d   :  { %v4031_v60 = vpop.eup %4030 }
0x114e   :  { %v3638_v36 = vsel %vm3631_vm2, %v4031_v60, 0.0 }
0x114f   :  { %3639 = vadd.xlane.f32.xlu0 %v3638_v36 }
0x11d8   :  { %v3640_v0 = vpop.xlane.xlu0 %3639 }
0x11d9   :  { %4032 = vrcp.f32 %v3640_v0 }
0x11e6   :  { %v4033_v38 = vpop.eup %4032 }
0x11e7   :  { %v3642_v30 = vmul.f32 %v4033_v38, %v4031_v60 }
0x11e9   :  { %3643 = vst.msk [vmem:[%s6409_s9] sm:$0xff] %vm3631_vm2, %v3642_v30 }
0x11ea   :  { %3648 = vsyncpa [#allocation4], 1 }
0x11eb   :  { %3649 = vsyncpa [#allocation6], 1 }

</bundles_post_ra>
